<compile_context>
chip_gen: v7x
topology: tpu7x:2x2x1
jax: 0.10.0
libtpu: 0.0.40
codegen_flags: <defaults>
</compile_context>

<pallas_src>
import functools

import jax
import jax.numpy as jnp
from jax.experimental import pallas as pl
from jax.experimental.pallas import tpu as pltpu

TAG_WORDS = 5
TAG_DIM = 50
HIDDEN = 20                      # H
X_DIM = 44 - 2 * HIDDEN          # = 4 (implied by nn.Linear(44, 3))
OUT_DIM = 3
D = TAG_WORDS * TAG_DIM          # 250
GATES = 8 * HIDDEN               # 160 packed gate rows: [i_a i_b | f_a f_b | g_a g_b | o_a o_b]


def tags_kernel(ta_ref, tb_ref, x_ref,
                wpa_ref, wpb_ref, bpk_ref,
                wrec_ref, wlin_h_ref, wlin_x_ref, blin_ref,
                out_ref, *, seq_len):
    T = seq_len
    H = HIDDEN
    bt = x_ref.shape[0]                                        # batch rows in this tile

    # ---- (1) Hoisted input projection for BOTH LSTMs -------------------------
    # One (bt*T, D) @ (D, 160) matmul per tag stream (MXU, memory-hidden). The
    # host-packed W_ih already places every gate at its interleaved-by-gate
    # offset (zero-padded columns), so no in-kernel gate shuffling is needed.
    # Bias folded in; accumulation in f32 regardless of the tag dtype.
    g_flat = (jnp.dot(ta_ref[...], wpa_ref[...], preferred_element_type=jnp.float32)
              + jnp.dot(tb_ref[...], wpb_ref[...], preferred_element_type=jnp.float32)
              + bpk_ref[...])                                  # (bt*T, 160) f32
    g3 = g_flat.reshape(bt, T, GATES)

    # ---- (2) Time-major, batch-on-lanes gate precompute ----------------------
    # Extract + transpose each timestep ONCE, before the serial recurrence, so
    # the loop below performs zero per-step extraction / relayout on the
    # critical path. Layout: (160 gate rows, bt lanes).
    gin = [g3[:, t, :].T for t in range(T)]                    # T x (160, bt)

    wrec = wrec_ref[...]                                       # (160, 40) block-diag W_hh^T

    # ---- (3) Fused recurrence ------------------------------------------------
    # Both LSTMs advance together: ONE block-diagonal MXU dot per step; all
    # elementwise / EUP work on dense (rows, bt) tiles. Gate blocks are 40 rows
    # (5 full sublane tiles) -> aligned, copy-free slices.
    # TODO(synk): for large T switch this fully-unrolled loop to chunked
    # lax.fori_loop(..., unroll=True); T is small and static for this module.
    h = jnp.zeros((2 * H, bt), jnp.float32)                    # rows [h_a ; h_b]
    c = jnp.zeros((2 * H, bt), jnp.float32)                    # rows [c_a ; c_b]
    for t in range(T):
        gates = gin[t] + jnp.dot(wrec, h, preferred_element_type=jnp.float32)  # (160, bt)
        i_g = jax.nn.sigmoid(gates[0 * 2 * H:1 * 2 * H, :])
        f_g = jax.nn.sigmoid(gates[1 * 2 * H:2 * 2 * H, :])
        g_g = jnp.tanh(gates[2 * 2 * H:3 * 2 * H, :])
        o_g = jax.nn.sigmoid(gates[3 * 2 * H:4 * 2 * H, :])
        c = f_g * c + i_g * g_g
        h = o_g * jnp.tanh(c)

    # ---- (4) Head ------------------------------------------------------------
    # out = [h_a | h_b | x] @ W_lin + b_lin with host-pre-split weights; only
    # the tiny (40, bt) final state is transposed back to batch-major.
    h_bt = h.T                                                 # (bt, 40) = [h_a | h_b]
    out = (jnp.dot(h_bt, wlin_h_ref[...], preferred_element_type=jnp.float32)
           + jnp.dot(x_ref[...], wlin_x_ref[...], preferred_element_type=jnp.float32)
           + blin_ref[...])
    out_ref[...] = out


def _round_up(v, m):
    return (v + m - 1) // m * m


def _pick_batch_tile(batch):
    """>=2 grid tiles whenever batch allows two multiple-of-8 tiles (v7x has
    2 TensorCores), capped at 128 rows so the tag DMA pipelines across tiles."""
    if batch <= 8:
        return max(batch, 1)
    return max(8, min(128, _round_up(pl.cdiv(batch, 2), 8)))


def _vmem_limit_bytes(bt, seq_len, tag_itemsize):
    """VMEM budget computed from actual tile sizes (v7x has only 64 MiB/TC)."""
    tag_tile = bt * seq_len * D * tag_itemsize                 # one tag-tile buffer
    gates = bt * seq_len * GATES * 4                           # f32 projection + gin copies
    weights = 2 * D * GATES * tag_itemsize + GATES * 2 * HIDDEN * 4 + (1 << 16)
    need = 2 * 3 * tag_tile + 3 * gates + 2 * weights + (2 << 20)
    return int(min(32 << 20, max(16 << 20, 2 * need)))


def _pack_params(params, input_dtype):
    """Host-side packing (feedback item 4): interleaved-by-gate zero-padded
    W_ih, block-diagonal W_hh^T, pre-split head weights. Packed gate order on
    the 160-wide axis is [i_a i_b | f_a f_b | g_a g_b | o_a o_b] (PyTorch gate
    order i,f,g,o), so per-gate blocks are 40 = 5x8 rows (aligned slices)."""
    H = HIDDEN
    wpa = jnp.zeros((D, GATES), jnp.float32)
    wpb = jnp.zeros((D, GATES), jnp.float32)
    bpk = jnp.zeros((1, GATES), jnp.float32)
    wrec = jnp.zeros((GATES, 2 * H), jnp.float32)
    for g in range(4):
        src = slice(g * H, (g + 1) * H)
        dst_a = slice(2 * g * H, 2 * g * H + H)
        dst_b = slice(2 * g * H + H, 2 * (g + 1) * H)
        wpa = wpa.at[:, dst_a].set(params["wih_a"][:, src])
        wpb = wpb.at[:, dst_b].set(params["wih_b"][:, src])
        bpk = bpk.at[:, dst_a].set(params["b_a"][:, src])
        bpk = bpk.at[:, dst_b].set(params["b_b"][:, src])
        wrec = wrec.at[dst_a, 0:H].set(params["whh_a"][:, src].T)
        wrec = wrec.at[dst_b, H:2 * H].set(params["whh_b"][:, src].T)
    return dict(
        wpa=wpa.astype(input_dtype), wpb=wpb.astype(input_dtype), bpk=bpk,
        wrec=wrec,
        wlin_h=params["wlin"][0:2 * H, :], wlin_x=params["wlin"][2 * H:, :],
        blin=params["blin"],
    )


def _tag_block_spec(bt, seq_len, buffered):
    idx = lambda i: (i, 0)
    if buffered:
        try:   # 3-deep pipelining on the tag streams; graceful fallback on older JAX
            return pl.BlockSpec((bt * seq_len, D), idx, pipeline_mode=pl.Buffered(3))
        except (AttributeError, TypeError):
            pass
    return pl.BlockSpec((bt * seq_len, D), idx)


def tags_model_forward(params, tags_a, tags_b, x, *, input_dtype=jnp.bfloat16):
    """Forward pass of TagsModel. `input_dtype` controls only the tag / W_ih
    stream feeding the HBM-bound input projection (bf16 recommended on
    v5e/v6e); accumulation, the recurrence and the head are always f32."""
    B, T = tags_a.shape[0], tags_a.shape[1]
    pk = _pack_params(params, input_dtype)

    bt = _pick_batch_tile(B)
    b_pad = _round_up(B, bt)
    num_tiles = b_pad // bt

    # Contiguous (free) reshape only -- no wrapper-side transpose of the big tags.
    ta = tags_a.reshape(B * T, D).astype(input_dtype)
    tb = tags_b.reshape(B * T, D).astype(input_dtype)
    xx = x.astype(jnp.float32)
    if b_pad != B:                       # ragged batch: zero-pad, slice output back
        ta = jnp.pad(ta, ((0, (b_pad - B) * T), (0, 0)))
        tb = jnp.pad(tb, ((0, (b_pad - B) * T), (0, 0)))
        xx = jnp.pad(xx, ((0, b_pad - B), (0, 0)))

    def full_block(a):
        # Whole-array block, constant index map -> stays VMEM-resident across tiles.
        return pl.BlockSpec(a.shape, lambda *_: (0,) * a.ndim)

    tag_spec = _tag_block_spec(bt, T, buffered=(num_tiles >= 3))
    in_specs = [
        tag_spec,                                         # tags_a tile (pipelined)
        tag_spec,                                         # tags_b tile (pipelined)
        pl.BlockSpec((bt, X_DIM), lambda i: (i, 0)),      # x tile
        full_block(pk["wpa"]), full_block(pk["wpb"]), full_block(pk["bpk"]),
        full_block(pk["wrec"]),
        full_block(pk["wlin_h"]), full_block(pk["wlin_x"]), full_block(pk["blin"]),
    ]
    out_spec = pl.BlockSpec((bt, OUT_DIM), lambda i: (i, 0))

    kernel = functools.partial(tags_kernel, seq_len=T)
    out = pl.pallas_call(
        kernel,
        out_shape=jax.ShapeDtypeStruct((b_pad, OUT_DIM), jnp.float32),
        grid=(num_tiles,),
        in_specs=in_specs,
        out_specs=out_spec,
        compiler_params=pltpu.CompilerParams(
            dimension_semantics=("parallel",),            # shard batch tiles across TCs
            vmem_limit_bytes=_vmem_limit_bytes(bt, T, jnp.dtype(input_dtype).itemsize),
        ),
    )(ta, tb, xx, pk["wpa"], pk["wpb"], pk["bpk"],
      pk["wrec"], pk["wlin_h"], pk["wlin_x"], pk["blin"])
    return out[:B] if b_pad != B else out


def init_params(key):
    """Deterministic init mimicking PyTorch defaults (U(-1/sqrt(fan), 1/sqrt(fan)))."""
    klstm = 1.0 / float(jnp.sqrt(HIDDEN))
    klin = 1.0 / float(jnp.sqrt(2 * HIDDEN + X_DIM))
    keys = jax.random.split(key, 10)

    def u(k, shape, bound):
        return jax.random.uniform(k, shape, jnp.float32, -bound, bound)

    return dict(
        wih_a=u(keys[0], (D, 4 * HIDDEN), klstm),
        whh_a=u(keys[1], (HIDDEN, 4 * HIDDEN), klstm),
        b_a=u(keys[2], (1, 4 * HIDDEN), klstm) + u(keys[3], (1, 4 * HIDDEN), klstm),
        wih_b=u(keys[4], (D, 4 * HIDDEN), klstm),
        whh_b=u(keys[5], (HIDDEN, 4 * HIDDEN), klstm),
        b_b=u(keys[6], (1, 4 * HIDDEN), klstm) + u(keys[7], (1, 4 * HIDDEN), klstm),
        wlin=u(keys[8], (2 * HIDDEN + X_DIM, OUT_DIM), klin),
        blin=u(keys[9], (1, OUT_DIM), klin),
    )


def reference_forward(params, tags_a, tags_b, x):
    """Pure-JAX f32 reference of the PyTorch forward, for correctness checking."""
    B, T = tags_a.shape[0], tags_a.shape[1]
    H = HIDDEN

    def run_lstm(tags, wih, whh, b):
        def step(carry, x_t):
            h, c = carry
            gates = x_t @ wih + h @ whh + b
            i_g = jax.nn.sigmoid(gates[:, 0:H])
            f_g = jax.nn.sigmoid(gates[:, H:2 * H])
            g_g = jnp.tanh(gates[:, 2 * H:3 * H])
            o_g = jax.nn.sigmoid(gates[:, 3 * H:4 * H])
            c = f_g * c + i_g * g_g
            h = o_g * jnp.tanh(c)
            return (h, c), None

        (h, _), _ = jax.lax.scan(step,
                                 (jnp.zeros((B, H), jnp.float32),
                                  jnp.zeros((B, H), jnp.float32)),
                                 tags.transpose(1, 0, 2))
        return h

    ta = tags_a.reshape(B, T, D).astype(jnp.float32)
    tb = tags_b.reshape(B, T, D).astype(jnp.float32)
    h_a = run_lstm(ta, params["wih_a"], params["whh_a"], params["b_a"])
    h_b = run_lstm(tb, params["wih_b"], params["whh_b"], params["b_b"])
    feat = jnp.concatenate([h_a, h_b, x.astype(jnp.float32)], axis=1)
    return feat @ params["wlin"] + params["blin"]


if __name__ == "__main__":
    key = jax.random.PRNGKey(0)
    kp, ka, kb, kx = jax.random.split(key, 4)

    B, T = 2, 8
    tags_a = jax.random.normal(ka, (B, T, TAG_WORDS, TAG_DIM), jnp.float32)
    tags_b = jax.random.normal(kb, (B, T, TAG_WORDS, TAG_DIM), jnp.float32)
    x = jax.random.normal(kx, (B, X_DIM), jnp.float32)

    params = init_params(kp)
    ref = jax.block_until_ready(reference_forward(params, tags_a, tags_b, x))

    # Exact-semantics path (f32 tag stream) -- must match the reference tightly.
    out_f32 = jax.block_until_ready(
        tags_model_forward(params, tags_a, tags_b, x, input_dtype=jnp.float32))
    assert out_f32.shape == (B, OUT_DIM)
    assert jnp.allclose(out_f32, ref, rtol=1e-4, atol=1e-4)

    # Bandwidth-optimized path (bf16 tag / W_ih stream, f32 accumulation) --
    # the recommended v5e/v6e configuration; looser tolerance per dtype change.
    out_bf16 = jax.block_until_ready(
        tags_model_forward(params, tags_a, tags_b, x, input_dtype=jnp.bfloat16))
    assert out_bf16.shape == (B, OUT_DIM)
    assert jnp.allclose(out_bf16, ref, rtol=5e-2, atol=5e-2)

    print("KERNEL_OK")
</pallas_src>

<mosaic_0001>
module attributes {stable_mosaic.version = 11 : i64} {
  func.func @tags_kernel(%arg0: i32, %arg1: memref<16x250xf32, #tpu.memory_space<vmem>>, %arg2: memref<16x250xf32, #tpu.memory_space<vmem>>, %arg3: memref<2x4xf32, #tpu.memory_space<vmem>>, %arg4: memref<250x160xf32, #tpu.memory_space<vmem>>, %arg5: memref<250x160xf32, #tpu.memory_space<vmem>>, %arg6: memref<1x160xf32, #tpu.memory_space<vmem>>, %arg7: memref<160x40xf32, #tpu.memory_space<vmem>>, %arg8: memref<40x3xf32, #tpu.memory_space<vmem>>, %arg9: memref<4x3xf32, #tpu.memory_space<vmem>>, %arg10: memref<1x3xf32, #tpu.memory_space<vmem>>, %arg11: memref<2x3xf32, #tpu.memory_space<vmem>>) attributes {dimension_semantics = [#tpu.dimension_semantics<parallel>], iteration_bounds = array<i64: 1>, scalar_prefetch = 0 : i64, scratch_operands = 0 : i64, tpu.core_type = #tpu.core_type<tc>, window_params = [{transform_indices = @transform_0, window_bounds = array<i64: 16, 250>}, {transform_indices = @transform_1, window_bounds = array<i64: 16, 250>}, {transform_indices = @transform_2, window_bounds = array<i64: 2, 4>}, {pipeline_mode = #tpu.pipeline_mode<synchronous>, transform_indices = @transform_3, window_bounds = array<i64: 250, 160>}, {pipeline_mode = #tpu.pipeline_mode<synchronous>, transform_indices = @transform_4, window_bounds = array<i64: 250, 160>}, {pipeline_mode = #tpu.pipeline_mode<synchronous>, transform_indices = @transform_5, window_bounds = array<i64: 1, 160>}, {pipeline_mode = #tpu.pipeline_mode<synchronous>, transform_indices = @transform_6, window_bounds = array<i64: 160, 40>}, {pipeline_mode = #tpu.pipeline_mode<synchronous>, transform_indices = @transform_7, window_bounds = array<i64: 40, 3>}, {pipeline_mode = #tpu.pipeline_mode<synchronous>, transform_indices = @transform_8, window_bounds = array<i64: 4, 3>}, {pipeline_mode = #tpu.pipeline_mode<synchronous>, transform_indices = @transform_9, window_bounds = array<i64: 1, 3>}, {transform_indices = @transform_10, window_bounds = array<i64: 2, 3>}]} {
    %c0 = arith.constant 0 : index
    %c0_0 = arith.constant 0 : index
    %0 = vector.load %arg1[%c0, %c0_0] : memref<16x250xf32, #tpu.memory_space<vmem>>, vector<16x250xf32>
    %c0_1 = arith.constant 0 : index
    %c0_2 = arith.constant 0 : index
    %1 = vector.load %arg4[%c0_1, %c0_2] : memref<250x160xf32, #tpu.memory_space<vmem>>, vector<250x160xf32>
    %cst = arith.constant dense<0.000000e+00> : vector<16x160xf32>
    %2 = tpu.matmul %0, %1, %cst {dimension_numbers = #tpu.dot_dimension_numbers<[1], [0], [0], [1], [0, 0, 1, 1], [], []>} : vector<16x250xf32>, vector<250x160xf32>, vector<16x160xf32> -> vector<16x160xf32>
    %c0_3 = arith.constant 0 : index
    %c0_4 = arith.constant 0 : index
    %3 = vector.load %arg2[%c0_3, %c0_4] : memref<16x250xf32, #tpu.memory_space<vmem>>, vector<16x250xf32>
    %c0_5 = arith.constant 0 : index
    %c0_6 = arith.constant 0 : index
    %4 = vector.load %arg5[%c0_5, %c0_6] : memref<250x160xf32, #tpu.memory_space<vmem>>, vector<250x160xf32>
    %cst_7 = arith.constant dense<0.000000e+00> : vector<16x160xf32>
    %5 = tpu.matmul %3, %4, %cst_7 {dimension_numbers = #tpu.dot_dimension_numbers<[1], [0], [0], [1], [0, 0, 1, 1], [], []>} : vector<16x250xf32>, vector<250x160xf32>, vector<16x160xf32> -> vector<16x160xf32>
    %6 = arith.addf %2, %5 : vector<16x160xf32>
    %c0_8 = arith.constant 0 : index
    %c0_9 = arith.constant 0 : index
    %7 = vector.load %arg6[%c0_8, %c0_9] : memref<1x160xf32, #tpu.memory_space<vmem>>, vector<1x160xf32>
    %8 = vector.broadcast %7 : vector<1x160xf32> to vector<16x160xf32>
    %9 = arith.addf %6, %8 : vector<16x160xf32>
    %10 = vector.shape_cast %9 : vector<16x160xf32> to vector<2x8x160xf32>
    %11 = vector.extract_strided_slice %10 {offsets = [0, 0, 0], sizes = [2, 1, 160], strides = [1, 1, 1]} : vector<2x8x160xf32> to vector<2x1x160xf32>
    %12 = vector.shape_cast %11 : vector<2x1x160xf32> to vector<2x160xf32>
    %13 = tpu.transpose %12, [1, 0] : vector<2x160xf32> -> vector<160x2xf32>
    %14 = vector.extract_strided_slice %10 {offsets = [0, 1, 0], sizes = [2, 1, 160], strides = [1, 1, 1]} : vector<2x8x160xf32> to vector<2x1x160xf32>
    %15 = vector.shape_cast %14 : vector<2x1x160xf32> to vector<2x160xf32>
    %16 = tpu.transpose %15, [1, 0] : vector<2x160xf32> -> vector<160x2xf32>
    %17 = vector.extract_strided_slice %10 {offsets = [0, 2, 0], sizes = [2, 1, 160], strides = [1, 1, 1]} : vector<2x8x160xf32> to vector<2x1x160xf32>
    %18 = vector.shape_cast %17 : vector<2x1x160xf32> to vector<2x160xf32>
    %19 = tpu.transpose %18, [1, 0] : vector<2x160xf32> -> vector<160x2xf32>
    %20 = vector.extract_strided_slice %10 {offsets = [0, 3, 0], sizes = [2, 1, 160], strides = [1, 1, 1]} : vector<2x8x160xf32> to vector<2x1x160xf32>
    %21 = vector.shape_cast %20 : vector<2x1x160xf32> to vector<2x160xf32>
    %22 = tpu.transpose %21, [1, 0] : vector<2x160xf32> -> vector<160x2xf32>
    %23 = vector.extract_strided_slice %10 {offsets = [0, 4, 0], sizes = [2, 1, 160], strides = [1, 1, 1]} : vector<2x8x160xf32> to vector<2x1x160xf32>
    %24 = vector.shape_cast %23 : vector<2x1x160xf32> to vector<2x160xf32>
    %25 = tpu.transpose %24, [1, 0] : vector<2x160xf32> -> vector<160x2xf32>
    %26 = vector.extract_strided_slice %10 {offsets = [0, 5, 0], sizes = [2, 1, 160], strides = [1, 1, 1]} : vector<2x8x160xf32> to vector<2x1x160xf32>
    %27 = vector.shape_cast %26 : vector<2x1x160xf32> to vector<2x160xf32>
    %28 = tpu.transpose %27, [1, 0] : vector<2x160xf32> -> vector<160x2xf32>
    %29 = vector.extract_strided_slice %10 {offsets = [0, 6, 0], sizes = [2, 1, 160], strides = [1, 1, 1]} : vector<2x8x160xf32> to vector<2x1x160xf32>
    %30 = vector.shape_cast %29 : vector<2x1x160xf32> to vector<2x160xf32>
    %31 = tpu.transpose %30, [1, 0] : vector<2x160xf32> -> vector<160x2xf32>
    %32 = vector.extract_strided_slice %10 {offsets = [0, 7, 0], sizes = [2, 1, 160], strides = [1, 1, 1]} : vector<2x8x160xf32> to vector<2x1x160xf32>
    %33 = vector.shape_cast %32 : vector<2x1x160xf32> to vector<2x160xf32>
    %34 = tpu.transpose %33, [1, 0] : vector<2x160xf32> -> vector<160x2xf32>
    %c0_10 = arith.constant 0 : index
    %c0_11 = arith.constant 0 : index
    %35 = vector.load %arg7[%c0_10, %c0_11] : memref<160x40xf32, #tpu.memory_space<vmem>>, vector<160x40xf32>
    %cst_12 = arith.constant 0.000000e+00 : f32
    %36 = vector.broadcast %cst_12 : f32 to vector<40x2xf32>
    %cst_13 = arith.constant 0.000000e+00 : f32
    %37 = vector.broadcast %cst_13 : f32 to vector<40x2xf32>
    %cst_14 = arith.constant dense<0.000000e+00> : vector<160x2xf32>
    %38 = tpu.matmul %35, %36, %cst_14 {dimension_numbers = #tpu.dot_dimension_numbers<[1], [0], [0], [1], [0, 0, 1, 1], [], []>} : vector<160x40xf32>, vector<40x2xf32>, vector<160x2xf32> -> vector<160x2xf32>
    %39 = arith.addf %13, %38 : vector<160x2xf32>
    %40 = vector.extract_strided_slice %39 {offsets = [0, 0], sizes = [40, 2], strides = [1, 1]} : vector<160x2xf32> to vector<40x2xf32>
    %41 = arith.negf %40 : vector<40x2xf32>
    %42 = math.exp %41 : vector<40x2xf32>
    %cst_15 = arith.constant 1.000000e+00 : f32
    %43 = vector.broadcast %cst_15 : f32 to vector<40x2xf32>
    %44 = arith.addf %43, %42 : vector<40x2xf32>
    %45 = arith.divf %43, %44 : vector<40x2xf32>
    %46 = vector.extract_strided_slice %39 {offsets = [40, 0], sizes = [40, 2], strides = [1, 1]} : vector<160x2xf32> to vector<40x2xf32>
    %47 = arith.negf %46 : vector<40x2xf32>
    %48 = math.exp %47 : vector<40x2xf32>
    %cst_16 = arith.constant 1.000000e+00 : f32
    %49 = vector.broadcast %cst_16 : f32 to vector<40x2xf32>
    %50 = arith.addf %49, %48 : vector<40x2xf32>
    %51 = arith.divf %49, %50 : vector<40x2xf32>
    %52 = vector.extract_strided_slice %39 {offsets = [80, 0], sizes = [40, 2], strides = [1, 1]} : vector<160x2xf32> to vector<40x2xf32>
    %53 = math.tanh %52 : vector<40x2xf32>
    %54 = vector.extract_strided_slice %39 {offsets = [120, 0], sizes = [40, 2], strides = [1, 1]} : vector<160x2xf32> to vector<40x2xf32>
    %55 = arith.negf %54 : vector<40x2xf32>
    %56 = math.exp %55 : vector<40x2xf32>
    %cst_17 = arith.constant 1.000000e+00 : f32
    %57 = vector.broadcast %cst_17 : f32 to vector<40x2xf32>
    %58 = arith.addf %57, %56 : vector<40x2xf32>
    %59 = arith.divf %57, %58 : vector<40x2xf32>
    %60 = arith.mulf %51, %37 : vector<40x2xf32>
    %61 = arith.mulf %45, %53 : vector<40x2xf32>
    %62 = arith.addf %60, %61 : vector<40x2xf32>
    %63 = math.tanh %62 : vector<40x2xf32>
    %64 = arith.mulf %59, %63 : vector<40x2xf32>
    %cst_18 = arith.constant dense<0.000000e+00> : vector<160x2xf32>
    %65 = tpu.matmul %35, %64, %cst_18 {dimension_numbers = #tpu.dot_dimension_numbers<[1], [0], [0], [1], [0, 0, 1, 1], [], []>} : vector<160x40xf32>, vector<40x2xf32>, vector<160x2xf32> -> vector<160x2xf32>
    %66 = arith.addf %16, %65 : vector<160x2xf32>
    %67 = vector.extract_strided_slice %66 {offsets = [0, 0], sizes = [40, 2], strides = [1, 1]} : vector<160x2xf32> to vector<40x2xf32>
    %68 = arith.negf %67 : vector<40x2xf32>
    %69 = math.exp %68 : vector<40x2xf32>
    %cst_19 = arith.constant 1.000000e+00 : f32
    %70 = vector.broadcast %cst_19 : f32 to vector<40x2xf32>
    %71 = arith.addf %70, %69 : vector<40x2xf32>
    %72 = arith.divf %70, %71 : vector<40x2xf32>
    %73 = vector.extract_strided_slice %66 {offsets = [40, 0], sizes = [40, 2], strides = [1, 1]} : vector<160x2xf32> to vector<40x2xf32>
    %74 = arith.negf %73 : vector<40x2xf32>
    %75 = math.exp %74 : vector<40x2xf32>
    %cst_20 = arith.constant 1.000000e+00 : f32
    %76 = vector.broadcast %cst_20 : f32 to vector<40x2xf32>
    %77 = arith.addf %76, %75 : vector<40x2xf32>
    %78 = arith.divf %76, %77 : vector<40x2xf32>
    %79 = vector.extract_strided_slice %66 {offsets = [80, 0], sizes = [40, 2], strides = [1, 1]} : vector<160x2xf32> to vector<40x2xf32>
    %80 = math.tanh %79 : vector<40x2xf32>
    %81 = vector.extract_strided_slice %66 {offsets = [120, 0], sizes = [40, 2], strides = [1, 1]} : vector<160x2xf32> to vector<40x2xf32>
    %82 = arith.negf %81 : vector<40x2xf32>
    %83 = math.exp %82 : vector<40x2xf32>
    %cst_21 = arith.constant 1.000000e+00 : f32
    %84 = vector.broadcast %cst_21 : f32 to vector<40x2xf32>
    %85 = arith.addf %84, %83 : vector<40x2xf32>
    %86 = arith.divf %84, %85 : vector<40x2xf32>
    %87 = arith.mulf %78, %62 : vector<40x2xf32>
    %88 = arith.mulf %72, %80 : vector<40x2xf32>
    %89 = arith.addf %87, %88 : vector<40x2xf32>
    %90 = math.tanh %89 : vector<40x2xf32>
    %91 = arith.mulf %86, %90 : vector<40x2xf32>
    %cst_22 = arith.constant dense<0.000000e+00> : vector<160x2xf32>
    %92 = tpu.matmul %35, %91, %cst_22 {dimension_numbers = #tpu.dot_dimension_numbers<[1], [0], [0], [1], [0, 0, 1, 1], [], []>} : vector<160x40xf32>, vector<40x2xf32>, vector<160x2xf32> -> vector<160x2xf32>
    %93 = arith.addf %19, %92 : vector<160x2xf32>
    %94 = vector.extract_strided_slice %93 {offsets = [0, 0], sizes = [40, 2], strides = [1, 1]} : vector<160x2xf32> to vector<40x2xf32>
    %95 = arith.negf %94 : vector<40x2xf32>
    %96 = math.exp %95 : vector<40x2xf32>
    %cst_23 = arith.constant 1.000000e+00 : f32
    %97 = vector.broadcast %cst_23 : f32 to vector<40x2xf32>
    %98 = arith.addf %97, %96 : vector<40x2xf32>
    %99 = arith.divf %97, %98 : vector<40x2xf32>
    %100 = vector.extract_strided_slice %93 {offsets = [40, 0], sizes = [40, 2], strides = [1, 1]} : vector<160x2xf32> to vector<40x2xf32>
    %101 = arith.negf %100 : vector<40x2xf32>
    %102 = math.exp %101 : vector<40x2xf32>
    %cst_24 = arith.constant 1.000000e+00 : f32
    %103 = vector.broadcast %cst_24 : f32 to vector<40x2xf32>
    %104 = arith.addf %103, %102 : vector<40x2xf32>
    %105 = arith.divf %103, %104 : vector<40x2xf32>
    %106 = vector.extract_strided_slice %93 {offsets = [80, 0], sizes = [40, 2], strides = [1, 1]} : vector<160x2xf32> to vector<40x2xf32>
    %107 = math.tanh %106 : vector<40x2xf32>
    %108 = vector.extract_strided_slice %93 {offsets = [120, 0], sizes = [40, 2], strides = [1, 1]} : vector<160x2xf32> to vector<40x2xf32>
    %109 = arith.negf %108 : vector<40x2xf32>
    %110 = math.exp %109 : vector<40x2xf32>
    %cst_25 = arith.constant 1.000000e+00 : f32
    %111 = vector.broadcast %cst_25 : f32 to vector<40x2xf32>
    %112 = arith.addf %111, %110 : vector<40x2xf32>
    %113 = arith.divf %111, %112 : vector<40x2xf32>
    %114 = arith.mulf %105, %89 : vector<40x2xf32>
    %115 = arith.mulf %99, %107 : vector<40x2xf32>
    %116 = arith.addf %114, %115 : vector<40x2xf32>
    %117 = math.tanh %116 : vector<40x2xf32>
    %118 = arith.mulf %113, %117 : vector<40x2xf32>
    %cst_26 = arith.constant dense<0.000000e+00> : vector<160x2xf32>
    %119 = tpu.matmul %35, %118, %cst_26 {dimension_numbers = #tpu.dot_dimension_numbers<[1], [0], [0], [1], [0, 0, 1, 1], [], []>} : vector<160x40xf32>, vector<40x2xf32>, vector<160x2xf32> -> vector<160x2xf32>
    %120 = arith.addf %22, %119 : vector<160x2xf32>
    %121 = vector.extract_strided_slice %120 {offsets = [0, 0], sizes = [40, 2], strides = [1, 1]} : vector<160x2xf32> to vector<40x2xf32>
    %122 = arith.negf %121 : vector<40x2xf32>
    %123 = math.exp %122 : vector<40x2xf32>
    %cst_27 = arith.constant 1.000000e+00 : f32
    %124 = vector.broadcast %cst_27 : f32 to vector<40x2xf32>
    %125 = arith.addf %124, %123 : vector<40x2xf32>
    %126 = arith.divf %124, %125 : vector<40x2xf32>
    %127 = vector.extract_strided_slice %120 {offsets = [40, 0], sizes = [40, 2], strides = [1, 1]} : vector<160x2xf32> to vector<40x2xf32>
    %128 = arith.negf %127 : vector<40x2xf32>
    %129 = math.exp %128 : vector<40x2xf32>
    %cst_28 = arith.constant 1.000000e+00 : f32
    %130 = vector.broadcast %cst_28 : f32 to vector<40x2xf32>
    %131 = arith.addf %130, %129 : vector<40x2xf32>
    %132 = arith.divf %130, %131 : vector<40x2xf32>
    %133 = vector.extract_strided_slice %120 {offsets = [80, 0], sizes = [40, 2], strides = [1, 1]} : vector<160x2xf32> to vector<40x2xf32>
    %134 = math.tanh %133 : vector<40x2xf32>
    %135 = vector.extract_strided_slice %120 {offsets = [120, 0], sizes = [40, 2], strides = [1, 1]} : vector<160x2xf32> to vector<40x2xf32>
    %136 = arith.negf %135 : vector<40x2xf32>
    %137 = math.exp %136 : vector<40x2xf32>
    %cst_29 = arith.constant 1.000000e+00 : f32
    %138 = vector.broadcast %cst_29 : f32 to vector<40x2xf32>
    %139 = arith.addf %138, %137 : vector<40x2xf32>
    %140 = arith.divf %138, %139 : vector<40x2xf32>
    %141 = arith.mulf %132, %116 : vector<40x2xf32>
    %142 = arith.mulf %126, %134 : vector<40x2xf32>
    %143 = arith.addf %141, %142 : vector<40x2xf32>
    %144 = math.tanh %143 : vector<40x2xf32>
    %145 = arith.mulf %140, %144 : vector<40x2xf32>
    %cst_30 = arith.constant dense<0.000000e+00> : vector<160x2xf32>
    %146 = tpu.matmul %35, %145, %cst_30 {dimension_numbers = #tpu.dot_dimension_numbers<[1], [0], [0], [1], [0, 0, 1, 1], [], []>} : vector<160x40xf32>, vector<40x2xf32>, vector<160x2xf32> -> vector<160x2xf32>
    %147 = arith.addf %25, %146 : vector<160x2xf32>
    %148 = vector.extract_strided_slice %147 {offsets = [0, 0], sizes = [40, 2], strides = [1, 1]} : vector<160x2xf32> to vector<40x2xf32>
    %149 = arith.negf %148 : vector<40x2xf32>
    %150 = math.exp %149 : vector<40x2xf32>
    %cst_31 = arith.constant 1.000000e+00 : f32
    %151 = vector.broadcast %cst_31 : f32 to vector<40x2xf32>
    %152 = arith.addf %151, %150 : vector<40x2xf32>
    %153 = arith.divf %151, %152 : vector<40x2xf32>
    %154 = vector.extract_strided_slice %147 {offsets = [40, 0], sizes = [40, 2], strides = [1, 1]} : vector<160x2xf32> to vector<40x2xf32>
    %155 = arith.negf %154 : vector<40x2xf32>
    %156 = math.exp %155 : vector<40x2xf32>
    %cst_32 = arith.constant 1.000000e+00 : f32
    %157 = vector.broadcast %cst_32 : f32 to vector<40x2xf32>
    %158 = arith.addf %157, %156 : vector<40x2xf32>
    %159 = arith.divf %157, %158 : vector<40x2xf32>
    %160 = vector.extract_strided_slice %147 {offsets = [80, 0], sizes = [40, 2], strides = [1, 1]} : vector<160x2xf32> to vector<40x2xf32>
    %161 = math.tanh %160 : vector<40x2xf32>
    %162 = vector.extract_strided_slice %147 {offsets = [120, 0], sizes = [40, 2], strides = [1, 1]} : vector<160x2xf32> to vector<40x2xf32>
    %163 = arith.negf %162 : vector<40x2xf32>
    %164 = math.exp %163 : vector<40x2xf32>
    %cst_33 = arith.constant 1.000000e+00 : f32
    %165 = vector.broadcast %cst_33 : f32 to vector<40x2xf32>
    %166 = arith.addf %165, %164 : vector<40x2xf32>
    %167 = arith.divf %165, %166 : vector<40x2xf32>
    %168 = arith.mulf %159, %143 : vector<40x2xf32>
    %169 = arith.mulf %153, %161 : vector<40x2xf32>
    %170 = arith.addf %168, %169 : vector<40x2xf32>
    %171 = math.tanh %170 : vector<40x2xf32>
    %172 = arith.mulf %167, %171 : vector<40x2xf32>
    %cst_34 = arith.constant dense<0.000000e+00> : vector<160x2xf32>
    %173 = tpu.matmul %35, %172, %cst_34 {dimension_numbers = #tpu.dot_dimension_numbers<[1], [0], [0], [1], [0, 0, 1, 1], [], []>} : vector<160x40xf32>, vector<40x2xf32>, vector<160x2xf32> -> vector<160x2xf32>
    %174 = arith.addf %28, %173 : vector<160x2xf32>
    %175 = vector.extract_strided_slice %174 {offsets = [0, 0], sizes = [40, 2], strides = [1, 1]} : vector<160x2xf32> to vector<40x2xf32>
    %176 = arith.negf %175 : vector<40x2xf32>
    %177 = math.exp %176 : vector<40x2xf32>
    %cst_35 = arith.constant 1.000000e+00 : f32
    %178 = vector.broadcast %cst_35 : f32 to vector<40x2xf32>
    %179 = arith.addf %178, %177 : vector<40x2xf32>
    %180 = arith.divf %178, %179 : vector<40x2xf32>
    %181 = vector.extract_strided_slice %174 {offsets = [40, 0], sizes = [40, 2], strides = [1, 1]} : vector<160x2xf32> to vector<40x2xf32>
    %182 = arith.negf %181 : vector<40x2xf32>
    %183 = math.exp %182 : vector<40x2xf32>
    %cst_36 = arith.constant 1.000000e+00 : f32
    %184 = vector.broadcast %cst_36 : f32 to vector<40x2xf32>
    %185 = arith.addf %184, %183 : vector<40x2xf32>
    %186 = arith.divf %184, %185 : vector<40x2xf32>
    %187 = vector.extract_strided_slice %174 {offsets = [80, 0], sizes = [40, 2], strides = [1, 1]} : vector<160x2xf32> to vector<40x2xf32>
    %188 = math.tanh %187 : vector<40x2xf32>
    %189 = vector.extract_strided_slice %174 {offsets = [120, 0], sizes = [40, 2], strides = [1, 1]} : vector<160x2xf32> to vector<40x2xf32>
    %190 = arith.negf %189 : vector<40x2xf32>
    %191 = math.exp %190 : vector<40x2xf32>
    %cst_37 = arith.constant 1.000000e+00 : f32
    %192 = vector.broadcast %cst_37 : f32 to vector<40x2xf32>
    %193 = arith.addf %192, %191 : vector<40x2xf32>
    %194 = arith.divf %192, %193 : vector<40x2xf32>
    %195 = arith.mulf %186, %170 : vector<40x2xf32>
    %196 = arith.mulf %180, %188 : vector<40x2xf32>
    %197 = arith.addf %195, %196 : vector<40x2xf32>
    %198 = math.tanh %197 : vector<40x2xf32>
    %199 = arith.mulf %194, %198 : vector<40x2xf32>
    %cst_38 = arith.constant dense<0.000000e+00> : vector<160x2xf32>
    %200 = tpu.matmul %35, %199, %cst_38 {dimension_numbers = #tpu.dot_dimension_numbers<[1], [0], [0], [1], [0, 0, 1, 1], [], []>} : vector<160x40xf32>, vector<40x2xf32>, vector<160x2xf32> -> vector<160x2xf32>
    %201 = arith.addf %31, %200 : vector<160x2xf32>
    %202 = vector.extract_strided_slice %201 {offsets = [0, 0], sizes = [40, 2], strides = [1, 1]} : vector<160x2xf32> to vector<40x2xf32>
    %203 = arith.negf %202 : vector<40x2xf32>
    %204 = math.exp %203 : vector<40x2xf32>
    %cst_39 = arith.constant 1.000000e+00 : f32
    %205 = vector.broadcast %cst_39 : f32 to vector<40x2xf32>
    %206 = arith.addf %205, %204 : vector<40x2xf32>
    %207 = arith.divf %205, %206 : vector<40x2xf32>
    %208 = vector.extract_strided_slice %201 {offsets = [40, 0], sizes = [40, 2], strides = [1, 1]} : vector<160x2xf32> to vector<40x2xf32>
    %209 = arith.negf %208 : vector<40x2xf32>
    %210 = math.exp %209 : vector<40x2xf32>
    %cst_40 = arith.constant 1.000000e+00 : f32
    %211 = vector.broadcast %cst_40 : f32 to vector<40x2xf32>
    %212 = arith.addf %211, %210 : vector<40x2xf32>
    %213 = arith.divf %211, %212 : vector<40x2xf32>
    %214 = vector.extract_strided_slice %201 {offsets = [80, 0], sizes = [40, 2], strides = [1, 1]} : vector<160x2xf32> to vector<40x2xf32>
    %215 = math.tanh %214 : vector<40x2xf32>
    %216 = vector.extract_strided_slice %201 {offsets = [120, 0], sizes = [40, 2], strides = [1, 1]} : vector<160x2xf32> to vector<40x2xf32>
    %217 = arith.negf %216 : vector<40x2xf32>
    %218 = math.exp %217 : vector<40x2xf32>
    %cst_41 = arith.constant 1.000000e+00 : f32
    %219 = vector.broadcast %cst_41 : f32 to vector<40x2xf32>
    %220 = arith.addf %219, %218 : vector<40x2xf32>
    %221 = arith.divf %219, %220 : vector<40x2xf32>
    %222 = arith.mulf %213, %197 : vector<40x2xf32>
    %223 = arith.mulf %207, %215 : vector<40x2xf32>
    %224 = arith.addf %222, %223 : vector<40x2xf32>
    %225 = math.tanh %224 : vector<40x2xf32>
    %226 = arith.mulf %221, %225 : vector<40x2xf32>
    %cst_42 = arith.constant dense<0.000000e+00> : vector<160x2xf32>
    %227 = tpu.matmul %35, %226, %cst_42 {dimension_numbers = #tpu.dot_dimension_numbers<[1], [0], [0], [1], [0, 0, 1, 1], [], []>} : vector<160x40xf32>, vector<40x2xf32>, vector<160x2xf32> -> vector<160x2xf32>
    %228 = arith.addf %34, %227 : vector<160x2xf32>
    %229 = vector.extract_strided_slice %228 {offsets = [0, 0], sizes = [40, 2], strides = [1, 1]} : vector<160x2xf32> to vector<40x2xf32>
    %230 = arith.negf %229 : vector<40x2xf32>
    %231 = math.exp %230 : vector<40x2xf32>
    %cst_43 = arith.constant 1.000000e+00 : f32
    %232 = vector.broadcast %cst_43 : f32 to vector<40x2xf32>
    %233 = arith.addf %232, %231 : vector<40x2xf32>
    %234 = arith.divf %232, %233 : vector<40x2xf32>
    %235 = vector.extract_strided_slice %228 {offsets = [40, 0], sizes = [40, 2], strides = [1, 1]} : vector<160x2xf32> to vector<40x2xf32>
    %236 = arith.negf %235 : vector<40x2xf32>
    %237 = math.exp %236 : vector<40x2xf32>
    %cst_44 = arith.constant 1.000000e+00 : f32
    %238 = vector.broadcast %cst_44 : f32 to vector<40x2xf32>
    %239 = arith.addf %238, %237 : vector<40x2xf32>
    %240 = arith.divf %238, %239 : vector<40x2xf32>
    %241 = vector.extract_strided_slice %228 {offsets = [80, 0], sizes = [40, 2], strides = [1, 1]} : vector<160x2xf32> to vector<40x2xf32>
    %242 = math.tanh %241 : vector<40x2xf32>
    %243 = vector.extract_strided_slice %228 {offsets = [120, 0], sizes = [40, 2], strides = [1, 1]} : vector<160x2xf32> to vector<40x2xf32>
    %244 = arith.negf %243 : vector<40x2xf32>
    %245 = math.exp %244 : vector<40x2xf32>
    %cst_45 = arith.constant 1.000000e+00 : f32
    %246 = vector.broadcast %cst_45 : f32 to vector<40x2xf32>
    %247 = arith.addf %246, %245 : vector<40x2xf32>
    %248 = arith.divf %246, %247 : vector<40x2xf32>
    %249 = arith.mulf %240, %224 : vector<40x2xf32>
    %250 = arith.mulf %234, %242 : vector<40x2xf32>
    %251 = arith.addf %249, %250 : vector<40x2xf32>
    %252 = math.tanh %251 : vector<40x2xf32>
    %253 = arith.mulf %248, %252 : vector<40x2xf32>
    %254 = tpu.transpose %253, [1, 0] : vector<40x2xf32> -> vector<2x40xf32>
    %c0_46 = arith.constant 0 : index
    %c0_47 = arith.constant 0 : index
    %255 = vector.load %arg8[%c0_46, %c0_47] : memref<40x3xf32, #tpu.memory_space<vmem>>, vector<40x3xf32>
    %cst_48 = arith.constant dense<0.000000e+00> : vector<2x3xf32>
    %256 = tpu.matmul %254, %255, %cst_48 {dimension_numbers = #tpu.dot_dimension_numbers<[1], [0], [0], [1], [0, 0, 1, 1], [], []>} : vector<2x40xf32>, vector<40x3xf32>, vector<2x3xf32> -> vector<2x3xf32>
    %c0_49 = arith.constant 0 : index
    %c0_50 = arith.constant 0 : index
    %257 = vector.load %arg3[%c0_49, %c0_50] : memref<2x4xf32, #tpu.memory_space<vmem>>, vector<2x4xf32>
    %c0_51 = arith.constant 0 : index
    %c0_52 = arith.constant 0 : index
    %258 = vector.load %arg9[%c0_51, %c0_52] : memref<4x3xf32, #tpu.memory_space<vmem>>, vector<4x3xf32>
    %cst_53 = arith.constant dense<0.000000e+00> : vector<2x3xf32>
    %259 = tpu.matmul %257, %258, %cst_53 {dimension_numbers = #tpu.dot_dimension_numbers<[1], [0], [0], [1], [0, 0, 1, 1], [], []>} : vector<2x4xf32>, vector<4x3xf32>, vector<2x3xf32> -> vector<2x3xf32>
    %260 = arith.addf %256, %259 : vector<2x3xf32>
    %c0_54 = arith.constant 0 : index
    %c0_55 = arith.constant 0 : index
    %261 = vector.load %arg10[%c0_54, %c0_55] : memref<1x3xf32, #tpu.memory_space<vmem>>, vector<1x3xf32>
    %262 = vector.broadcast %261 : vector<1x3xf32> to vector<2x3xf32>
    %263 = arith.addf %260, %262 : vector<2x3xf32>
    %c0_56 = arith.constant 0 : index
    %c0_57 = arith.constant 0 : index
    %264 = vector.load %arg11[%c0_56, %c0_57] : memref<2x3xf32, #tpu.memory_space<vmem>>, vector<2x3xf32>
    tpu.vector_store %arg11[%c0_56, %c0_57], %263 {strides = array<i32>} : memref<2x3xf32, #tpu.memory_space<vmem>>, vector<2x3xf32>,
    return
  }
  func.func @transform_0(%arg0: i32) -> (i32, i32) {
    %c0_i32 = arith.constant 0 : i32
    %c0_i32_0 = arith.constant 0 : i32
    return %arg0, %c0_i32 : i32, i32
  }
  func.func @transform_1(%arg0: i32) -> (i32, i32) {
    %c0_i32 = arith.constant 0 : i32
    %c0_i32_0 = arith.constant 0 : i32
    return %arg0, %c0_i32 : i32, i32
  }
  func.func @transform_2(%arg0: i32) -> (i32, i32) {
    %c0_i32 = arith.constant 0 : i32
    %c0_i32_0 = arith.constant 0 : i32
    return %arg0, %c0_i32 : i32, i32
  }
  func.func @transform_3(%arg0: i32) -> (i32, i32) {
    %c0_i32 = arith.constant 0 : i32
    %c0_i32_0 = arith.constant 0 : i32
    %c0_i32_1 = arith.constant 0 : i32
    return %c0_i32, %c0_i32_0 : i32, i32
  }
  func.func @transform_4(%arg0: i32) -> (i32, i32) {
    %c0_i32 = arith.constant 0 : i32
    %c0_i32_0 = arith.constant 0 : i32
    %c0_i32_1 = arith.constant 0 : i32
    return %c0_i32, %c0_i32_0 : i32, i32
  }
  func.func @transform_5(%arg0: i32) -> (i32, i32) {
    %c0_i32 = arith.constant 0 : i32
    %c0_i32_0 = arith.constant 0 : i32
    %c0_i32_1 = arith.constant 0 : i32
    return %c0_i32, %c0_i32_0 : i32, i32
  }
  func.func @transform_6(%arg0: i32) -> (i32, i32) {
    %c0_i32 = arith.constant 0 : i32
    %c0_i32_0 = arith.constant 0 : i32
    %c0_i32_1 = arith.constant 0 : i32
    return %c0_i32, %c0_i32_0 : i32, i32
  }
  func.func @transform_7(%arg0: i32) -> (i32, i32) {
    %c0_i32 = arith.constant 0 : i32
    %c0_i32_0 = arith.constant 0 : i32
    %c0_i32_1 = arith.constant 0 : i32
    return %c0_i32, %c0_i32_0 : i32, i32
  }
  func.func @transform_8(%arg0: i32) -> (i32, i32) {
    %c0_i32 = arith.constant 0 : i32
    %c0_i32_0 = arith.constant 0 : i32
    %c0_i32_1 = arith.constant 0 : i32
    return %c0_i32, %c0_i32_0 : i32, i32
  }
  func.func @transform_9(%arg0: i32) -> (i32, i32) {
    %c0_i32 = arith.constant 0 : i32
    %c0_i32_0 = arith.constant 0 : i32
    %c0_i32_1 = arith.constant 0 : i32
    return %c0_i32, %c0_i32_0 : i32, i32
  }
  func.func @transform_10(%arg0: i32) -> (i32, i32) {
    %c0_i32 = arith.constant 0 : i32
    %c0_i32_0 = arith.constant 0 : i32
    return %arg0, %c0_i32 : i32, i32
  }
}

</mosaic_0001>

<bundles_post_ra>
// kernel: tpu_custom_call.1
= control target key start
LH: loop header
LB: loop body
LE: loop exit
PB: predicated region body
PF: predicated region fallthrough
CT: control target
= control target key end

     0   :  { %v6961_v20 = vmov 0.0   ;;  %vm172_vm0 = vcmask 998400   ;;  %vm965_vm1 = vcmask 326656   ;;  %s6950_s0 = inlined_call_operand.vmem [shape: f32[16,250], index: 0, kind: input, shape index: {}]   ;;  %s6951_s1 = inlined_call_operand.vmem [shape: f32[16,250], index: 1, kind: input, shape index: {}]   ;;  %s6952_s2 = inlined_call_operand.vmem [shape: f32[2,4], index: 2, kind: input, shape index: {}]   ;;  %s6953_s3 = inlined_call_operand.vmem [shape: f32[250,160], index: 3, kind: input, shape index: {}]   ;;  %s6954_s4 = inlined_call_operand.vmem [shape: f32[250,160], index: 4, kind: input, shape index: {}]   ;;  %s6955_s5 = inlined_call_operand.vmem [shape: f32[1,160], index: 5, kind: input, shape index: {}]   ;;  %s6956_s6 = inlined_call_operand.vmem [shape: f32[160,40], index: 6, kind: input, shape index: {}]   ;;  %s6957_s7 = inlined_call_operand.vmem [shape: f32[40,3], index: 7, kind: input, shape index: {}]   ;;  %s6958_s8 = inlined_call_operand.vmem [shape: f32[4,3], index: 8, kind: input, shape index: {}]   ;;  %s6959_s9 = inlined_call_operand.vmem [shape: f32[1,3], index: 9, kind: input, shape index: {}]   ;;  %s6960_s10 = inlined_call_operand.hbm [shape: f32[2,3], index: 10, kind: output, shape index: {}]  }
   0x1   :  { %v109_v0 = vld [vmem:[%s6954_s4 + $0x8] sm:$0xff]  ;;  %v111_v1 = vld [vmem:[%s6954_s4 + $0x18] sm:$0xff]  ;;  %v108_v2 = vld [vmem:[%s6954_s4] sm:$0xff]  ;;  %4176 = vmatprep.subr.mxu1 %v6961_v20 }
   0x2   :  { %v4506_v3 = vpack.c.bf16 %v111_v1, %v109_v0  ;;  %v110_v4 = vld [vmem:[%s6954_s4 + $0x10] sm:$0xff]  ;;  %v113_v5 = vld [vmem:[%s6954_s4 + $0x28] sm:$0xff]  ;;  %v115_v6 = vld [vmem:[%s6954_s4 + $0x38] sm:$0xff]  ;;  %4177 = vmatpush3.msra.mxu1 %v6961_v20 }
   0x3   :  { %v4508_v7 = vpack.c.bf16 %v110_v4, %v108_v2  ;;  %v4510_v8 = vpack.c.bf16 %v115_v6, %v113_v5  ;;  %v112_v9 = vld [vmem:[%s6954_s4 + $0x20] sm:$0xff]  ;;  %v114_v10 = vld [vmem:[%s6954_s4 + $0x30] sm:$0xff]  ;;  %v117_v11 = vld [vmem:[%s6954_s4 + $0x48] sm:$0xff] }
   0x4   :  { %4507 = vmatprep.subr.bf16.mxu0 %v4506_v3  ;;  %v119_v12 = vld [vmem:[%s6954_s4 + $0x58] sm:$0xff]  ;;  %v4512_v13 = vpack.c.bf16 %v114_v10, %v112_v9  ;;  %v116_v15 = vld [vmem:[%s6954_s4 + $0x40] sm:$0xff]  ;;  %v118_v16 = vld [vmem:[%s6954_s4 + $0x50] sm:$0xff] }
   0x5   :  { %4509 = vmatpush1.bf16.msra.mxu0 %v4508_v7  ;;  %v4514_v14 = vpack.c.bf16 %v119_v12, %v117_v11  ;;  %v121_v17 = vld [vmem:[%s6954_s4 + $0x68] sm:$0xff]  ;;  %v123_v18 = vld [vmem:[%s6954_s4 + $0x78] sm:$0xff]  ;;  %v4516_v19 = vpack.c.bf16 %v118_v16, %v116_v15  ;;  %v120_v22 = vld [vmem:[%s6954_s4 + $0x60] sm:$0xff] }
   0x6   :  { %4511 = vmatprep.subr.bf16.mxu0 %v4510_v8  ;;  %v4518_v21 = vpack.c.bf16 %v123_v18, %v121_v17  ;;  %v122_v23 = vld [vmem:[%s6954_s4 + $0x70] sm:$0xff]  ;;  %v125_v24 = vld [vmem:[%s6954_s4 + $0x88] sm:$0xff]  ;;  %v127_v25 = vld [vmem:[%s6954_s4 + $0x98] sm:$0xff] }
   0x7   :  { %v4520_v26 = vpack.c.bf16 %v122_v23, %v120_v22  ;;  %v4522_v27 = vpack.c.bf16 %v127_v25, %v125_v24  ;;  %v124_v28 = vld [vmem:[%s6954_s4 + $0x80] sm:$0xff]  ;;  %v126_v29 = vld [vmem:[%s6954_s4 + $0x90] sm:$0xff]  ;;  %v129_v30 = vld [vmem:[%s6954_s4 + $0xa8] sm:$0xff] }
   0x8   :  { %v131_v31 = vld [vmem:[%s6954_s4 + $0xb8] sm:$0xff]  ;;  %v4524_v32 = vpack.c.bf16 %v126_v29, %v124_v28  ;;  %v128_v34 = vld [vmem:[%s6954_s4 + $0xa0] sm:$0xff]  ;;  %v130_v35 = vld [vmem:[%s6954_s4 + $0xb0] sm:$0xff] }
   0x9   :  { %4513 = vmatpush1.bf16.msra.mxu0 %v4512_v13  ;;  %v4526_v33 = vpack.c.bf16 %v131_v31, %v129_v30  ;;  %v133_v36 = vld [vmem:[%s6954_s4 + $0xc8] sm:$0xff]  ;;  %v135_v37 = vld [vmem:[%s6954_s4 + $0xd8] sm:$0xff]  ;;  %v4528_v38 = vpack.c.bf16 %v130_v35, %v128_v34  ;;  %v132_v40 = vld [vmem:[%s6954_s4 + $0xc0] sm:$0xff] }
   0xa   :  { %4515 = vmatprep.subr.bf16.mxu0 %v4514_v14  ;;  %v4530_v39 = vpack.c.bf16 %v135_v37, %v133_v36  ;;  %v134_v41 = vld [vmem:[%s6954_s4 + $0xd0] sm:$0xff]  ;;  %v105_v42 = vld [vmem:[%s6951_s1 + $0x8] sm:$0xff]  ;;  %v139_v44 = vld [vmem:[%s6954_s4 + $0xf8] sm:$0xff] }
   0xb   :  { %v137_v43 = vld [vmem:[%s6954_s4 + $0xe8] sm:$0xff]  ;;  %3682 = vmatprep.mubr.msk.f32.mxu0 %vm172_vm0, %v105_v42  ;;  %v4532_v45 = vpack.c.bf16 %v134_v41, %v132_v40  ;;  %v136_v47 = vld [vmem:[%s6954_s4 + $0xe0] sm:$0xff]  ;;  %v138_v48 = vld [vmem:[%s6954_s4 + $0xf0] sm:$0xff] }
   0xc   :  { %v4534_v46 = vpack.c.bf16 %v139_v44, %v137_v43  ;;  %v141_v49 = vld [vmem:[%s6954_s4 + $0x108] sm:$0xff]  ;;  %v143_v50 = vld [vmem:[%s6954_s4 + $0x118] sm:$0xff]  ;;  %v4536_v51 = vpack.c.bf16 %v138_v48, %v136_v47  ;;  %v140_v53 = vld [vmem:[%s6954_s4 + $0x100] sm:$0xff] }
   0xd   :  { %4517 = vmatpush1.bf16.msra.mxu0 %v4516_v19  ;;  %v4538_v52 = vpack.c.bf16 %v143_v50, %v141_v49  ;;  %v142_v54 = vld [vmem:[%s6954_s4 + $0x110] sm:$0xff]  ;;  %v145_v55 = vld [vmem:[%s6954_s4 + $0x128] sm:$0xff]  ;;  %v147_v56 = vld [vmem:[%s6954_s4 + $0x138] sm:$0xff] }
   0xe   :  { %4519 = vmatprep.subr.bf16.mxu0 %v4518_v21  ;;  %v4540_v57 = vpack.c.bf16 %v142_v54, %v140_v53  ;;  %v4542_v58 = vpack.c.bf16 %v147_v56, %v145_v55  ;;  %v144_v59 = vld [vmem:[%s6954_s4 + $0x120] sm:$0xff]  ;;  %v146_v60 = vld [vmem:[%s6954_s4 + $0x130] sm:$0xff]  ;;  %v149_v61 = vld [vmem:[%s6954_s4 + $0x148] sm:$0xff] }
   0xf   :  { %v151_v62 = vld [vmem:[%s6954_s4 + $0x158] sm:$0xff]  ;;  %v4544_v63 = vpack.c.bf16 %v146_v60, %v144_v59  ;;  %v148_v1 = vld [vmem:[%s6954_s4 + $0x140] sm:$0xff]  ;;  %v150_v2 = vld [vmem:[%s6954_s4 + $0x150] sm:$0xff] }
  0x10   :  { %v4546_v0 = vpack.c.bf16 %v151_v62, %v149_v61  ;;  %v153_v3 = vld [vmem:[%s6954_s4 + $0x168] sm:$0xff]  ;;  %v155_v4 = vld [vmem:[%s6954_s4 + $0x178] sm:$0xff]  ;;  %v4548_v5 = vpack.c.bf16 %v150_v2, %v148_v1  ;;  %v152_v7 = vld [vmem:[%s6954_s4 + $0x160] sm:$0xff] }
  0x11   :  { %4521 = vmatpush1.bf16.msra.mxu0 %v4520_v26  ;;  %v4550_v6 = vpack.c.bf16 %v155_v4, %v153_v3  ;;  %v154_v8 = vld [vmem:[%s6954_s4 + $0x170] sm:$0xff]  ;;  %v157_v9 = vld [vmem:[%s6954_s4 + $0x188] sm:$0xff]  ;;  %v159_v10 = vld [vmem:[%s6954_s4 + $0x198] sm:$0xff] }
  0x12   :  { %4523 = vmatprep.subr.bf16.mxu0 %v4522_v27  ;;  %v4552_v11 = vpack.c.bf16 %v154_v8, %v152_v7  ;;  %v156_v12 = vld [vmem:[%s6954_s4 + $0x180] sm:$0xff]  ;;  %v4554_v13 = vpack.c.bf16 %v159_v10, %v157_v9  ;;  %v158_v14 = vld [vmem:[%s6954_s4 + $0x190] sm:$0xff]  ;;  %v161_v15 = vld [vmem:[%s6954_s4 + $0x1a8] sm:$0xff] }
  0x13   :  { %v5648_v16 = vld [vmem:[%s6956_s6] sm:$0xff]  ;;  %v163_v17 = vld [vmem:[%s6954_s4 + $0x1b8] sm:$0xff]  ;;  %v946_v18 = vld [vmem:[%s6956_s6 + $0x8] sm:$0xff]  ;;  %v4556_v21 = vpack.c.bf16 %v158_v14, %v156_v12 }
  0x14   :  { %4178 = vmatprep.mubr.msk.f32.mxu1 %vm965_vm1, %v5648_v16  ;;  %v947_v19 = vld [vmem:[%s6956_s6 + $0x10] sm:$0xff]  ;;  %v5666_v22 = vld [vmem:[%s6956_s6 + $0x18] sm:$0xff]  ;;  %v4558_v23 = vpack.c.bf16 %v163_v17, %v161_v15  ;;  %v160_v24 = vld [vmem:[%s6954_s4 + $0x1a0] sm:$0xff] }
  0x15   :  { %4525 = vmatpush1.bf16.msra.mxu0 %v4524_v32  ;;  %4179 = vmatmul.mubr.msk.f32.vlgmr.msra.gmra.mrb[0].mxu1 %vm965_vm1, %v946_v18  ;;  %v162_v25 = vld [vmem:[%s6954_s4 + $0x1b0] sm:$0xff]  ;;  %v5677_v26 = vld [vmem:[%s6956_s6 + $0x20] sm:$0xff]  ;;  %v165_v27 = vld [vmem:[%s6954_s4 + $0x1c8] sm:$0xff] }
  0x16   :  { %4527 = vmatprep.subr.bf16.mxu0 %v4526_v33  ;;  %4181 = vmatprep.mubr.msk.f32.mxu1 %vm965_vm1, %v947_v19  ;;  %v167_v28 = vld [vmem:[%s6954_s4 + $0x1d8] sm:$0xff]  ;;  %v4560_v29 = vpack.c.bf16 %v162_v25, %v160_v24  ;;  %v5692_v30 = vld [vmem:[%s6956_s6 + $0x28] sm:$0xff] }
  0x19   :  { %4529 = vmatpush1.bf16.msra.mxu0 %v4528_v38  ;;  %4182 = vmatmul.mubr.msk.f32.gmra.mrb[2].mxu1 %vm965_vm1, %v5666_v22 }
  0x1a   :  { %4531 = vmatprep.subr.bf16.mxu0 %v4530_v39  ;;  %4184 = vmatprep.mubr.msk.f32.mxu1 %vm965_vm1, %v5677_v26 }
  0x1d   :  { %4533 = vmatpush1.bf16.msra.mxu0 %v4532_v45 }
  0x1e   :  { %4535 = vmatprep.subr.bf16.mxu0 %v4534_v46 }
  0x21   :  { %4537 = vmatpush1.bf16.msra.mxu0 %v4536_v51 }
  0x22   :  { %4539 = vmatprep.subr.bf16.mxu0 %v4538_v52 }
  0x25   :  { %4541 = vmatpush1.bf16.msra.mxu0 %v4540_v57 }
  0x26   :  { %4543 = vmatprep.subr.bf16.mxu0 %v4542_v58 }
  0x29   :  { %4545 = vmatpush1.bf16.msra.mxu0 %v4544_v63 }
  0x2a   :  { %4547 = vmatprep.subr.bf16.mxu0 %v4546_v0 }
  0x2d   :  { %4549 = vmatpush1.bf16.msra.mxu0 %v4548_v5 }
  0x2e   :  { %4551 = vmatprep.subr.bf16.mxu0 %v4550_v6 }
  0x31   :  { %4553 = vmatpush1.bf16.msra.mxu0 %v4552_v11 }
  0x32   :  { %4555 = vmatprep.subr.bf16.mxu0 %v4554_v13 }
  0x35   :  { %4557 = vmatpush1.bf16.msra.mxu0 %v4556_v21 }
  0x36   :  { %15 = vsyncpa [#allocation3], 0  ;;  %4559 = vmatprep.subr.bf16.mxu0 %v4558_v23  ;;  %v4562_v31 = vpack.c.bf16 %v167_v28, %v165_v27  ;;  %v164_v32 = vld [vmem:[%s6954_s4 + $0x1c0] sm:$0xff]  ;;  %v166_v33 = vld [vmem:[%s6954_s4 + $0x1d0] sm:$0xff]  ;;  %vm179_vm2 = vcmask 1041408   ;;  %4185 = vmatmul.mubr.msk.f32.gmra.mrb[4].mxu1 %vm965_vm1, %v5692_v30  ;;  %vm5421_vm3 = vmmov 1   ;;  %v354_v43 = vlaneseq }
  0x37   :  { %v5703_v34 = vld [vmem:[%s6956_s6 + $0x30] sm:$0xff]  ;;  %v169_v35 = vld [vmem:[%s6954_s4 + $0x1e8] sm:$0xff]  ;;  %v171_v36 = vld [vmem:[%s6954_s4 + $0x1f8] sm:$0x3]  ;;  %v4564_v37 = vpack.c.bf16 %v166_v33, %v164_v32  ;;  %vm373_vm5 = vcmask 1041409   ;;  %vm3509_vm6 = vcmask 1043456  }
  0x38   :  { %4187 = vmatprep.mubr.msk.f32.mxu1 %vm965_vm1, %v5703_v34  ;;  %v5718_v38 = vld [vmem:[%s6956_s6 + $0x38] sm:$0xff]  ;;  %v4566_v39 = vpack.c.bf16 %v171_v36, %v169_v35  ;;  %v168_v40 = vld [vmem:[%s6954_s4 + $0x1e0] sm:$0xff]  ;;  %v170_v41 = vld [vmem:[%s6954_s4 + $0x1f0] sm:$0x3]  ;;  %vm3505_vm7 = vcmask 31744   ;;  %vm5422_vm8 = vmmov 0  }
  0x39   :  { %4561 = vmatpush1.bf16.msra.mxu0 %v4560_v29  ;;  %v5729_v42 = vld [vmem:[%s6956_s6 + $0x40] sm:$0xff]  ;;  %vm5731_vm4 = vmpackc.low %vm179_vm2, %vm5421_vm3  ;;  %v41_v44 = vld [vmem:[%s6953_s3 + $0x8] sm:$0xff]  ;;  %v4569_v46 = vpack.c.bf16 %v170_v41, %v168_v40  ;;  %s5424_s27 = smov [#allocation2]   ;;  %vm3664_vm9 = vcmask 17408  }
  0x3a   :  { %4563 = vmatprep.subr.bf16.mxu0 %v4562_v31  ;;  %v43_v45 = vld [vmem:[%s6953_s3 + $0x18] sm:$0xff]  ;;  %4188 = vmatmul.mubr.msk.f32.gmra.mrb[6].mxu1 %vm965_vm1, %v5718_v38  ;;  %v5748_v47 = vld [vmem:[%s6956_s6 + $0x48] sm:$0xff]  ;;  %v40_v49 = vld [vmem:[%s6953_s3] sm:$0xff]  ;;  %s3672_s28 = sshll.u32 %s5424_s27, 4  ;;  %s3673_s28 = int_to_ptr.vmem [resolvable:$true] %s3672_s28 }
  0x3b   :  { %4190 = vmatprep.mubr.msk.f32.mxu1 %vm965_vm1, %v5729_v42  ;;  %v4572_v48 = vpack.c.bf16 %v43_v45, %v41_v44  ;;  %v42_v50 = vld [vmem:[%s6953_s3 + $0x10] sm:$0xff]  ;;  %v45_v52 = vld [vmem:[%s6953_s3 + $0x28] sm:$0xff]  ;;  %v47_v53 = vld [vmem:[%s6953_s3 + $0x38] sm:$0xff]  ;;  %p5401_p1 = scmp.lt.s32.totalorder %s3673_s28, %s3673_s28 }
  0x3c   :  { %v5761_v51 = vld [vmem:[%s6956_s6 + $0x50] sm:$0xff]  ;;  %v104_v54 = vld [vmem:[%s6951_s1] sm:$0xff]  ;;  %v4574_v55 = vpack.c.bf16 %v42_v50, %v40_v49  ;;  %v5781_v56 = vld [vmem:[%s6956_s6 + $0x58] sm:$0xff]  ;;  %v4576_v57 = vpack.c.bf16 %v47_v53, %v45_v52 }
  0x3d   :  { %4565 = vmatpush1.bf16.msra.mxu0 %v4564_v37  ;;  %v44_v58 = vld [vmem:[%s6953_s3 + $0x20] sm:$0xff]  ;;  %v46_v59 = vld [vmem:[%s6953_s3 + $0x30] sm:$0xff]  ;;  %v107_v60 = vld [vmem:[%s6951_s1 + $0x18] sm:$0xff] }
  0x3e   :  { %4568 = vmatprep.subr.msk.bf16.mxu0 %vm5731_vm4, %v4566_v39  ;;  %4191 = vmatmul.mubr.msk.f32.gmra.mrb[8].mxu1 %vm965_vm1, %v5748_v47  ;;  %v49_v61 = vld [vmem:[%s6953_s3 + $0x48] sm:$0xff]  ;;  %v51_v62 = vld [vmem:[%s6953_s3 + $0x58] sm:$0xff]  ;;  %v5801_v63 = vld [vmem:[%s6956_s6 + $0x60] sm:$0xff]  ;;  %v4578_v0 = vpack.c.bf16 %v46_v59, %v44_v58 }
  0x3f   :  { %4193 = vmatprep.mubr.msk.f32.mxu1 %vm965_vm1, %v5761_v51  ;;  %v106_v1 = vld [vmem:[%s6951_s1 + $0x10] sm:$0xff]  ;;  %v5812_v2 = vld [vmem:[%s6956_s6 + $0x68] sm:$0xff]  ;;  %v4580_v3 = vpack.c.bf16 %v51_v62, %v49_v61  ;;  %v48_v4 = vld [vmem:[%s6953_s3 + $0x40] sm:$0xff] }
  0x40   :  { %v50_v5 = vld [vmem:[%s6953_s3 + $0x50] sm:$0xff]  ;;  %v37_v6 = vld [vmem:[%s6950_s0 + $0x8] sm:$0xff]  ;;  %v55_v8 = vld [vmem:[%s6953_s3 + $0x78] sm:$0xff] }
  0x41   :  { %4571 = vmatpush1.bf16.msk.msra.mxu0 %vm5731_vm4, %v4569_v46  ;;  %v53_v7 = vld [vmem:[%s6953_s3 + $0x68] sm:$0xff]  ;;  %v5834_v9 = vld [vmem:[%s6956_s6 + $0x70] sm:$0xff]  ;;  %v4582_v10 = vpack.c.bf16 %v50_v5, %v48_v4  ;;  %v5842_v11 = vld [vmem:[%s6956_s6 + $0x78] sm:$0xff] }
  0x42   :  { %4573 = vmatprep.subr.bf16.mxu0 %v4572_v48  ;;  %4194 = vmatmul.mubr.msk.f32.gmra.mrb[10].mxu1 %vm965_vm1, %v5781_v56  ;;  %v4584_v12 = vpack.c.bf16 %v55_v8, %v53_v7  ;;  %v52_v13 = vld [vmem:[%s6953_s3 + $0x60] sm:$0xff]  ;;  %v54_v14 = vld [vmem:[%s6953_s3 + $0x70] sm:$0xff]  ;;  %v57_v17 = vld [vmem:[%s6953_s3 + $0x88] sm:$0xff] }
  0x43   :  { %4196 = vmatprep.mubr.msk.f32.mxu1 %vm965_vm1, %v5801_v63  ;;  %v5855_v15 = vld [vmem:[%s6956_s6 + $0x80] sm:$0xff]  ;;  %v59_v18 = vld [vmem:[%s6953_s3 + $0x98] sm:$0xff]  ;;  %v4586_v19 = vpack.c.bf16 %v54_v14, %v52_v13  ;;  %v5870_v21 = vld [vmem:[%s6956_s6 + $0x88] sm:$0xff] }
  0x44   :  { %251 = vmatmul.mubr.f32.vlgmr.msra.gmra.mrb[0].mxu0 %v104_v54  ;;  %v4588_v23 = vpack.c.bf16 %v59_v18, %v57_v17  ;;  %v56_v24 = vld [vmem:[%s6953_s3 + $0x80] sm:$0xff]  ;;  %v58_v25 = vld [vmem:[%s6953_s3 + $0x90] sm:$0xff]  ;;  %v61_v28 = vld [vmem:[%s6953_s3 + $0xa8] sm:$0xff] }
  0x45   :  { %4575 = vmatpush1.bf16.msra.mxu0 %v4574_v55  ;;  %3683 = vmatprep.mubr.msk.f32.mxu0 %vm172_vm0, %v107_v60  ;;  %v5881_v27 = vld [vmem:[%s6956_s6 + $0x90] sm:$0xff]  ;;  %v63_v29 = vld [vmem:[%s6953_s3 + $0xb8] sm:$0xff]  ;;  %v4590_v31 = vpack.c.bf16 %v58_v25, %v56_v24  ;;  %v60_v35 = vld [vmem:[%s6953_s3 + $0xa0] sm:$0xff] }
  0x46   :  { %4577 = vmatprep.subr.bf16.mxu0 %v4576_v57  ;;  %4197 = vmatmul.mubr.msk.f32.gmra.mrb[12].mxu1 %vm965_vm1, %v5812_v2  ;;  %v5896_v32 = vld [vmem:[%s6956_s6 + $0x98] sm:$0xff]  ;;  %v4592_v33 = vpack.c.bf16 %v63_v29, %v61_v28  ;;  %v62_v36 = vld [vmem:[%s6953_s3 + $0xb0] sm:$0xff]  ;;  %v65_v37 = vld [vmem:[%s6953_s3 + $0xc8] sm:$0xff] }
  0x47   :  { %4199 = vmatprep.mubr.msk.f32.mxu1 %vm965_vm1, %v5834_v9  ;;  %v67_v39 = vld [vmem:[%s6953_s3 + $0xd8] sm:$0xff]  ;;  %v4594_v40 = vpack.c.bf16 %v62_v36, %v60_v35  ;;  %v64_v44 = vld [vmem:[%s6953_s3 + $0xc0] sm:$0xff]  ;;  %v66_v45 = vld [vmem:[%s6953_s3 + $0xd0] sm:$0xff] }
  0x48   :  { %257 = vmatmul.mubr.f32.gmra.mrb[2].mxu0 %v106_v1  ;;  %v4596_v41 = vpack.c.bf16 %v67_v39, %v65_v37  ;;  %v69_v46 = vld [vmem:[%s6953_s3 + $0xe8] sm:$0xff]  ;;  %v71_v48 = vld [vmem:[%s6953_s3 + $0xf8] sm:$0xff]  ;;  %v4598_v49 = vpack.c.bf16 %v66_v45, %v64_v44  ;;  %v68_v52 = vld [vmem:[%s6953_s3 + $0xe0] sm:$0xff] }
  0x49   :  { %4579 = vmatpush1.bf16.msra.mxu0 %v4578_v0  ;;  %3686 = vmatprep.mubr.msk.f32.mxu0 %vm172_vm0, %v37_v6  ;;  %v4600_v50 = vpack.c.bf16 %v71_v48, %v69_v46  ;;  %v70_v53 = vld [vmem:[%s6953_s3 + $0xf0] sm:$0xff]  ;;  %v73_v54 = vld [vmem:[%s6953_s3 + $0x108] sm:$0xff]  ;;  %v75_v55 = vld [vmem:[%s6953_s3 + $0x118] sm:$0xff] }
  0x4a   :  { %4581 = vmatprep.subr.bf16.mxu0 %v4580_v3  ;;  %4200 = vmatmul.mubr.msk.f32.gmra.mrb[14].mxu1 %vm965_vm1, %v5842_v11  ;;  %v4602_v57 = vpack.c.bf16 %v70_v53, %v68_v52  ;;  %v4604_v58 = vpack.c.bf16 %v75_v55, %v73_v54  ;;  %v72_v59 = vld [vmem:[%s6953_s3 + $0x100] sm:$0xff]  ;;  %v74_v60 = vld [vmem:[%s6953_s3 + $0x110] sm:$0xff]  ;;  %v77_v61 = vld [vmem:[%s6953_s3 + $0x128] sm:$0xff] }
  0x4b   :  { %4202 = vmatprep.mubr.msk.f32.mxu1 %vm965_vm1, %v5855_v15  ;;  %v79_v62 = vld [vmem:[%s6953_s3 + $0x138] sm:$0xff]  ;;  %v4606_v0 = vpack.c.bf16 %v74_v60, %v72_v59  ;;  %v76_v3 = vld [vmem:[%s6953_s3 + $0x120] sm:$0xff]  ;;  %v78_v4 = vld [vmem:[%s6953_s3 + $0x130] sm:$0xff] }
  0x4c   :  { %v4608_v1 = vpack.c.bf16 %v79_v62, %v77_v61  ;;  %v81_v5 = vld [vmem:[%s6953_s3 + $0x148] sm:$0xff]  ;;  %v83_v6 = vld [vmem:[%s6953_s3 + $0x158] sm:$0xff]  ;;  %v4610_v7 = vpack.c.bf16 %v78_v4, %v76_v3  ;;  %v36_v60 = vld [vmem:[%s6950_s0] sm:$0xff] }
  0x4d   :  { %4583 = vmatpush1.bf16.msra.mxu0 %v4582_v10  ;;  %v4612_v8 = vpack.c.bf16 %v83_v6, %v81_v5  ;;  %v80_v10 = vld [vmem:[%s6953_s3 + $0x140] sm:$0xff]  ;;  %v85_v13 = vld [vmem:[%s6953_s3 + $0x168] sm:$0xff]  ;;  %v87_v14 = vld [vmem:[%s6953_s3 + $0x178] sm:$0xff] }
  0x4e   :  { %4585 = vmatprep.subr.bf16.mxu0 %v4584_v12  ;;  %4203 = vmatmul.mubr.msk.f32.gmra.mrb[16].mxu1 %vm965_vm1, %v5870_v21  ;;  %v82_v12 = vld [vmem:[%s6953_s3 + $0x150] sm:$0xff]  ;;  %v4616_v18 = vpack.c.bf16 %v87_v14, %v85_v13  ;;  %v89_v24 = vld [vmem:[%s6953_s3 + $0x188] sm:$0xff]  ;;  %v91_v25 = vld [vmem:[%s6953_s3 + $0x198] sm:$0xff] }
  0x4f   :  { %4205 = vmatprep.mubr.msk.f32.mxu1 %vm965_vm1, %v5881_v27  ;;  %v4614_v17 = vpack.c.bf16 %v82_v12, %v80_v10  ;;  %v4620_v29 = vpack.c.bf16 %v91_v25, %v89_v24  ;;  %v93_v35 = vld [vmem:[%s6953_s3 + $0x1a8] sm:$0xff]  ;;  %v95_v36 = vld [vmem:[%s6953_s3 + $0x1b8] sm:$0xff]  ;;  %v38_v62 = vld [vmem:[%s6950_s0 + $0x10] sm:$0xff] }
  0x50   :  { %v4624_v39 = vpack.c.bf16 %v95_v36, %v93_v35  ;;  %v97_v44 = vld [vmem:[%s6953_s3 + $0x1c8] sm:$0xff]  ;;  %v99_v45 = vld [vmem:[%s6953_s3 + $0x1d8] sm:$0xff]  ;;  %v352_v3 = vld [vmem:[%s6955_s5] sm:$0x3] }
  0x51   :  { %4587 = vmatpush1.bf16.msra.mxu0 %v4586_v19  ;;  %v84_v19 = vld [vmem:[%s6953_s3 + $0x160] sm:$0xff]  ;;  %v4628_v48 = vpack.c.bf16 %v99_v45, %v97_v44  ;;  %v101_v52 = vld [vmem:[%s6953_s3 + $0x1e8] sm:$0xff]  ;;  %v103_v53 = vld [vmem:[%s6953_s3 + $0x1f8] sm:$0x3] }
  0x52   :  { %4589 = vmatprep.subr.bf16.mxu0 %v4588_v23  ;;  %4206 = vmatmul.mubr.msk.f32.gmra.mrb[18].mxu1 %vm965_vm1, %v5896_v32  ;;  %v86_v23 = vld [vmem:[%s6953_s3 + $0x170] sm:$0xff]  ;;  %v4632_v55 = vpack.c.bf16 %v103_v53, %v101_v52  ;;  %v39_v61 = vld [vmem:[%s6950_s0 + $0x18] sm:$0xff] }
  0x53   :  { %4218 = vmatprep.mubr.msk.f32.mxu1 %vm965_vm1, %v5648_v16  ;;  %v4618_v28 = vpack.c.bf16 %v86_v23, %v84_v19 }
  0x55   :  { %4591 = vmatpush1.bf16.msra.mxu0 %v4590_v31  ;;  %v88_v31 = vld [vmem:[%s6953_s3 + $0x180] sm:$0xff] }
  0x56   :  { %4593 = vmatprep.subr.bf16.mxu0 %v4592_v33  ;;  %v90_v33 = vld [vmem:[%s6953_s3 + $0x190] sm:$0xff] }
  0x57   :  { %v4622_v37 = vpack.c.bf16 %v90_v33, %v88_v31 }
  0x59   :  { %4595 = vmatpush1.bf16.msra.mxu0 %v4594_v40  ;;  %v92_v40 = vld [vmem:[%s6953_s3 + $0x1a0] sm:$0xff] }
  0x5a   :  { %4597 = vmatprep.subr.bf16.mxu0 %v4596_v41  ;;  %v94_v41 = vld [vmem:[%s6953_s3 + $0x1b0] sm:$0xff] }
  0x5b   :  { %v4626_v46 = vpack.c.bf16 %v94_v41, %v92_v40 }
  0x5d   :  { %4599 = vmatpush1.bf16.msra.mxu0 %v4598_v49  ;;  %v96_v49 = vld [vmem:[%s6953_s3 + $0x1c0] sm:$0xff] }
  0x5e   :  { %4601 = vmatprep.subr.bf16.mxu0 %v4600_v50  ;;  %v98_v50 = vld [vmem:[%s6953_s3 + $0x1d0] sm:$0xff] }
  0x5f   :  { %v4630_v54 = vpack.c.bf16 %v98_v50, %v96_v49 }
  0x61   :  { %4603 = vmatpush1.bf16.msra.mxu0 %v4602_v57  ;;  %v100_v57 = vld [vmem:[%s6953_s3 + $0x1e0] sm:$0xff] }
  0x62   :  { %4605 = vmatprep.subr.bf16.mxu0 %v4604_v58  ;;  %v102_v58 = vld [vmem:[%s6953_s3 + $0x1f0] sm:$0x3]  ;;  %s5396_s3 = scalar_lea.vmem %s3673_s28, 32 }
  0x63   :  { %v4635_v59 = vpack.c.bf16 %v102_v58, %v100_v57  ;;  %p5397_p0 = scmp.ne.s32.totalorder %s3673_s28, %s5396_s3  ;;  %p5402_p2 = scmp.lt.s32.totalorder %s5396_s3, %s5396_s3 }
  0x65   :  { %4607 = vmatpush1.bf16.msra.mxu0 %v4606_v0  ;;  %v355_v0 = vshrl.u32 %v354_v43, 7  ;;  %p5403_p3 = por %p5402_p2, %p5401_p1 }
  0x66   :  { %4609 = vmatprep.subr.bf16.mxu0 %v4608_v1 }
  0x67   :  { %v356_v1 = vsub.s32 0, %v355_v0  ;;  %v360_v4 = vsub.s32 1, %v355_v0  ;;  %p5404_p4 = pnand %p5403_p3, %p5397_p0 }
  0x69   :  { %4611 = vmatpush1.bf16.msra.mxu0 %v4610_v7  ;;  %v357_v5 = vrot.slane %v352_v3, %v356_v1  ;;  %v361_v6 = vrot.slane %v352_v3, %v360_v4 }
  0x6a   :  { %4613 = vmatprep.subr.bf16.mxu0 %v4612_v8 }
  0x6d   :  { %4615 = vmatpush1.bf16.msra.mxu0 %v4614_v17 }
  0x6e   :  { %4617 = vmatprep.subr.bf16.mxu0 %v4616_v18 }
  0x71   :  { %4619 = vmatpush1.bf16.msra.mxu0 %v4618_v28 }
  0x72   :  { %4621 = vmatprep.subr.bf16.mxu0 %v4620_v29 }
  0x75   :  { %4623 = vmatpush1.bf16.msra.mxu0 %v4622_v37 }
  0x76   :  { %4625 = vmatprep.subr.bf16.mxu0 %v4624_v39 }
  0x79   :  { %4627 = vmatpush1.bf16.msra.mxu0 %v4626_v46 }
  0x7a   :  { %4629 = vmatprep.subr.bf16.mxu0 %v4628_v48 }
  0x7d   :  { %4631 = vmatpush1.bf16.msra.mxu0 %v4630_v54 }
  0x7e   :  { %4634 = vmatprep.subr.msk.bf16.mxu0 %vm5731_vm4, %v4632_v55 }
  0x81   :  { %4637 = vmatpush1.bf16.msk.msra.mxu0 %vm5731_vm4, %v4635_v59 }
  0x84   :  { %340 = vmatmul.mubr.f32.vlgmr.msra.gmra.mrb[0].mxu0 %v36_v60 }
  0x85   :  { %3687 = vmatprep.mubr.msk.f32.mxu0 %vm172_vm0, %v39_v61 }
  0x88   :  { %346 = vmatmul.mubr.f32.gmra.mrb[2].mxu0 %v38_v62 }
  0x89   :  { %4338 = vmatprep.mubr.msk.f32.mxu0 %vm965_vm1, %v5648_v16 }
  0xe8   :  { %v6049_v53 = vpop.f32.mrb[0].mxu1 }
  0xe9   :  { %v1092_v58 = vpop.f32.mrb[1].mxu1 }
 0x157   :  { %v341_v7 = vpop.f32.mrb[0].mxu0 }
 0x158   :  { %v364_v8 = vadd.f32 %v357_v5, %v341_v7  ;;  %v343_v10 = vpop.f32.mrb[1].mxu0 }
 0x159   :  { %v365_v12 = vadd.f32 %v361_v6, %v343_v10 }
 0x15a   :  { %v443_v13 = vrot.slane %v364_v8, 1  ;;  %v513_v14 = vrot.slane %v364_v8, 2  ;;  %v657_v17 = vrot.slane %v364_v8, 4  ;;  %v585_v18 = vrot.slane %v364_v8, 3 }
 0x15b   :  { %v347_v16 = vpop.f32.mrb[2].mxu0  ;;  %v445_v19 = vrot.slane %v365_v12, 1  ;;  %v516_v23 = vrot.slane %v365_v12, 2  ;;  %v588_v24 = vrot.slane %v365_v12, 3  ;;  %v660_v25 = vrot.slane %v365_v12, 4 }
 0x15c   :  { %v366_v28 = vadd.f32 %v357_v5, %v347_v16  ;;  %v349_v29 = vpop.f32.mrb[3].mxu0  ;;  %v732_v31 = vrot.slane %v365_v12, 5  ;;  %v801_v33 = vrot.slane %v364_v8, 6  ;;  %v729_v35 = vrot.slane %v364_v8, 5  ;;  %v4183_v16 = vpop.f32.mrb[2].mxu1 }
 0x15d   :  { %v367_v36 = vadd.f32 %v361_v6, %v349_v29  ;;  %v804_v37 = vrot.slane %v365_v12, 6  ;;  %v873_v39 = vrot.slane %v364_v8, 7  ;;  %v876_v40 = vrot.slane %v365_v12, 7 }
 0x15e   :  { %v444_v41 = vsel %vm373_vm5, %v366_v28, %v443_v13  ;;  %v372_v44 = vrot.slane %v366_v28, 7  ;;  %v514_v45 = vrot.slane %v366_v28, 1  ;;  %v658_v46 = vrot.slane %v366_v28, 3 }
 0x15f   :  { %449 = vxpose.xlu1.b32.start.end [1/1] (short) %v444_v41, 128  ;;  %v446_v48 = vsel %vm373_vm5, %v367_v36, %v445_v19  ;;  %v375_v49 = vrot.slane %v367_v36, 7  ;;  %v517_v50 = vrot.slane %v367_v36, 1  ;;  %v589_v52 = vrot.slane %v367_v36, 2  ;;  %v1102_v19 = vpop.f32.mrb[3].mxu1 }
 0x160   :  { %v374_v54 = vsel %vm373_vm5, %v372_v44, %v364_v8  ;;  %v515_v55 = vsel %vm373_vm5, %v514_v45, %v513_v14  ;;  %v659_v57 = vsel %vm373_vm5, %v658_v46, %v657_v17  ;;  %v586_v59 = vrot.slane %v366_v28, 2 }
 0x161   :  { %379 = vxpose.xlu0.b32.start.end [1/1] (short) %v374_v54, 128  ;;  %v376_v60 = vsel %vm373_vm5, %v375_v49, %v365_v12  ;;  %v518_v61 = vsel %vm373_vm5, %v517_v50, %v516_v23  ;;  %v590_v62 = vsel %vm373_vm5, %v589_v52, %v588_v24  ;;  %v661_v43 = vrot.slane %v367_v36, 3  ;;  %v4186_v23 = vpop.f32.mrb[4].mxu1 }
 0x162   :  { %v587_v0 = vsel %vm373_vm5, %v586_v59, %v585_v18  ;;  %v733_v1 = vrot.slane %v367_v36, 4  ;;  %v802_v3 = vrot.slane %v366_v28, 5  ;;  %v730_v4 = vrot.slane %v366_v28, 4  ;;  %v1112_v24 = vpop.f32.mrb[5].mxu1 }
 0x163   :  { %v6059_v5 = vsel %vm373_vm5, %v661_v43, %v660_v25  ;;  %v805_v6 = vrot.slane %v367_v36, 5  ;;  %v874_v7 = vrot.slane %v366_v28, 6  ;;  %v877_v8 = vrot.slane %v367_v36, 6  ;;  %v4189_v25 = vpop.f32.mrb[6].mxu1 }
 0x164   :  { %v6062_v10 = vsel %vm373_vm5, %v733_v1, %v732_v31  ;;  %v6065_v12 = vsel %vm373_vm5, %v802_v3, %v801_v33  ;;  %v6068_v13 = vsel %vm373_vm5, %v730_v4, %v729_v35  ;;  %v1122_v28 = vpop.f32.mrb[7].mxu1 }
 0x165   :  { %v6071_v14 = vsel %vm373_vm5, %v805_v6, %v804_v37  ;;  %v6074_v17 = vsel %vm373_vm5, %v874_v7, %v873_v39  ;;  %v6077_v18 = vsel %vm373_vm5, %v877_v8, %v876_v40  ;;  %v6079_v29 = vpop.f32.mrb[8].mxu1 }
 0x166   :  { %v1132_v31 = vpop.f32.mrb[9].mxu1 }
 0x167   :  { %v6081_v33 = vpop.f32.mrb[10].mxu1 }
 0x168   :  { %v6083_v35 = vpop.f32.mrb[11].mxu1 }
 0x169   :  { %v6085_v36 = vpop.f32.mrb[12].mxu1 }
 0x16a   :  { %v6087_v37 = vpop.f32.mrb[13].mxu1 }
 0x16b   :  { %v6089_v39 = vpop.f32.mrb[14].mxu1 }
 0x16c   :  { %v6091_v40 = vpop.f32.mrb[15].mxu1 }
 0x16d   :  { %v6093_v41 = vpop.f32.mrb[16].mxu1 }
 0x16e   :  { %v6095_v44 = vpop.f32.mrb[17].mxu1 }
 0x16f   :  { %v6097_v45 = vpop.f32.mrb[18].mxu1 }
 0x170   :  { %v6099_v46 = vpop.f32.mrb[19].mxu1 }
 0x19c   :  { %481 = vxpose.xlu1.b32.start.end [1/1] (short) (narrow) %v446_v48, 32 }
 0x19e   :  { %411 = vxpose.xlu0.b32.start.end [1/1] (short) (narrow) %v376_v60, 32 }
 0x1a9   :  { %553 = vxpose.xlu1.b32.start.end [1/1] (short) (narrow) %v518_v61, 32 }
 0x1ab   :  { %521 = vxpose.xlu0.b32.start.end [1/1] (short) %v515_v55, 128 }
 0x1b6   :  { %625 = vxpose.xlu1.b32.start.end [1/1] (short) (narrow) %v590_v62, 32 }
 0x1c3   :  { %665 = vxpose.xlu1.b32.start.end [1/1] (short) %v659_v57, 128 }
 0x1df   :  { %v6101_v49 = vpop.trf.xlu1 }
 0x1e0   :  { %6965 = vst [vmem:[#allocation5_spill] sm:$0xff] %v6101_v49 }
 0x1e1   :  { %v395_v50 = vpop.trf.xlu0 }
 0x1e2   :  { %v1191_v55 = vadd.f32 %v1092_v58, %v395_v50 }
 0x1e3   :  { %v6103_v52 = vpop.trf.xlu1 }
 0x1e4   :  { %v3708_v57 = vmul.f32 -1.442695, %v1191_v55 }
 0x1e5   :  { %v396_v48 = vpop.trf.xlu0 }
 0x1e6   :  { %v1192_v62 = vadd.f32 %v6049_v53, %v396_v48  ;;  %4715 = vpow2.f32 %v3708_v57 }
 0x1e7   :  { %v6105_v54 = vpop.trf.xlu1 }
 0x1e8   :  { %6966 = vst [vmem:[#allocation6_spill] sm:$0xff] %v6105_v54  ;;  %v3709_v20 = vmul.f32 -1.442695, %v1192_v62 }
 0x1e9   :  { %v397_v59 = vpop.trf.xlu0  ;;  %593 = vxpose.xlu0.b32.start.end [1/1] (short) %v587_v0, 128 }
 0x1ea   :  { %v1193_v0 = vadd.f32 %v1102_v19, %v397_v59 }
 0x1eb   :  { %v6107_v60 = vpop.trf.xlu1 }
 0x1ec   :  { %6967 = vst [vmem:[#allocation7_spill] sm:$0xff] %v6107_v60  ;;  %v3710_v50 = vmul.f32 -1.442695, %v1193_v0 }
 0x1ed   :  { %v398_v61 = vpop.trf.xlu0 }
 0x1ef   :  { %v6109_v43 = vpop.trf.xlu1 }
 0x1f0   :  { %6968 = vst [vmem:[#allocation8_spill] sm:$0xff] %v6109_v43  ;;  %v1194_v43 = vadd.f32 %v4183_v16, %v398_v61 }
 0x1f1   :  { %v399_v1 = vpop.trf.xlu0 }
 0x1f2   :  { %v3711_v19 = vmul.f32 -1.442695, %v1194_v43 }
 0x1f3   :  { %v6111_v3 = vpop.trf.xlu1 }
 0x1f5   :  { %v400_v4 = vpop.trf.xlu0 }
 0x1f6   :  { %v1196_v6 = vadd.f32 %v4186_v23, %v400_v4  ;;  %v1195_v23 = vadd.f32 %v1112_v24, %v399_v1 }
 0x1f7   :  { %v6114_v7 = vpop.trf.xlu1 }
 0x1f8   :  { %v3713_v8 = vmul.f32 -1.442695, %v1196_v6 }
 0x1f9   :  { %v401_v54 = vpop.trf.xlu0 }
 0x1fa   :  { %4717 = vpow2.f32 %v3713_v8  ;;  %v1197_v60 = vadd.f32 %v1122_v28, %v401_v54  ;;  %v4716_v54 = vpop.eup %4715 }
 0x1fb   :  { %v6116_v49 = vpop.trf.xlu1  ;;  %4719 = vpow2.f32 %v3709_v20  ;;  %v1226_v62 = vadd.f32 1.0, %v4716_v54 }
 0x1fc   :  { %v3714_v58 = vmul.f32 -1.442695, %v1197_v60  ;;  %v3712_v60 = vmul.f32 -1.442695, %v1195_v23 }
 0x1fd   :  { %v402_v55 = vpop.trf.xlu0 }
 0x1fe   :  { %4721 = vpow2.f32 %v3714_v58  ;;  %v1198_v53 = vadd.f32 %v4189_v25, %v402_v55 }
 0x1ff   :  { %v6118_v48 = vpop.trf.xlu1  ;;  %4723 = vpow2.f32 %v3710_v50 }
 0x200   :  { %v3715_v4 = vmul.f32 -1.442695, %v1198_v53  ;;  %697 = vxpose.xlu1.b32.start.end [1/1] (short) (narrow) %v6059_v5, 32 }
 0x201   :  { %v403_v59 = vpop.trf.xlu0 }
 0x202   :  { %4725 = vpow2.f32 %v3715_v4  ;;  %v1199_v28 = vadd.f32 %v1132_v31, %v403_v59 }
 0x203   :  { %v6121_v57 = vpop.trf.xlu1  ;;  %4727 = vpow2.f32 %v3711_v19 }
 0x204   :  { %v4718_v20 = vpop.eup %4717  ;;  %v3716_v16 = vmul.f32 -1.442695, %v1199_v28 }
 0x205   :  { %v1256_v61 = vadd.f32 1.0, %v4718_v20  ;;  %v404_v25 = vpop.trf.xlu0  ;;  %v4720_v1 = vpop.eup %4719 }
 0x206   :  { %4729 = vpow2.f32 %v3716_v16  ;;  %v1200_v24 = vadd.f32 %v6079_v29, %v404_v25  ;;  %v1227_v50 = vadd.f32 1.0, %v4720_v1 }
 0x207   :  { %v6124_v5 = vpop.trf.xlu1  ;;  %4731 = vpow2.f32 %v3712_v60 }
 0x208   :  { %v4722_v43 = vpop.eup %4721  ;;  %v3717_v6 = vmul.f32 -1.442695, %v1200_v24  ;;  %4733 = vrcp.f32 %v1256_v61 }
 0x209   :  { %v405_v31 = vpop.trf.xlu0  ;;  %v1257_v8 = vadd.f32 1.0, %v4722_v43  ;;  %v4724_v58 = vpop.eup %4723 }
 0x20a   :  { %4735 = vpow2.f32 %v3717_v6  ;;  %v1201_v0 = vadd.f32 %v6083_v35, %v405_v31  ;;  %v1228_v59 = vadd.f32 1.0, %v4724_v58 }
 0x20b   :  { %4737 = vrcp.f32 %v1226_v62  ;;  %v6127_v55 = vpop.trf.xlu1 }
 0x20c   :  { %v4726_v53 = vpop.eup %4725  ;;  %4739 = vtanh.f32 %v1201_v0 }
 0x20d   :  { %v406_v29 = vpop.trf.xlu0  ;;  %769 = vxpose.xlu1.b32.start.end [1/1] (short) (narrow) %v6062_v10, 32  ;;  %4741 = vrcp.f32 %v1257_v8  ;;  %v1258_v23 = vadd.f32 1.0, %v4726_v53  ;;  %v4728_v19 = vpop.eup %4727 }
 0x20e   :  { %v1202_v4 = vadd.f32 %v6081_v33, %v406_v29  ;;  %4743 = vrcp.f32 %v1227_v50  ;;  %v1229_v10 = vadd.f32 1.0, %v4728_v19 }
 0x20f   :  { %v6131_v28 = vpop.trf.xlu1 }
 0x210   :  { %v4730_v35 = vpop.eup %4729  ;;  %4745 = vtanh.f32 %v1202_v4 }
 0x211   :  { %v407_v54 = vpop.trf.xlu0  ;;  %v4732_v20 = vpop.eup %4731  ;;  %4747 = vrcp.f32 %v1258_v23  ;;  %v1259_v60 = vadd.f32 1.0, %v4730_v35 }
 0x212   :  { %v1203_v16 = vadd.f32 %v6087_v37, %v407_v54  ;;  %v4734_v61 = vpop.eup %4733  ;;  %4749 = vrcp.f32 %v1228_v59  ;;  %v1230_v31 = vadd.f32 1.0, %v4732_v20 }
 0x213   :  { %v6134_v25 = vpop.trf.xlu1  ;;  %v1306_v8 = vmul.f32 0.0, %v4734_v61 }
 0x214   :  { %v4736_v24 = vpop.eup %4735  ;;  %4751 = vtanh.f32 %v1203_v16 }
 0x215   :  { %v4738_v33 = vpop.eup %4737  ;;  %v408_v1 = vpop.trf.xlu0  ;;  %4753 = vrcp.f32 %v1259_v60  ;;  %v1260_v43 = vadd.f32 1.0, %v4736_v24 }
 0x216   :  { %v4740_v62 = vpop.eup %4739  ;;  %v1204_v6 = vadd.f32 %v6085_v36, %v408_v1  ;;  %4755 = vrcp.f32 %v1229_v10 }
 0x217   :  { %v1311_v0 = vmul.f32 %v4740_v62, %v4738_v33  ;;  %v6137_v58 = vpop.trf.xlu1  ;;  %v4742_v37 = vpop.eup %4741 }
 0x218   :  { %4757 = vtanh.f32 %v1204_v6  ;;  %v4744_v50 = vpop.eup %4743  ;;  %v1307_v19 = vmul.f32 0.0, %v4742_v37 }
 0x219   :  { %v6139_v53 = vadd.f32 %v1311_v0, %v1306_v8  ;;  %v409_v29 = vpop.trf.xlu0  ;;  %4759 = vrcp.f32 %v1260_v43 }
 0x21a   :  { %v4746_v23 = vpop.eup %4745  ;;  %v1205_v4 = vadd.f32 %v6091_v40, %v409_v29  ;;  %4761 = vrcp.f32 %v1230_v31 }
 0x21b   :  { %v1312_v59 = vmul.f32 %v4746_v23, %v4744_v50  ;;  %v6142_v36 = vpop.trf.xlu1  ;;  %v4748_v35 = vpop.eup %4747 }
 0x21c   :  { %4763 = vtanh.f32 %v1205_v4  ;;  %v4750_v54 = vpop.eup %4749  ;;  %v1308_v10 = vmul.f32 0.0, %v4748_v35 }
 0x21d   :  { %v6144_v20 = vadd.f32 %v1312_v59, %v1307_v19  ;;  %v410_v60 = vpop.trf.xlu0 }
 0x21e   :  { %v4752_v16 = vpop.eup %4751  ;;  %v1206_v61 = vadd.f32 %v6089_v39, %v410_v60 }
 0x21f   :  { %v1313_v24 = vmul.f32 %v4752_v16, %v4750_v54  ;;  %v6147_v33 = vpop.trf.xlu1  ;;  %v4754_v1 = vpop.eup %4753 }
 0x220   :  { %v3718_v40 = vmul.f32 -1.442695, %v1206_v61  ;;  %v4756_v62 = vpop.eup %4755  ;;  %v1309_v0 = vmul.f32 0.0, %v4754_v1 }
 0x221   :  { %v6149_v43 = vadd.f32 %v1313_v24, %v1308_v10  ;;  %v427_v6 = vpop.trf.xlu0 }
 0x222   :  { %v4758_v31 = vpop.eup %4757  ;;  %4765 = vpow2.f32 %v3718_v40  ;;  %v1207_v8 = vadd.f32 %v6095_v44, %v427_v6 }
 0x223   :  { %v1314_v37 = vmul.f32 %v4758_v31, %v4756_v62  ;;  %v6152_v50 = vpop.trf.xlu1  ;;  %v4760_v29 = vpop.eup %4759 }
 0x224   :  { %v3719_v39 = vmul.f32 -1.442695, %v1207_v8  ;;  %v4762_v23 = vpop.eup %4761  ;;  %v1310_v54 = vmul.f32 0.0, %v4760_v29 }
 0x225   :  { %v6154_v4 = vadd.f32 %v1314_v37, %v1309_v0  ;;  %v428_v19 = vpop.trf.xlu0 }
 0x226   :  { %v4764_v59 = vpop.eup %4763  ;;  %4767 = vpow2.f32 %v3719_v39  ;;  %v1208_v35 = vadd.f32 %v6093_v41, %v428_v19 }
 0x227   :  { %v1315_v60 = vmul.f32 %v4764_v59, %v4762_v23  ;;  %v6157_v16 = vpop.trf.xlu1  ;;  %809 = vxpose.xlu1.b32.start.end [1/1] (short) %v6065_v12, 128 }
 0x228   :  { %v3720_v44 = vmul.f32 -1.442695, %v1208_v35 }
 0x229   :  { %v6160_v61 = vadd.f32 %v1315_v60, %v1310_v54  ;;  %v429_v10 = vpop.trf.xlu0  ;;  %737 = vxpose.xlu0.b32.start.end [1/1] (short) %v6068_v13, 128 }
 0x22a   :  { %4769 = vpow2.f32 %v3720_v44  ;;  %v1209_v24 = vadd.f32 %v6099_v46, %v429_v10 }
 0x22c   :  { %v4766_v1 = vpop.eup %4765  ;;  %v3721_v40 = vmul.f32 -1.442695, %v1209_v24 }
 0x22d   :  { %v1291_v62 = vadd.f32 1.0, %v4766_v1  ;;  %v430_v6 = vpop.trf.xlu0 }
 0x22e   :  { %4771 = vpow2.f32 %v3721_v40  ;;  %v1210_v41 = vadd.f32 %v6097_v45, %v430_v6 }
 0x22f   :  { %4773 = vtanh.f32 %v6139_v53 }
 0x230   :  { %v4768_v31 = vpop.eup %4767  ;;  %4775 = vtanh.f32 %v6144_v20  ;;  %v3722_v12 = vmul.f32 -1.442695, %v1210_v41 }
 0x231   :  { %4777 = vrcp.f32 %v1291_v62  ;;  %v1292_v8 = vadd.f32 1.0, %v4768_v31  ;;  %v6167_v0 = vpop.trf.xlu0 }
 0x232   :  { %4779 = vpow2.f32 %v3722_v12 }
 0x233   :  { %4781 = vrcp.f32 %v1292_v8  ;;  %v6182_v8 = vpop.trf.xlu1 }
 0x234   :  { %v4770_v13 = vpop.eup %4769  ;;  %4783 = vtanh.f32 %v6149_v43 }
 0x235   :  { %v1293_v46 = vadd.f32 1.0, %v4770_v13  ;;  %v6169_v37 = vpop.trf.xlu0 }
 0x237   :  { %4785 = vrcp.f32 %v1293_v46 }
 0x238   :  { %v4772_v29 = vpop.eup %4771  ;;  %4787 = vtanh.f32 %v6154_v4 }
 0x239   :  { %v4774_v45 = vpop.eup %4773  ;;  %v1294_v39 = vadd.f32 1.0, %v4772_v29  ;;  %v6172_v23 = vpop.trf.xlu0 }
 0x23a   :  { %v4776_v19 = vpop.eup %4775 }
 0x23b   :  { %v4778_v59 = vpop.eup %4777  ;;  %4789 = vrcp.f32 %v1294_v39 }
 0x23c   :  { %v4780_v35 = vpop.eup %4779  ;;  %v1326_v10 = vmul.f32 %v4778_v59, %v4774_v45  ;;  %4791 = vtanh.f32 %v6160_v61 }
 0x23d   :  { %v4782_v54 = vpop.eup %4781  ;;  %v1295_v60 = vadd.f32 1.0, %v4780_v35  ;;  %v6175_v44 = vpop.trf.xlu0 }
 0x23e   :  { %v1327_v24 = vmul.f32 %v4782_v54, %v4776_v19  ;;  %v4784_v62 = vpop.eup %4783  ;;  %v6186_v35 = vpop.trf.xlu1 }
 0x23f   :  { %4793 = vrcp.f32 %v1295_v60  ;;  %v6193_v60 = vld [vmem:[%s6956_s6 + $0x8] sm:$0xff] }
 0x240   :  { %v4638_v1 = vpack.c.bf16 %v1327_v24, %v1326_v10  ;;  %v6202_v24 = vld [vmem:[%s6956_s6 + $0x10] sm:$0xff] }
 0x241   :  { %v6178_v40 = vpop.trf.xlu0  ;;  %v4786_v6 = vpop.eup %4785 }
 0x242   :  { %4639 = vmatprep.subr.bf16.mxu1 %v4638_v1  ;;  %v4788_v41 = vpop.eup %4787  ;;  %v1328_v13 = vmul.f32 %v4786_v6, %v4784_v62 }
 0x243   :  { %4641 = vmatpush3.bf16.msra.mxu1 %v4638_v1  ;;  %v6206_v1 = vpop.trf.xlu1 }
 0x245   :  { %v4790_v31 = vpop.eup %4789  ;;  %v6180_v12 = vpop.trf.xlu0 }
 0x246   :  { %v1329_v46 = vmul.f32 %v4790_v31, %v4788_v41  ;;  %v4792_v29 = vpop.eup %4791 }
 0x247   :  { %v6214_v6 = vpop.trf.xlu1 }
 0x248   :  { %v4642_v45 = vpack.c.bf16 %v1329_v46, %v1328_v13 }
 0x249   :  { %v4794_v39 = vpop.eup %4793  ;;  %v6184_v19 = vpop.trf.xlu0 }
 0x24a   :  { %4643 = vmatprep.subr.bf16.mxu1 %v4642_v45  ;;  %v1330_v59 = vmul.f32 %v4794_v39, %v4792_v29 }
 0x24b   :  { %4645 = vmatpush3.bf16.msra.mxu1 %v4642_v45 }
 0x24c   :  { %4216 = vmatprep.subr.mxu1 %v1330_v59 }
 0x24d   :  { %v6188_v54 = vpop.trf.xlu0 }
 0x24f   :  { %4217 = vmatpush3.msra.mxu1 %v1330_v59  ;;  %v6972_v59 = vld [vmem:[#allocation8_spill] sm:$0xff] }
 0x250   :  { %4219 = vmatmul.mubr.msk.f32.vlgmr.msra.gmra.mrb[20].mxu1 %vm965_vm1, %v6193_v60 }
 0x251   :  { %v6197_v10 = vpop.trf.xlu0  ;;  %4221 = vmatprep.mubr.msk.f32.mxu1 %vm965_vm1, %v6202_v24 }
 0x254   :  { %4222 = vmatmul.mubr.msk.f32.gmra.mrb[22].mxu1 %vm965_vm1, %v5666_v22  ;;  %v6228_v22 = vpop.trf.xlu1 }
 0x255   :  { %v6210_v62 = vpop.trf.xlu0  ;;  %4224 = vmatprep.mubr.msk.f32.mxu1 %vm965_vm1, %v5677_v26 }
 0x258   :  { %4225 = vmatmul.mubr.msk.f32.gmra.mrb[24].mxu1 %vm965_vm1, %v5692_v30  ;;  %v6236_v30 = vpop.trf.xlu1 }
 0x259   :  { %v6218_v41 = vpop.trf.xlu0  ;;  %4227 = vmatprep.mubr.msk.f32.mxu1 %vm965_vm1, %v5703_v34 }
 0x25c   :  { %4228 = vmatmul.mubr.msk.f32.gmra.mrb[26].mxu1 %vm965_vm1, %v5718_v38 }
 0x25d   :  { %v6224_v31 = vpop.trf.xlu0  ;;  %4230 = vmatprep.mubr.msk.f32.mxu1 %vm965_vm1, %v5729_v42  ;;  %v6252_v42 = vpop.trf.xlu1 }
 0x260   :  { %4231 = vmatmul.mubr.msk.f32.gmra.mrb[28].mxu1 %vm965_vm1, %v5748_v47 }
 0x261   :  { %v6232_v26 = vpop.trf.xlu0  ;;  %4233 = vmatprep.mubr.msk.f32.mxu1 %vm965_vm1, %v5761_v51  ;;  %v6258_v47 = vpop.trf.xlu1  ;;  %v6270_v51 = vld [vmem:[%s6956_s6] sm:$0xff] }
 0x264   :  { %841 = vxpose.xlu1.b32.start.end [1/1] (short) (narrow) %v6071_v14, 32  ;;  %4234 = vmatmul.mubr.msk.f32.gmra.mrb[30].mxu1 %vm965_vm1, %v5781_v56  ;;  %v6970_v14 = vld [vmem:[#allocation7_spill] sm:$0xff] }
 0x265   :  { %v6241_v34 = vpop.trf.xlu0  ;;  %4236 = vmatprep.mubr.msk.f32.mxu1 %vm965_vm1, %v5801_v63 }
 0x268   :  { %4237 = vmatmul.mubr.msk.f32.gmra.mrb[32].mxu1 %vm965_vm1, %v5812_v2 }
 0x269   :  { %v6247_v38 = vpop.trf.xlu0  ;;  %881 = vxpose.xlu0.b32.start.end [1/1] (short) %v6074_v17, 128  ;;  %4239 = vmatprep.mubr.msk.f32.mxu1 %vm965_vm1, %v5834_v9  ;;  %v6969_v9 = vld [vmem:[#allocation5_spill] sm:$0xff] }
 0x26c   :  { %4240 = vmatmul.mubr.msk.f32.gmra.mrb[34].mxu1 %vm965_vm1, %v5842_v11 }
 0x26d   :  { %4242 = vmatprep.mubr.msk.f32.mxu1 %vm965_vm1, %v5855_v15 }
 0x270   :  { %4243 = vmatmul.mubr.msk.f32.gmra.mrb[36].mxu1 %vm965_vm1, %v5870_v21 }
 0x271   :  { %913 = vxpose.xlu1.b32.start.end [1/1] (short) (narrow) %v6077_v18, 32  ;;  %4245 = vmatprep.mubr.msk.f32.mxu1 %vm965_vm1, %v5881_v27  ;;  %v6971_v18 = vld [vmem:[#allocation6_spill] sm:$0xff] }
 0x274   :  { %4246 = vmatmul.mubr.msk.f32.gmra.mrb[38].mxu1 %vm965_vm1, %v5896_v32 }
 0x275   :  { %4258 = vmatprep.mubr.msk.f32.mxu1 %vm965_vm1, %v6270_v51 }
 0x323   :  { %v4220_v56 = vpop.f32.mrb[20].mxu1 }
 0x324   :  { %v1497_v63 = vadd.f32 %v4220_v56, %v6103_v52  ;;  %v1397_v2 = vpop.f32.mrb[21].mxu1 }
 0x325   :  { %v1496_v11 = vadd.f32 %v1397_v2, %v6969_v9 }
 0x326   :  { %v3744_v15 = vmul.f32 -1.442695, %v1497_v63 }
 0x327   :  { %v3743_v21 = vmul.f32 -1.442695, %v1496_v11  ;;  %v4223_v27 = vpop.f32.mrb[22].mxu1 }
 0x328   :  { %4795 = vpow2.f32 %v3744_v15  ;;  %v1499_v32 = vadd.f32 %v4223_v27, %v6970_v14  ;;  %v1407_v17 = vpop.f32.mrb[23].mxu1 }
 0x329   :  { %4797 = vpow2.f32 %v3743_v21  ;;  %v1498_v13 = vadd.f32 %v1407_v17, %v6971_v18 }
 0x32a   :  { %v3746_v46 = vmul.f32 -1.442695, %v1499_v32 }
 0x32b   :  { %v3745_v29 = vmul.f32 -1.442695, %v1498_v13  ;;  %v4226_v45 = vpop.f32.mrb[24].mxu1 }
 0x32c   :  { %4799 = vpow2.f32 %v3746_v46  ;;  %v1501_v39 = vadd.f32 %v4226_v45, %v6111_v3  ;;  %v1417_v52 = vpop.f32.mrb[25].mxu1 }
 0x32d   :  { %4801 = vpow2.f32 %v3745_v29  ;;  %v1500_v56 = vadd.f32 %v1417_v52, %v6972_v59 }
 0x32e   :  { %v3748_v63 = vmul.f32 -1.442695, %v1501_v39 }
 0x32f   :  { %v3747_v2 = vmul.f32 -1.442695, %v1500_v56  ;;  %v4229_v9 = vpop.f32.mrb[26].mxu1 }
 0x330   :  { %4803 = vpow2.f32 %v3748_v63  ;;  %v1503_v11 = vadd.f32 %v4229_v9, %v6116_v49  ;;  %v1427_v15 = vpop.f32.mrb[27].mxu1 }
 0x331   :  { %4805 = vpow2.f32 %v3747_v2  ;;  %v1502_v21 = vadd.f32 %v1427_v15, %v6114_v7 }
 0x332   :  { %v4796_v27 = vpop.eup %4795  ;;  %v3750_v14 = vmul.f32 -1.442695, %v1503_v11 }
 0x333   :  { %v4798_v32 = vpop.eup %4797  ;;  %v1532_v17 = vadd.f32 1.0, %v4796_v27  ;;  %v3749_v18 = vmul.f32 -1.442695, %v1502_v21  ;;  %v4232_v3 = vpop.f32.mrb[28].mxu1 }
 0x334   :  { %v1531_v13 = vadd.f32 1.0, %v4798_v32  ;;  %4807 = vpow2.f32 %v3750_v14  ;;  %v1505_v46 = vadd.f32 %v4232_v3, %v6121_v57  ;;  %v1437_v29 = vpop.f32.mrb[29].mxu1 }
 0x335   :  { %4809 = vrcp.f32 %v1532_v17  ;;  %v1504_v45 = vadd.f32 %v1437_v29, %v6118_v48 }
 0x336   :  { %v4800_v39 = vpop.eup %4799  ;;  %4811 = vrcp.f32 %v1531_v13  ;;  %v3752_v49 = vmul.f32 -1.442695, %v1505_v46 }
 0x337   :  { %v4802_v52 = vpop.eup %4801  ;;  %v1534_v59 = vadd.f32 1.0, %v4800_v39  ;;  %4813 = vpow2.f32 %v3749_v18  ;;  %v3751_v7 = vmul.f32 -1.442695, %v1504_v45  ;;  %v4235_v56 = vpop.f32.mrb[30].mxu1 }
 0x338   :  { %v1533_v63 = vadd.f32 1.0, %v4802_v52  ;;  %4815 = vpow2.f32 %v3752_v49  ;;  %v1507_v2 = vadd.f32 %v4235_v56, %v6127_v55  ;;  %v1447_v9 = vpop.f32.mrb[31].mxu1 }
 0x339   :  { %4817 = vrcp.f32 %v1534_v59  ;;  %v1506_v48 = vadd.f32 %v1447_v9, %v6124_v5 }
 0x33a   :  { %v4804_v11 = vpop.eup %4803  ;;  %4819 = vrcp.f32 %v1533_v63 }
 0x33b   :  { %v4806_v57 = vpop.eup %4805  ;;  %v1561_v15 = vadd.f32 1.0, %v4804_v11  ;;  %4821 = vpow2.f32 %v3751_v7  ;;  %v4238_v21 = vpop.f32.mrb[32].mxu1 }
 0x33c   :  { %v1535_v27 = vadd.f32 1.0, %v4806_v57  ;;  %4823 = vtanh.f32 %v1507_v2  ;;  %v1509_v14 = vadd.f32 %v4238_v21, %v6134_v25  ;;  %v1457_v32 = vpop.f32.mrb[33].mxu1 }
 0x33d   :  { %4825 = vrcp.f32 %v1561_v15  ;;  %v1508_v55 = vadd.f32 %v1457_v32, %v6131_v28 }
 0x33e   :  { %v4808_v17 = vpop.eup %4807  ;;  %4827 = vrcp.f32 %v1535_v27 }
 0x33f   :  { %v4810_v18 = vpop.eup %4809  ;;  %v1563_v3 = vadd.f32 1.0, %v4808_v17  ;;  %4829 = vtanh.f32 %v1506_v48  ;;  %v4241_v13 = vpop.f32.mrb[34].mxu1 }
 0x340   :  { %v4812_v46 = vpop.eup %4811  ;;  %4831 = vtanh.f32 %v1509_v14  ;;  %v1511_v29 = vadd.f32 %v4241_v13, %v6142_v36  ;;  %v1467_v5 = vpop.f32.mrb[35].mxu1 }
 0x341   :  { %v4814_v45 = vpop.eup %4813  ;;  %4833 = vrcp.f32 %v1563_v3  ;;  %v1510_v39 = vadd.f32 %v1467_v5, %v6137_v58 }
 0x342   :  { %v4816_v25 = vpop.eup %4815  ;;  %v1562_v49 = vadd.f32 1.0, %v4814_v45  ;;  %4835 = vtanh.f32 %v1508_v55  ;;  %v3753_v52 = vmul.f32 -1.442695, %v1511_v29 }
 0x343   :  { %v4818_v59 = vpop.eup %4817  ;;  %v1565_v7 = vadd.f32 1.0, %v4816_v25  ;;  %4837 = vtanh.f32 %v1510_v39  ;;  %v4244_v28 = vpop.f32.mrb[36].mxu1 }
 0x344   :  { %v4820_v56 = vpop.eup %4819  ;;  %4839 = vrcp.f32 %v1562_v49  ;;  %v1513_v63 = vadd.f32 %v4244_v28, %v6152_v50  ;;  %v1477_v2 = vpop.f32.mrb[37].mxu1 }
 0x345   :  { %v4822_v9 = vpop.eup %4821  ;;  %4841 = vrcp.f32 %v1565_v7  ;;  %v1512_v36 = vadd.f32 %v1477_v2, %v6147_v33 }
 0x346   :  { %v4824_v11 = vpop.eup %4823  ;;  %v1564_v57 = vadd.f32 1.0, %v4822_v9  ;;  %4843 = vpow2.f32 %v3753_v52  ;;  %v3755_v58 = vmul.f32 -1.442695, %v1513_v63 }
 0x347   :  { %v4826_v15 = vpop.eup %4825  ;;  %v1617_v48 = vmul.f32 %v4824_v11, %v4810_v18  ;;  %v3754_v21 = vmul.f32 -1.442695, %v1512_v36  ;;  %v4247_v27 = vpop.f32.mrb[38].mxu1 }
 0x348   :  { %v4828_v14 = vpop.eup %4827  ;;  %v1611_v32 = vmul.f32 %v4826_v15, %v6139_v53  ;;  %4845 = vrcp.f32 %v1564_v57  ;;  %v1515_v17 = vadd.f32 %v4247_v27, %v6182_v8  ;;  %v1487_v50 = vpop.f32.mrb[39].mxu1 }
 0x349   :  { %v4830_v55 = vpop.eup %4829  ;;  %4847 = vpow2.f32 %v3755_v58  ;;  %v1514_v3 = vadd.f32 %v1487_v50, %v6157_v16 }
 0x34a   :  { %v4832_v33 = vpop.eup %4831  ;;  %v1616_v13 = vmul.f32 %v4830_v55, %v4812_v46  ;;  %4849 = vpow2.f32 %v3754_v21  ;;  %v3757_v29 = vmul.f32 -1.442695, %v1515_v17 }
 0x34b   :  { %v4834_v5 = vpop.eup %4833  ;;  %v1619_v45 = vmul.f32 %v4832_v33, %v4818_v59  ;;  %v3756_v18 = vmul.f32 -1.442695, %v1514_v3 }
 0x34c   :  { %v4836_v39 = vpop.eup %4835  ;;  %v1613_v25 = vmul.f32 %v4834_v5, %v6149_v43  ;;  %v6296_v49 = vadd.f32 %v1616_v13, %v1611_v32  ;;  %4851 = vpow2.f32 %v3757_v29 }
 0x34d   :  { %v4838_v53 = vpop.eup %4837  ;;  %v1618_v8 = vmul.f32 %v4836_v39, %v4820_v56  ;;  %4853 = vpow2.f32 %v3756_v18 }
 0x34e   :  { %v4840_v52 = vpop.eup %4839  ;;  %v1620_v7 = vmul.f32 %v4838_v53, %v4828_v14  ;;  %4855 = vtanh.f32 %v6296_v49 }
 0x34f   :  { %v4842_v28 = vpop.eup %4841  ;;  %v1612_v16 = vmul.f32 %v4840_v52, %v6144_v20  ;;  %v6299_v46 = vadd.f32 %v1618_v8, %v1613_v25  ;;  %v6321_v52 = vld [vmem:[%s6956_s6 + $0x18] sm:$0xff] }
 0x350   :  { %v4844_v63 = vpop.eup %4843  ;;  %v1615_v59 = vmul.f32 %v4842_v28, %v6160_v61  ;;  %v6335_v28 = vld [vmem:[%s6956_s6 + $0x28] sm:$0xff] }
 0x351   :  { %v6302_v2 = vadd.f32 %v1617_v48, %v1612_v16  ;;  %v1596_v43 = vadd.f32 1.0, %v4844_v63  ;;  %4857 = vtanh.f32 %v6299_v46  ;;  %v6342_v16 = vld [vmem:[%s6956_s6 + $0x30] sm:$0xff]  ;;  %v6349_v63 = vld [vmem:[%s6956_s6 + $0x38] sm:$0xff] }
 0x352   :  { %v4846_v9 = vpop.eup %4845  ;;  %v6304_v36 = vadd.f32 %v1620_v7, %v1615_v59  ;;  %v6328_v7 = vld [vmem:[%s6956_s6 + $0x20] sm:$0xff] }
 0x353   :  { %v4848_v11 = vpop.eup %4847  ;;  %v1614_v56 = vmul.f32 %v4846_v9, %v6154_v4  ;;  %4859 = vtanh.f32 %v6302_v2  ;;  %v6356_v59 = vld [vmem:[%s6956_s6 + $0x40] sm:$0xff]  ;;  %v6363_v9 = vld [vmem:[%s6956_s6 + $0x48] sm:$0xff] }
 0x354   :  { %v4850_v57 = vpop.eup %4849  ;;  %v1598_v20 = vadd.f32 1.0, %v4848_v11  ;;  %4861 = vrcp.f32 %v1596_v43  ;;  %v6370_v43 = vld [vmem:[%s6956_s6 + $0x50] sm:$0xff]  ;;  %v6377_v11 = vld [vmem:[%s6956_s6 + $0x58] sm:$0xff] }
 0x355   :  { %v6310_v58 = vadd.f32 %v1619_v45, %v1614_v56  ;;  %v1597_v61 = vadd.f32 1.0, %v4850_v57  ;;  %v6384_v56 = vld [vmem:[%s6956_s6 + $0x60] sm:$0xff]  ;;  %v6391_v57 = vld [vmem:[%s6956_s6 + $0x68] sm:$0xff] }
 0x356   :  { %v4852_v15 = vpop.eup %4851  ;;  %4863 = vrcp.f32 %v1598_v20  ;;  %v6398_v20 = vld [vmem:[%s6956_s6 + $0x70] sm:$0xff] }
 0x357   :  { %v4854_v48 = vpop.eup %4853  ;;  %4865 = vrcp.f32 %v1597_v61  ;;  %v1600_v4 = vadd.f32 1.0, %v4852_v15  ;;  %v6405_v61 = vld [vmem:[%s6956_s6 + $0x78] sm:$0xff]  ;;  %v6412_v15 = vld [vmem:[%s6956_s6 + $0x80] sm:$0xff] }
 0x358   :  { %v1599_v21 = vadd.f32 1.0, %v4854_v48  ;;  %4867 = vtanh.f32 %v6310_v58  ;;  %v4856_v27 = vpop.eup %4855  ;;  %v6419_v48 = vld [vmem:[%s6956_s6 + $0x88] sm:$0xff] }
 0x35a   :  { %4869 = vrcp.f32 %v1599_v21  ;;  %v6426_v21 = vld [vmem:[%s6956_s6 + $0x90] sm:$0xff] }
 0x35b   :  { %v4858_v14 = vpop.eup %4857  ;;  %4871 = vrcp.f32 %v1600_v4  ;;  %v6433_v4 = vld [vmem:[%s6956_s6 + $0x98] sm:$0xff] }
 0x35c   :  { %4873 = vtanh.f32 %v6304_v36 }
 0x35d   :  { %v4860_v32 = vpop.eup %4859 }
 0x35e   :  { %v4862_v17 = vpop.eup %4861 }
 0x35f   :  { %v1631_v33 = vmul.f32 %v4862_v17, %v4856_v27 }
 0x360   :  { %v4864_v50 = vpop.eup %4863 }
 0x361   :  { %v4866_v55 = vpop.eup %4865  ;;  %v1633_v45 = vmul.f32 %v4864_v50, %v4858_v14 }
 0x362   :  { %v4868_v3 = vpop.eup %4867  ;;  %v1632_v13 = vmul.f32 %v4866_v55, %v4860_v32 }
 0x364   :  { %v4870_v29 = vpop.eup %4869  ;;  %v4646_v5 = vpack.c.bf16 %v1632_v13, %v1631_v33 }
 0x365   :  { %v1634_v18 = vmul.f32 %v4870_v29, %v4868_v3  ;;  %v4872_v25 = vpop.eup %4871 }
 0x366   :  { %4647 = vmatprep.subr.bf16.mxu1 %v4646_v5  ;;  %v4874_v53 = vpop.eup %4873 }
 0x367   :  { %v4650_v39 = vpack.c.bf16 %v1634_v18, %v1633_v45  ;;  %4649 = vmatpush3.bf16.msra.mxu1 %v4646_v5  ;;  %v1635_v8 = vmul.f32 %v4874_v53, %v4872_v25 }
 0x369   :  { %4651 = vmatprep.subr.bf16.mxu1 %v4650_v39 }
 0x36b   :  { %4653 = vmatpush3.bf16.msra.mxu1 %v4650_v39 }
 0x36c   :  { %4256 = vmatprep.subr.mxu1 %v1635_v8 }
 0x36f   :  { %4257 = vmatpush3.msra.mxu1 %v1635_v8 }
 0x370   :  { %4259 = vmatmul.mubr.msk.f32.vlgmr.msra.gmra.mrb[40].mxu1 %vm965_vm1, %v6193_v60 }
 0x371   :  { %4261 = vmatprep.mubr.msk.f32.mxu1 %vm965_vm1, %v6202_v24 }
 0x374   :  { %4262 = vmatmul.mubr.msk.f32.gmra.mrb[42].mxu1 %vm965_vm1, %v6321_v52 }
 0x375   :  { %4264 = vmatprep.mubr.msk.f32.mxu1 %vm965_vm1, %v6328_v7 }
 0x378   :  { %4265 = vmatmul.mubr.msk.f32.gmra.mrb[44].mxu1 %vm965_vm1, %v6335_v28 }
 0x379   :  { %4267 = vmatprep.mubr.msk.f32.mxu1 %vm965_vm1, %v6342_v16 }
 0x37c   :  { %4268 = vmatmul.mubr.msk.f32.gmra.mrb[46].mxu1 %vm965_vm1, %v6349_v63 }
 0x37d   :  { %4270 = vmatprep.mubr.msk.f32.mxu1 %vm965_vm1, %v6356_v59 }
 0x380   :  { %4271 = vmatmul.mubr.msk.f32.gmra.mrb[48].mxu1 %vm965_vm1, %v6363_v9 }
 0x381   :  { %4273 = vmatprep.mubr.msk.f32.mxu1 %vm965_vm1, %v6370_v43 }
 0x384   :  { %4274 = vmatmul.mubr.msk.f32.gmra.mrb[50].mxu1 %vm965_vm1, %v6377_v11 }
 0x385   :  { %4276 = vmatprep.mubr.msk.f32.mxu1 %vm965_vm1, %v6384_v56 }
 0x388   :  { %4277 = vmatmul.mubr.msk.f32.gmra.mrb[52].mxu1 %vm965_vm1, %v6391_v57 }
 0x389   :  { %4279 = vmatprep.mubr.msk.f32.mxu1 %vm965_vm1, %v6398_v20 }
 0x38c   :  { %4280 = vmatmul.mubr.msk.f32.gmra.mrb[54].mxu1 %vm965_vm1, %v6405_v61 }
 0x38d   :  { %4282 = vmatprep.mubr.msk.f32.mxu1 %vm965_vm1, %v6412_v15 }
 0x390   :  { %4283 = vmatmul.mubr.msk.f32.gmra.mrb[56].mxu1 %vm965_vm1, %v6419_v48 }
 0x391   :  { %4285 = vmatprep.mubr.msk.f32.mxu1 %vm965_vm1, %v6426_v21 }
 0x394   :  { %4286 = vmatmul.mubr.msk.f32.gmra.mrb[58].mxu1 %vm965_vm1, %v6433_v4 }
 0x395   :  { %4298 = vmatprep.mubr.msk.f32.mxu1 %vm965_vm1, %v6270_v51 }
 0x443   :  { %v4260_v27 = vpop.f32.mrb[40].mxu1 }
 0x444   :  { %v1802_v14 = vadd.f32 %v4260_v27, %v6169_v37  ;;  %v1702_v32 = vpop.f32.mrb[41].mxu1 }
 0x445   :  { %v1801_v17 = vadd.f32 %v1702_v32, %v6167_v0 }
 0x446   :  { %v3779_v50 = vmul.f32 -1.442695, %v1802_v14 }
 0x447   :  { %v3778_v55 = vmul.f32 -1.442695, %v1801_v17  ;;  %v4263_v3 = vpop.f32.mrb[42].mxu1 }
 0x448   :  { %4875 = vpow2.f32 %v3779_v50  ;;  %v1804_v33 = vadd.f32 %v4263_v3, %v6175_v44  ;;  %v1712_v13 = vpop.f32.mrb[43].mxu1 }
 0x449   :  { %4877 = vpow2.f32 %v3778_v55  ;;  %v1803_v29 = vadd.f32 %v1712_v13, %v6172_v23 }
 0x44a   :  { %v3781_v5 = vmul.f32 -1.442695, %v1804_v33 }
 0x44b   :  { %v3780_v45 = vmul.f32 -1.442695, %v1803_v29  ;;  %v4266_v18 = vpop.f32.mrb[44].mxu1 }
 0x44c   :  { %4879 = vpow2.f32 %v3781_v5  ;;  %v1806_v39 = vadd.f32 %v4266_v18, %v6180_v12  ;;  %v1722_v37 = vpop.f32.mrb[45].mxu1 }
 0x44d   :  { %4881 = vpow2.f32 %v3780_v45  ;;  %v1805_v0 = vadd.f32 %v1722_v37, %v6178_v40 }
 0x44e   :  { %v3783_v25 = vmul.f32 -1.442695, %v1806_v39 }
 0x44f   :  { %v3782_v53 = vmul.f32 -1.442695, %v1805_v0  ;;  %v4269_v8 = vpop.f32.mrb[46].mxu1 }
 0x450   :  { %4883 = vpow2.f32 %v3783_v25  ;;  %v1808_v44 = vadd.f32 %v4269_v8, %v6188_v54  ;;  %v1732_v27 = vpop.f32.mrb[47].mxu1 }
 0x451   :  { %4885 = vpow2.f32 %v3782_v53  ;;  %v1807_v23 = vadd.f32 %v1732_v27, %v6184_v19 }
 0x452   :  { %v4876_v14 = vpop.eup %4875  ;;  %v3785_v32 = vmul.f32 -1.442695, %v1808_v44 }
 0x453   :  { %v4878_v17 = vpop.eup %4877  ;;  %v1837_v50 = vadd.f32 1.0, %v4876_v14  ;;  %v3784_v55 = vmul.f32 -1.442695, %v1807_v23  ;;  %v4272_v12 = vpop.f32.mrb[48].mxu1 }
 0x454   :  { %v1836_v3 = vadd.f32 1.0, %v4878_v17  ;;  %4887 = vpow2.f32 %v3785_v32  ;;  %v1810_v40 = vadd.f32 %v4272_v12, %v6210_v62  ;;  %v1742_v33 = vpop.f32.mrb[49].mxu1  ;;  %v552_v14 = vpop.trf.xlu0 }
 0x455   :  { %4889 = vrcp.f32 %v1837_v50  ;;  %v1809_v13 = vadd.f32 %v1742_v33, %v6197_v10 }
 0x456   :  { %v4880_v29 = vpop.eup %4879  ;;  %4891 = vrcp.f32 %v1836_v3  ;;  %v3787_v54 = vmul.f32 -1.442695, %v1810_v40 }
 0x457   :  { %v4882_v5 = vpop.eup %4881  ;;  %v1839_v45 = vadd.f32 1.0, %v4880_v29  ;;  %4893 = vpow2.f32 %v3784_v55  ;;  %v3786_v19 = vmul.f32 -1.442695, %v1809_v13  ;;  %v4275_v18 = vpop.f32.mrb[50].mxu1 }
 0x458   :  { %v1838_v39 = vadd.f32 1.0, %v4882_v5  ;;  %4895 = vpow2.f32 %v3787_v54  ;;  %v1812_v37 = vadd.f32 %v4275_v18, %v6224_v31  ;;  %v1752_v0 = vpop.f32.mrb[51].mxu1 }
 0x459   :  { %4897 = vrcp.f32 %v1839_v45  ;;  %v1811_v10 = vadd.f32 %v1752_v0, %v6218_v41 }
 0x45a   :  { %v4884_v25 = vpop.eup %4883  ;;  %4899 = vrcp.f32 %v1838_v39 }
 0x45b   :  { %v4886_v62 = vpop.eup %4885  ;;  %v1866_v53 = vadd.f32 1.0, %v4884_v25  ;;  %4901 = vpow2.f32 %v3786_v19  ;;  %v4278_v8 = vpop.f32.mrb[52].mxu1 }
 0x45c   :  { %v1840_v44 = vadd.f32 1.0, %v4886_v62  ;;  %4903 = vtanh.f32 %v1812_v37  ;;  %v1814_v27 = vadd.f32 %v4278_v8, %v6241_v34  ;;  %v1762_v23 = vpop.f32.mrb[53].mxu1 }
 0x45d   :  { %4905 = vrcp.f32 %v1866_v53  ;;  %v1813_v31 = vadd.f32 %v1762_v23, %v6232_v26 }
 0x45e   :  { %v4888_v32 = vpop.eup %4887  ;;  %4907 = vrcp.f32 %v1840_v44 }
 0x45f   :  { %v4890_v17 = vpop.eup %4889  ;;  %v1868_v50 = vadd.f32 1.0, %v4888_v32  ;;  %4909 = vtanh.f32 %v1811_v10  ;;  %v4281_v55 = vpop.f32.mrb[54].mxu1 }
 0x460   :  { %v4892_v12 = vpop.eup %4891  ;;  %4911 = vtanh.f32 %v1814_v27  ;;  %v1816_v3 = vadd.f32 %v4281_v55, %v552_v14  ;;  %v1772_v41 = vpop.f32.mrb[55].mxu1 }
 0x461   :  { %v4894_v40 = vpop.eup %4893  ;;  %4913 = vrcp.f32 %v1868_v50  ;;  %v1815_v33 = vadd.f32 %v1772_v41, %v6247_v38 }
 0x462   :  { %v4896_v34 = vpop.eup %4895  ;;  %v1867_v13 = vadd.f32 1.0, %v4894_v40  ;;  %4915 = vtanh.f32 %v1813_v31  ;;  %v3788_v29 = vmul.f32 -1.442695, %v1816_v3 }
 0x463   :  { %v4898_v54 = vpop.eup %4897  ;;  %v1870_v5 = vadd.f32 1.0, %v4896_v34  ;;  %4917 = vtanh.f32 %v1815_v33  ;;  %v4284_v26 = vpop.f32.mrb[56].mxu1 }
 0x464   :  { %v4900_v45 = vpop.eup %4899  ;;  %4919 = vrcp.f32 %v1867_v13  ;;  %v1818_v19 = vadd.f32 %v4284_v26, %v6206_v1  ;;  %v1782_v18 = vpop.f32.mrb[57].mxu1 }
 0x465   :  { %v4902_v39 = vpop.eup %4901  ;;  %4921 = vrcp.f32 %v1870_v5  ;;  %v1817_v37 = vadd.f32 %v1782_v18, %v6186_v35 }
 0x466   :  { %v4904_v0 = vpop.eup %4903  ;;  %v1869_v25 = vadd.f32 1.0, %v4902_v39  ;;  %4923 = vpow2.f32 %v3788_v29  ;;  %v3790_v38 = vmul.f32 -1.442695, %v1818_v19 }
 0x467   :  { %v4906_v62 = vpop.eup %4905  ;;  %v1922_v53 = vmul.f32 %v4904_v0, %v4890_v17  ;;  %v3789_v10 = vmul.f32 -1.442695, %v1817_v37  ;;  %v4287_v8 = vpop.f32.mrb[58].mxu1 }
 0x468   :  { %v4908_v44 = vpop.eup %4907  ;;  %v1916_v27 = vmul.f32 %v4906_v62, %v6296_v49  ;;  %4925 = vrcp.f32 %v1869_v25  ;;  %v1820_v23 = vadd.f32 %v4287_v8, %v6228_v22  ;;  %v1792_v1 = vpop.f32.mrb[59].mxu1 }
 0x469   :  { %v4910_v14 = vpop.eup %4909  ;;  %4927 = vpow2.f32 %v3790_v38  ;;  %v1819_v32 = vadd.f32 %v1792_v1, %v6214_v6 }
 0x46a   :  { %v4912_v35 = vpop.eup %4911  ;;  %v1921_v31 = vmul.f32 %v4910_v14, %v4892_v12  ;;  %4929 = vpow2.f32 %v3789_v10  ;;  %v3792_v50 = vmul.f32 -1.442695, %v1820_v23 }
 0x46b   :  { %v4914_v55 = vpop.eup %4913  ;;  %v1924_v3 = vmul.f32 %v4912_v35, %v4898_v54  ;;  %v3791_v17 = vmul.f32 -1.442695, %v1819_v32 }
 0x46c   :  { %v4916_v41 = vpop.eup %4915  ;;  %v1918_v40 = vmul.f32 %v4914_v55, %v6299_v46  ;;  %v6460_v33 = vadd.f32 %v1921_v31, %v1916_v27  ;;  %4931 = vpow2.f32 %v3792_v50 }
 0x46d   :  { %v4918_v49 = vpop.eup %4917  ;;  %v1923_v22 = vmul.f32 %v4916_v41, %v4900_v45  ;;  %4933 = vpow2.f32 %v3791_v17 }
 0x46e   :  { %v4920_v34 = vpop.eup %4919  ;;  %v1925_v13 = vmul.f32 %v4918_v49, %v4908_v44  ;;  %4935 = vtanh.f32 %v6460_v33 }
 0x46f   :  { %v4922_v29 = vpop.eup %4921  ;;  %v1917_v6 = vmul.f32 %v4920_v34, %v6302_v2  ;;  %v6463_v12 = vadd.f32 %v1923_v22, %v1918_v40 }
 0x470   :  { %v4924_v5 = vpop.eup %4923  ;;  %v1920_v54 = vmul.f32 %v4922_v29, %v6304_v36 }
 0x471   :  { %v6466_v26 = vadd.f32 %v1922_v53, %v1917_v6  ;;  %v1901_v46 = vadd.f32 1.0, %v4924_v5  ;;  %4937 = vtanh.f32 %v6463_v12 }
 0x472   :  { %v4926_v19 = vpop.eup %4925  ;;  %v6468_v18 = vadd.f32 %v1925_v13, %v1920_v54 }
 0x473   :  { %v4928_v39 = vpop.eup %4927  ;;  %v1919_v45 = vmul.f32 %v4926_v19, %v6310_v58  ;;  %4939 = vtanh.f32 %v6466_v26 }
 0x474   :  { %v4930_v37 = vpop.eup %4929  ;;  %v1903_v2 = vadd.f32 1.0, %v4928_v39  ;;  %4941 = vrcp.f32 %v1901_v46 }
 0x475   :  { %v6474_v0 = vadd.f32 %v1924_v3, %v1919_v45  ;;  %v1902_v36 = vadd.f32 1.0, %v4930_v37 }
 0x476   :  { %v4932_v25 = vpop.eup %4931  ;;  %4943 = vrcp.f32 %v1903_v2 }
 0x477   :  { %v4934_v38 = vpop.eup %4933  ;;  %4945 = vrcp.f32 %v1902_v36  ;;  %v1905_v58 = vadd.f32 1.0, %v4932_v25 }
 0x478   :  { %v1904_v62 = vadd.f32 1.0, %v4934_v38  ;;  %4947 = vtanh.f32 %v6474_v0  ;;  %v4936_v53 = vpop.eup %4935 }
 0x47a   :  { %4949 = vrcp.f32 %v1904_v62 }
 0x47b   :  { %v4938_v10 = vpop.eup %4937  ;;  %4951 = vrcp.f32 %v1905_v58 }
 0x47c   :  { %4953 = vtanh.f32 %v6468_v18 }
 0x47d   :  { %v4940_v8 = vpop.eup %4939 }
 0x47e   :  { %v4942_v44 = vpop.eup %4941 }
 0x47f   :  { %v1936_v14 = vmul.f32 %v4942_v44, %v4936_v53 }
 0x480   :  { %v4944_v27 = vpop.eup %4943 }
 0x481   :  { %v4946_v23 = vpop.eup %4945  ;;  %v1938_v50 = vmul.f32 %v4944_v27, %v4938_v10 }
 0x482   :  { %v4948_v1 = vpop.eup %4947  ;;  %v1937_v32 = vmul.f32 %v4946_v23, %v4940_v8 }
 0x484   :  { %v4950_v35 = vpop.eup %4949  ;;  %v4654_v31 = vpack.c.bf16 %v1937_v32, %v1936_v14 }
 0x485   :  { %v1939_v55 = vmul.f32 %v4950_v35, %v4948_v1  ;;  %v4952_v17 = vpop.eup %4951 }
 0x486   :  { %4655 = vmatprep.subr.bf16.mxu1 %v4654_v31  ;;  %v4954_v41 = vpop.eup %4953 }
 0x487   :  { %v4658_v3 = vpack.c.bf16 %v1939_v55, %v1938_v50  ;;  %4657 = vmatpush3.bf16.msra.mxu1 %v4654_v31  ;;  %v1940_v40 = vmul.f32 %v4954_v41, %v4952_v17 }
 0x489   :  { %4659 = vmatprep.subr.bf16.mxu1 %v4658_v3 }
 0x48b   :  { %4661 = vmatpush3.bf16.msra.mxu1 %v4658_v3 }
 0x48c   :  { %4296 = vmatprep.subr.mxu1 %v1940_v40 }
 0x48f   :  { %4297 = vmatpush3.msra.mxu1 %v1940_v40 }
 0x490   :  { %4299 = vmatmul.mubr.msk.f32.vlgmr.msra.gmra.mrb[60].mxu1 %vm965_vm1, %v6193_v60  ;;  %v609_v60 = vpop.trf.xlu0 }
 0x491   :  { %4301 = vmatprep.mubr.msk.f32.mxu1 %vm965_vm1, %v6202_v24 }
 0x494   :  { %4302 = vmatmul.mubr.msk.f32.gmra.mrb[62].mxu1 %vm965_vm1, %v6321_v52  ;;  %v610_v24 = vpop.trf.xlu0 }
 0x495   :  { %4304 = vmatprep.mubr.msk.f32.mxu1 %vm965_vm1, %v6328_v7 }
 0x498   :  { %4305 = vmatmul.mubr.msk.f32.gmra.mrb[64].mxu1 %vm965_vm1, %v6335_v28  ;;  %v611_v49 = vpop.trf.xlu0 }
 0x499   :  { %4307 = vmatprep.mubr.msk.f32.mxu1 %vm965_vm1, %v6342_v16 }
 0x49c   :  { %4308 = vmatmul.mubr.msk.f32.gmra.mrb[66].mxu1 %vm965_vm1, %v6349_v63  ;;  %v612_v22 = vpop.trf.xlu0 }
 0x49d   :  { %4310 = vmatprep.mubr.msk.f32.mxu1 %vm965_vm1, %v6356_v59 }
 0x4a0   :  { %4311 = vmatmul.mubr.msk.f32.gmra.mrb[68].mxu1 %vm965_vm1, %v6363_v9  ;;  %v613_v34 = vpop.trf.xlu0 }
 0x4a1   :  { %4313 = vmatprep.mubr.msk.f32.mxu1 %vm965_vm1, %v6370_v43 }
 0x4a4   :  { %4314 = vmatmul.mubr.msk.f32.gmra.mrb[70].mxu1 %vm965_vm1, %v6377_v11  ;;  %v614_v13 = vpop.trf.xlu0 }
 0x4a5   :  { %4316 = vmatprep.mubr.msk.f32.mxu1 %vm965_vm1, %v6384_v56 }
 0x4a8   :  { %4317 = vmatmul.mubr.msk.f32.gmra.mrb[72].mxu1 %vm965_vm1, %v6391_v57  ;;  %v615_v29 = vpop.trf.xlu0 }
 0x4a9   :  { %4319 = vmatprep.mubr.msk.f32.mxu1 %vm965_vm1, %v6398_v20 }
 0x4ac   :  { %4320 = vmatmul.mubr.msk.f32.gmra.mrb[74].mxu1 %vm965_vm1, %v6405_v61  ;;  %v616_v6 = vpop.trf.xlu0 }
 0x4ad   :  { %4322 = vmatprep.mubr.msk.f32.mxu1 %vm965_vm1, %v6412_v15 }
 0x4b0   :  { %4323 = vmatmul.mubr.msk.f32.gmra.mrb[76].mxu1 %vm965_vm1, %v6419_v48  ;;  %v617_v5 = vpop.trf.xlu0 }
 0x4b1   :  { %4325 = vmatprep.mubr.msk.f32.mxu1 %vm965_vm1, %v6426_v21 }
 0x4b4   :  { %4326 = vmatmul.mubr.msk.f32.gmra.mrb[78].mxu1 %vm965_vm1, %v6433_v4  ;;  %v618_v54 = vpop.trf.xlu0 }
 0x4b5   :  { %4378 = vmatprep.mubr.msk.f32.mxu1 %vm965_vm1, %v6270_v51 }
 0x4b8   :  { %v6518_v19 = vpop.trf.xlu0 }
 0x4bc   :  { %v620_v2 = vpop.trf.xlu0 }
 0x4c0   :  { %v621_v44 = vpop.trf.xlu0 }
 0x4c4   :  { %v622_v3 = vpop.trf.xlu0 }
 0x563   :  { %v4300_v46 = vpop.f32.mrb[60].mxu1 }
 0x564   :  { %v2107_v39 = vadd.f32 %v4300_v46, %v610_v24  ;;  %v2007_v45 = vpop.f32.mrb[61].mxu1 }
 0x565   :  { %v2106_v37 = vadd.f32 %v2007_v45, %v609_v60 }
 0x566   :  { %v3814_v36 = vmul.f32 -1.442695, %v2107_v39 }
 0x567   :  { %v3813_v25 = vmul.f32 -1.442695, %v2106_v37  ;;  %v4303_v51 = vpop.f32.mrb[62].mxu1 }
 0x568   :  { %4955 = vpow2.f32 %v3814_v36  ;;  %v2109_v38 = vadd.f32 %v4303_v51, %v612_v22  ;;  %v2017_v62 = vpop.f32.mrb[63].mxu1 }
 0x569   :  { %4957 = vpow2.f32 %v3813_v25  ;;  %v2108_v58 = vadd.f32 %v2017_v62, %v611_v49  ;;  %v623_v25 = vpop.trf.xlu0 }
 0x56a   :  { %v3816_v53 = vmul.f32 -1.442695, %v2109_v38 }
 0x56b   :  { %v3815_v10 = vmul.f32 -1.442695, %v2108_v58  ;;  %v4306_v8 = vpop.f32.mrb[64].mxu1 }
 0x56c   :  { %4959 = vpow2.f32 %v3816_v53  ;;  %v2111_v27 = vadd.f32 %v4306_v8, %v614_v13  ;;  %v2027_v23 = vpop.f32.mrb[65].mxu1 }
 0x56d   :  { %4961 = vpow2.f32 %v3815_v10  ;;  %v2110_v1 = vadd.f32 %v2027_v23, %v613_v34 }
 0x56e   :  { %v3818_v14 = vmul.f32 -1.442695, %v2111_v27 }
 0x56f   :  { %v3817_v32 = vmul.f32 -1.442695, %v2110_v1  ;;  %v4309_v35 = vpop.f32.mrb[66].mxu1  ;;  %v624_v1 = vpop.trf.xlu0 }
 0x570   :  { %4963 = vpow2.f32 %v3818_v14  ;;  %v2113_v31 = vadd.f32 %v4309_v35, %v616_v6  ;;  %v2037_v50 = vpop.f32.mrb[67].mxu1 }
 0x571   :  { %4965 = vpow2.f32 %v3817_v32  ;;  %v2112_v55 = vadd.f32 %v2037_v50, %v615_v29 }
 0x572   :  { %v4956_v17 = vpop.eup %4955  ;;  %v3820_v41 = vmul.f32 -1.442695, %v2113_v31 }
 0x573   :  { %v4958_v40 = vpop.eup %4957  ;;  %v2142_v60 = vadd.f32 1.0, %v4956_v17  ;;  %v3819_v24 = vmul.f32 -1.442695, %v2112_v55  ;;  %v4312_v49 = vpop.f32.mrb[68].mxu1 }
 0x574   :  { %v2141_v22 = vadd.f32 1.0, %v4958_v40  ;;  %4967 = vpow2.f32 %v3820_v41  ;;  %v2115_v13 = vadd.f32 %v4312_v49, %v618_v54  ;;  %v2047_v46 = vpop.f32.mrb[69].mxu1 }
 0x575   :  { %4969 = vrcp.f32 %v2142_v60  ;;  %v2114_v34 = vadd.f32 %v2047_v46, %v617_v5 }
 0x576   :  { %v4960_v39 = vpop.eup %4959  ;;  %4971 = vrcp.f32 %v2141_v22  ;;  %v3822_v45 = vmul.f32 -1.442695, %v2115_v13 }
 0x577   :  { %v4962_v6 = vpop.eup %4961  ;;  %v2144_v37 = vadd.f32 1.0, %v4960_v39  ;;  %4973 = vpow2.f32 %v3819_v24  ;;  %v3821_v29 = vmul.f32 -1.442695, %v2114_v34  ;;  %v4315_v36 = vpop.f32.mrb[70].mxu1 }
 0x578   :  { %v2143_v51 = vadd.f32 1.0, %v4962_v6  ;;  %4975 = vpow2.f32 %v3822_v45  ;;  %v2117_v38 = vadd.f32 %v4315_v36, %v620_v2  ;;  %v2057_v62 = vpop.f32.mrb[71].mxu1  ;;  %v644_v45 = vpop.trf.xlu1 }
 0x579   :  { %4977 = vrcp.f32 %v2144_v37  ;;  %v2116_v5 = vadd.f32 %v2057_v62, %v6518_v19 }
 0x57a   :  { %v4964_v58 = vpop.eup %4963  ;;  %4979 = vrcp.f32 %v2143_v51 }
 0x57b   :  { %v4966_v54 = vpop.eup %4965  ;;  %v2171_v53 = vadd.f32 1.0, %v4964_v58  ;;  %4981 = vpow2.f32 %v3821_v29  ;;  %v4318_v10 = vpop.f32.mrb[72].mxu1 }
 0x57c   :  { %v2145_v8 = vadd.f32 1.0, %v4966_v54  ;;  %4983 = vtanh.f32 %v2117_v38  ;;  %v2119_v27 = vadd.f32 %v4318_v10, %v622_v3  ;;  %v2067_v23 = vpop.f32.mrb[73].mxu1 }
 0x57d   :  { %4985 = vrcp.f32 %v2171_v53  ;;  %v2118_v32 = vadd.f32 %v2067_v23, %v621_v44 }
 0x57e   :  { %v4968_v14 = vpop.eup %4967  ;;  %4987 = vrcp.f32 %v2145_v8 }
 0x57f   :  { %v4970_v2 = vpop.eup %4969  ;;  %v2173_v35 = vadd.f32 1.0, %v4968_v14  ;;  %4989 = vtanh.f32 %v2116_v5  ;;  %v4321_v31 = vpop.f32.mrb[74].mxu1 }
 0x580   :  { %v4972_v50 = vpop.eup %4971  ;;  %4991 = vtanh.f32 %v2119_v27  ;;  %v2121_v55 = vadd.f32 %v4321_v31, %v624_v1  ;;  %v2077_v17 = vpop.f32.mrb[75].mxu1 }
 0x581   :  { %v4974_v41 = vpop.eup %4973  ;;  %4993 = vrcp.f32 %v2173_v35  ;;  %v2120_v19 = vadd.f32 %v2077_v17, %v623_v25 }
 0x582   :  { %v4976_v40 = vpop.eup %4975  ;;  %v2172_v60 = vadd.f32 1.0, %v4974_v41  ;;  %4995 = vtanh.f32 %v2118_v32  ;;  %v3823_v3 = vmul.f32 -1.442695, %v2121_v55 }
 0x583   :  { %v4978_v24 = vpop.eup %4977  ;;  %v2175_v49 = vadd.f32 1.0, %v4976_v40  ;;  %4997 = vtanh.f32 %v2120_v19  ;;  %v4324_v22 = vpop.f32.mrb[76].mxu1 }
 0x584   :  { %v4980_v44 = vpop.eup %4979  ;;  %4999 = vrcp.f32 %v2172_v60  ;;  %v2123_v13 = vadd.f32 %v4324_v22, %v6252_v42  ;;  %v2087_v46 = vpop.f32.mrb[77].mxu1 }
 0x585   :  { %v4982_v34 = vpop.eup %4981  ;;  %5001 = vrcp.f32 %v2175_v49  ;;  %v2122_v39 = vadd.f32 %v2087_v46, %v6236_v30 }
 0x586   :  { %v4984_v6 = vpop.eup %4983  ;;  %v2174_v37 = vadd.f32 1.0, %v4982_v34  ;;  %5003 = vpow2.f32 %v3823_v3  ;;  %v3825_v29 = vmul.f32 -1.442695, %v2123_v13 }
 0x587   :  { %v4986_v36 = vpop.eup %4985  ;;  %v2227_v25 = vmul.f32 %v4984_v6, %v4970_v2  ;;  %v3824_v51 = vmul.f32 -1.442695, %v2122_v39  ;;  %v4327_v38 = vpop.f32.mrb[78].mxu1 }
 0x588   :  { %v4988_v62 = vpop.eup %4987  ;;  %v2221_v58 = vmul.f32 %v4986_v36, %v6460_v33  ;;  %5005 = vrcp.f32 %v2174_v37  ;;  %v2125_v54 = vadd.f32 %v4327_v38, %v644_v45  ;;  %v2097_v42 = vpop.f32.mrb[79].mxu1 }
 0x589   :  { %v4990_v53 = vpop.eup %4989  ;;  %5007 = vpow2.f32 %v3825_v29  ;;  %v2124_v5 = vadd.f32 %v2097_v42, %v6258_v47 }
 0x58a   :  { %v4992_v30 = vpop.eup %4991  ;;  %v2226_v10 = vmul.f32 %v4990_v53, %v4972_v50  ;;  %5009 = vpow2.f32 %v3824_v51  ;;  %v3827_v8 = vmul.f32 -1.442695, %v2125_v54 }
 0x58b   :  { %v4994_v27 = vpop.eup %4993  ;;  %v2229_v23 = vmul.f32 %v4992_v30, %v4978_v24  ;;  %v3826_v1 = vmul.f32 -1.442695, %v2124_v5 }
 0x58c   :  { %v4996_v14 = vpop.eup %4995  ;;  %v2223_v32 = vmul.f32 %v4994_v27, %v6463_v12  ;;  %v6526_v2 = vadd.f32 %v2226_v10, %v2221_v58  ;;  %5011 = vpow2.f32 %v3827_v8  ;;  %v6547_v8 = vld [vmem:[%s6956_s6 + $0x8] sm:$0xff]  ;;  %v6554_v27 = vld [vmem:[%s6956_s6 + $0x10] sm:$0xff] }
 0x58d   :  { %v4998_v33 = vpop.eup %4997  ;;  %v2228_v35 = vmul.f32 %v4996_v14, %v4980_v44  ;;  %5013 = vpow2.f32 %v3826_v1 }
 0x58e   :  { %v5000_v31 = vpop.eup %4999  ;;  %v2230_v55 = vmul.f32 %v4998_v33, %v4988_v62  ;;  %5015 = vtanh.f32 %v6526_v2 }
 0x58f   :  { %v5002_v17 = vpop.eup %5001  ;;  %v2222_v47 = vmul.f32 %v5000_v31, %v6466_v26  ;;  %v6529_v50 = vadd.f32 %v2228_v35, %v2223_v32 }
 0x590   :  { %v5004_v41 = vpop.eup %5003  ;;  %v2225_v19 = vmul.f32 %v5002_v17, %v6468_v18 }
 0x591   :  { %v6532_v40 = vadd.f32 %v2227_v25, %v2222_v47  ;;  %v2206_v12 = vadd.f32 1.0, %v5004_v41  ;;  %5017 = vtanh.f32 %v6529_v50 }
 0x592   :  { %v5006_v60 = vpop.eup %5005  ;;  %v6534_v3 = vadd.f32 %v2230_v55, %v2225_v19 }
 0x593   :  { %v5008_v24 = vpop.eup %5007  ;;  %v2224_v49 = vmul.f32 %v5006_v60, %v6474_v0  ;;  %5019 = vtanh.f32 %v6532_v40 }
 0x594   :  { %v5010_v22 = vpop.eup %5009  ;;  %v2208_v26 = vadd.f32 1.0, %v5008_v24  ;;  %5021 = vrcp.f32 %v2206_v12 }
 0x595   :  { %v6540_v44 = vadd.f32 %v2229_v23, %v2224_v49  ;;  %v2207_v18 = vadd.f32 1.0, %v5010_v22 }
 0x596   :  { %v5012_v13 = vpop.eup %5011  ;;  %5023 = vrcp.f32 %v2208_v26 }
 0x597   :  { %v5014_v46 = vpop.eup %5013  ;;  %5025 = vrcp.f32 %v2207_v18  ;;  %v2210_v0 = vadd.f32 1.0, %v5012_v13 }
 0x598   :  { %v2209_v34 = vadd.f32 1.0, %v5014_v46  ;;  %5027 = vtanh.f32 %v6540_v44  ;;  %v5016_v39 = vpop.eup %5015 }
 0x59a   :  { %5029 = vrcp.f32 %v2209_v34 }
 0x59b   :  { %v5018_v45 = vpop.eup %5017  ;;  %5031 = vrcp.f32 %v2210_v0 }
 0x59c   :  { %5033 = vtanh.f32 %v6534_v3 }
 0x59d   :  { %v5020_v6 = vpop.eup %5019 }
 0x59e   :  { %v5022_v37 = vpop.eup %5021 }
 0x59f   :  { %v2241_v51 = vmul.f32 %v5022_v37, %v5016_v39 }
 0x5a0   :  { %v5024_v29 = vpop.eup %5023 }
 0x5a1   :  { %v5026_v36 = vpop.eup %5025  ;;  %v2243_v54 = vmul.f32 %v5024_v29, %v5018_v45 }
 0x5a2   :  { %v5028_v25 = vpop.eup %5027  ;;  %v2242_v38 = vmul.f32 %v5026_v36, %v5020_v6 }
 0x5a4   :  { %v5030_v62 = vpop.eup %5029  ;;  %v4662_v58 = vpack.c.bf16 %v2242_v38, %v2241_v51 }
 0x5a5   :  { %v2244_v42 = vmul.f32 %v5030_v62, %v5028_v25  ;;  %v5032_v5 = vpop.eup %5031 }
 0x5a6   :  { %4663 = vmatprep.subr.bf16.mxu0 %v4662_v58  ;;  %v5034_v30 = vpop.eup %5033 }
 0x5a7   :  { %v4666_v53 = vpack.c.bf16 %v2244_v42, %v2243_v54  ;;  %4665 = vmatpush3.bf16.msra.mxu0 %v4662_v58  ;;  %v2245_v10 = vmul.f32 %v5034_v30, %v5032_v5 }
 0x5a9   :  { %4667 = vmatprep.subr.bf16.mxu0 %v4666_v53 }
 0x5ab   :  { %4669 = vmatpush3.bf16.msra.mxu0 %v4666_v53 }
 0x5ac   :  { %4336 = vmatprep.subr.mxu0 %v2245_v10 }
 0x5af   :  { %4337 = vmatpush3.msra.mxu0 %v2245_v10 }
 0x5b0   :  { %4339 = vmatmul.mubr.msk.f32.vlgmr.msra.gmra.mrb[4].mxu0 %vm965_vm1, %v6547_v8 }
 0x5b1   :  { %4341 = vmatprep.mubr.msk.f32.mxu0 %vm965_vm1, %v6554_v27 }
 0x5b4   :  { %4342 = vmatmul.mubr.msk.f32.gmra.mrb[6].mxu0 %vm965_vm1, %v6321_v52  ;;  %v6595_v52 = vld [vmem:[%s6956_s6] sm:$0xff] }
 0x5b5   :  { %4344 = vmatprep.mubr.msk.f32.mxu0 %vm965_vm1, %v6328_v7  ;;  %v681_v7 = vpop.trf.xlu1 }
 0x5b8   :  { %4345 = vmatmul.mubr.msk.f32.gmra.mrb[8].mxu0 %vm965_vm1, %v6335_v28 }
 0x5b9   :  { %4347 = vmatprep.mubr.msk.f32.mxu0 %vm965_vm1, %v6342_v16  ;;  %v682_v28 = vpop.trf.xlu1 }
 0x5bc   :  { %4348 = vmatmul.mubr.msk.f32.gmra.mrb[10].mxu0 %vm965_vm1, %v6349_v63 }
 0x5bd   :  { %4350 = vmatprep.mubr.msk.f32.mxu0 %vm965_vm1, %v6356_v59  ;;  %v683_v16 = vpop.trf.xlu1 }
 0x5c0   :  { %4351 = vmatmul.mubr.msk.f32.gmra.mrb[12].mxu0 %vm965_vm1, %v6363_v9 }
 0x5c1   :  { %4353 = vmatprep.mubr.msk.f32.mxu0 %vm965_vm1, %v6370_v43  ;;  %v684_v63 = vpop.trf.xlu1 }
 0x5c4   :  { %4354 = vmatmul.mubr.msk.f32.gmra.mrb[14].mxu0 %vm965_vm1, %v6377_v11 }
 0x5c5   :  { %4356 = vmatprep.mubr.msk.f32.mxu0 %vm965_vm1, %v6384_v56  ;;  %v685_v59 = vpop.trf.xlu1 }
 0x5c8   :  { %4357 = vmatmul.mubr.msk.f32.gmra.mrb[16].mxu0 %vm965_vm1, %v6391_v57 }
 0x5c9   :  { %4359 = vmatprep.mubr.msk.f32.mxu0 %vm965_vm1, %v6398_v20  ;;  %v686_v9 = vpop.trf.xlu1 }
 0x5cc   :  { %4360 = vmatmul.mubr.msk.f32.gmra.mrb[18].mxu0 %vm965_vm1, %v6405_v61 }
 0x5cd   :  { %4362 = vmatprep.mubr.msk.f32.mxu0 %vm965_vm1, %v6412_v15  ;;  %v687_v43 = vpop.trf.xlu1 }
 0x5d0   :  { %4363 = vmatmul.mubr.msk.f32.gmra.mrb[20].mxu0 %vm965_vm1, %v6419_v48 }
 0x5d1   :  { %4365 = vmatprep.mubr.msk.f32.mxu0 %vm965_vm1, %v6426_v21  ;;  %v688_v11 = vpop.trf.xlu1 }
 0x5d4   :  { %4366 = vmatmul.mubr.msk.f32.gmra.mrb[22].mxu0 %vm965_vm1, %v6433_v4 }
 0x5d5   :  { %4418 = vmatprep.mubr.msk.f32.mxu0 %vm965_vm1, %v6595_v52  ;;  %v689_v56 = vpop.trf.xlu1 }
 0x5d9   :  { %v690_v57 = vpop.trf.xlu1 }
 0x5dd   :  { %v6599_v20 = vpop.trf.xlu1 }
 0x5e1   :  { %v692_v61 = vpop.trf.xlu1 }
 0x5e5   :  { %v6601_v15 = vpop.trf.xlu1 }
 0x5e9   :  { %v6603_v48 = vpop.trf.xlu1 }
 0x5ed   :  { %v6605_v35 = vpop.trf.xlu1 }
 0x5f1   :  { %v696_v49 = vpop.trf.xlu1 }
 0x5f5   :  { %v713_v36 = vpop.trf.xlu1 }
 0x683   :  { %v4340_v21 = vpop.f32.mrb[4].mxu0 }
 0x684   :  { %v2412_v4 = vadd.f32 %v4340_v21, %v682_v28  ;;  %v2312_v23 = vpop.f32.mrb[5].mxu0 }
 0x685   :  { %v2411_v1 = vadd.f32 %v2312_v23, %v681_v7 }
 0x686   :  { %v3849_v14 = vmul.f32 -1.442695, %v2412_v4 }
 0x687   :  { %v3848_v32 = vmul.f32 -1.442695, %v2411_v1  ;;  %v4343_v33 = vpop.f32.mrb[6].mxu0 }
 0x688   :  { %5035 = vpow2.f32 %v3849_v14  ;;  %v2414_v31 = vadd.f32 %v4343_v33, %v684_v63  ;;  %v2322_v55 = vpop.f32.mrb[7].mxu0 }
 0x689   :  { %5037 = vpow2.f32 %v3848_v32  ;;  %v2413_v17 = vadd.f32 %v2322_v55, %v683_v16  ;;  %v714_v16 = vpop.trf.xlu1 }
 0x68a   :  { %v3851_v47 = vmul.f32 -1.442695, %v2414_v31 }
 0x68b   :  { %v3850_v41 = vmul.f32 -1.442695, %v2413_v17  ;;  %v4346_v19 = vpop.f32.mrb[8].mxu0 }
 0x68c   :  { %5039 = vpow2.f32 %v3851_v47  ;;  %v2416_v60 = vadd.f32 %v4346_v19, %v686_v9  ;;  %v2332_v12 = vpop.f32.mrb[9].mxu0 }
 0x68d   :  { %5041 = vpow2.f32 %v3850_v41  ;;  %v2415_v24 = vadd.f32 %v2332_v12, %v685_v59  ;;  %v715_v32 = vpop.trf.xlu1 }
 0x68e   :  { %v3853_v22 = vmul.f32 -1.442695, %v2416_v60 }
 0x68f   :  { %v3852_v26 = vmul.f32 -1.442695, %v2415_v24  ;;  %v4349_v18 = vpop.f32.mrb[10].mxu0 }
 0x690   :  { %5043 = vpow2.f32 %v3853_v22  ;;  %v2418_v13 = vadd.f32 %v4349_v18, %v688_v11  ;;  %v2342_v46 = vpop.f32.mrb[11].mxu0 }
 0x691   :  { %5045 = vpow2.f32 %v3852_v26  ;;  %v2417_v34 = vadd.f32 %v2342_v46, %v687_v43  ;;  %v716_v18 = vpop.trf.xlu1 }
 0x692   :  { %v5036_v0 = vpop.eup %5035  ;;  %v3855_v39 = vmul.f32 -1.442695, %v2418_v13 }
 0x693   :  { %v5038_v45 = vpop.eup %5037  ;;  %v2447_v6 = vadd.f32 1.0, %v5036_v0  ;;  %v3854_v37 = vmul.f32 -1.442695, %v2417_v34  ;;  %v4352_v29 = vpop.f32.mrb[12].mxu0 }
 0x694   :  { %v2446_v25 = vadd.f32 1.0, %v5038_v45  ;;  %5047 = vpow2.f32 %v3855_v39  ;;  %v2420_v51 = vadd.f32 %v4352_v29, %v690_v57  ;;  %v2352_v38 = vpop.f32.mrb[13].mxu0 }
 0x695   :  { %5049 = vrcp.f32 %v2447_v6  ;;  %v2419_v62 = vadd.f32 %v2352_v38, %v689_v56 }
 0x696   :  { %v5040_v58 = vpop.eup %5039  ;;  %5051 = vrcp.f32 %v2446_v25  ;;  %v3857_v54 = vmul.f32 -1.442695, %v2420_v51 }
 0x697   :  { %v5042_v42 = vpop.eup %5041  ;;  %v2449_v53 = vadd.f32 1.0, %v5040_v58  ;;  %5053 = vpow2.f32 %v3854_v37  ;;  %v3856_v5 = vmul.f32 -1.442695, %v2419_v62  ;;  %v4355_v30 = vpop.f32.mrb[14].mxu0 }
 0x698   :  { %v2448_v10 = vadd.f32 1.0, %v5042_v42  ;;  %5055 = vpow2.f32 %v3857_v54  ;;  %v2422_v7 = vadd.f32 %v4355_v30, %v692_v61  ;;  %v2362_v28 = vpop.f32.mrb[15].mxu0 }
 0x699   :  { %5057 = vrcp.f32 %v2449_v53  ;;  %v2421_v43 = vadd.f32 %v2362_v28, %v6599_v20 }
 0x69a   :  { %v5044_v63 = vpop.eup %5043  ;;  %5059 = vrcp.f32 %v2448_v10 }
 0x69b   :  { %v5046_v59 = vpop.eup %5045  ;;  %v2476_v9 = vadd.f32 1.0, %v5044_v63  ;;  %5061 = vpow2.f32 %v3856_v5  ;;  %v4358_v11 = vpop.f32.mrb[16].mxu0 }
 0x69c   :  { %v2450_v56 = vadd.f32 1.0, %v5046_v59  ;;  %5063 = vtanh.f32 %v2422_v7  ;;  %v2424_v57 = vadd.f32 %v4358_v11, %v6603_v48  ;;  %v2372_v21 = vpop.f32.mrb[17].mxu0 }
 0x69d   :  { %5065 = vrcp.f32 %v2476_v9  ;;  %v2423_v61 = vadd.f32 %v2372_v21, %v6601_v15 }
 0x69e   :  { %v5048_v4 = vpop.eup %5047  ;;  %5067 = vrcp.f32 %v2450_v56 }
 0x69f   :  { %v5050_v23 = vpop.eup %5049  ;;  %v2478_v1 = vadd.f32 1.0, %v5048_v4  ;;  %5069 = vtanh.f32 %v2421_v43  ;;  %v4361_v14 = vpop.f32.mrb[18].mxu0 }
 0x6a0   :  { %v5052_v33 = vpop.eup %5051  ;;  %5071 = vtanh.f32 %v2424_v57  ;;  %v2426_v31 = vadd.f32 %v4361_v14, %v696_v49  ;;  %v2382_v20 = vpop.f32.mrb[19].mxu0 }
 0x6a1   :  { %v5054_v55 = vpop.eup %5053  ;;  %5073 = vrcp.f32 %v2478_v1  ;;  %v2425_v17 = vadd.f32 %v2382_v20, %v6605_v35 }
 0x6a2   :  { %v5056_v48 = vpop.eup %5055  ;;  %v2477_v47 = vadd.f32 1.0, %v5054_v55  ;;  %5075 = vtanh.f32 %v2423_v61  ;;  %v3858_v41 = vmul.f32 -1.442695, %v2426_v31 }
 0x6a3   :  { %v5058_v19 = vpop.eup %5057  ;;  %v2480_v60 = vadd.f32 1.0, %v5056_v48  ;;  %5077 = vtanh.f32 %v2425_v17  ;;  %v4364_v15 = vpop.f32.mrb[20].mxu0 }
 0x6a4   :  { %v5060_v12 = vpop.eup %5059  ;;  %5079 = vrcp.f32 %v2477_v47  ;;  %v2428_v24 = vadd.f32 %v4364_v15, %v714_v16  ;;  %v2392_v22 = vpop.f32.mrb[21].mxu0 }
 0x6a5   :  { %v5062_v26 = vpop.eup %5061  ;;  %5081 = vrcp.f32 %v2480_v60  ;;  %v2427_v49 = vadd.f32 %v2392_v22, %v713_v36 }
 0x6a6   :  { %v5064_v13 = vpop.eup %5063  ;;  %v2479_v46 = vadd.f32 1.0, %v5062_v26  ;;  %5083 = vpow2.f32 %v3858_v41  ;;  %v3860_v35 = vmul.f32 -1.442695, %v2428_v24 }
 0x6a7   :  { %v5066_v34 = vpop.eup %5065  ;;  %v2532_v0 = vmul.f32 %v5064_v13, %v5050_v23  ;;  %v3859_v39 = vmul.f32 -1.442695, %v2427_v49  ;;  %v4367_v45 = vpop.f32.mrb[22].mxu0 }
 0x6a8   :  { %v5068_v6 = vpop.eup %5067  ;;  %v2526_v37 = vmul.f32 %v5066_v34, %v6526_v2  ;;  %5085 = vrcp.f32 %v2479_v46  ;;  %v2430_v29 = vadd.f32 %v4367_v45, %v716_v18  ;;  %v2402_v25 = vpop.f32.mrb[23].mxu0  ;;  %v6638_v46 = vld [vmem:[%s6956_s6 + $0x18] sm:$0xff]  ;;  %v6652_v34 = vld [vmem:[%s6956_s6 + $0x28] sm:$0xff]  ;;  %v6673_v45 = vld [vmem:[%s6956_s6 + $0x40] sm:$0xff] }
 0x6a9   :  { %v5070_v51 = vpop.eup %5069  ;;  %5087 = vpow2.f32 %v3860_v35  ;;  %v2429_v38 = vadd.f32 %v2402_v25, %v715_v32  ;;  %v6645_v35 = vld [vmem:[%s6956_s6 + $0x20] sm:$0xff] }
 0x6aa   :  { %v5072_v62 = vpop.eup %5071  ;;  %v2531_v36 = vmul.f32 %v5070_v51, %v5052_v33  ;;  %5089 = vpow2.f32 %v3859_v39  ;;  %v3862_v58 = vmul.f32 -1.442695, %v2430_v29  ;;  %v6666_v39 = vld [vmem:[%s6956_s6 + $0x38] sm:$0xff]  ;;  %v6701_v25 = vld [vmem:[%s6956_s6 + $0x60] sm:$0xff]  ;;  %v6708_v51 = vld [vmem:[%s6956_s6 + $0x68] sm:$0xff] }
 0x6ab   :  { %v5074_v54 = vpop.eup %5073  ;;  %v2534_v42 = vmul.f32 %v5072_v62, %v5058_v19  ;;  %v3861_v53 = vmul.f32 -1.442695, %v2429_v38  ;;  %v6694_v29 = vld [vmem:[%s6956_s6 + $0x58] sm:$0xff]  ;;  %v6715_v38 = vld [vmem:[%s6956_s6 + $0x70] sm:$0xff] }
 0x6ac   :  { %v5076_v5 = vpop.eup %5075  ;;  %v2528_v30 = vmul.f32 %v5074_v54, %v6529_v50  ;;  %v6613_v10 = vadd.f32 %v2531_v36, %v2526_v37  ;;  %5091 = vpow2.f32 %v3862_v58  ;;  %v6687_v37 = vld [vmem:[%s6956_s6 + $0x50] sm:$0xff]  ;;  %v6722_v62 = vld [vmem:[%s6956_s6 + $0x78] sm:$0xff]  ;;  %v6729_v36 = vld [vmem:[%s6956_s6 + $0x80] sm:$0xff] }
 0x6ad   :  { %v5078_v2 = vpop.eup %5077  ;;  %v2533_v7 = vmul.f32 %v5076_v5, %v5060_v12  ;;  %5093 = vpow2.f32 %v3861_v53  ;;  %v6736_v58 = vld [vmem:[%s6956_s6 + $0x88] sm:$0xff]  ;;  %v6743_v54 = vld [vmem:[%s6956_s6 + $0x90] sm:$0xff]  ;;  %v753_v53 = vpop.trf.xlu0 }
 0x6ae   :  { %v5080_v28 = vpop.eup %5079  ;;  %v2535_v16 = vmul.f32 %v5078_v2, %v5068_v6  ;;  %5095 = vtanh.f32 %v6613_v10  ;;  %v6680_v6 = vld [vmem:[%s6956_s6 + $0x48] sm:$0xff] }
 0x6af   :  { %v5082_v63 = vpop.eup %5081  ;;  %v2527_v59 = vmul.f32 %v5080_v28, %v6532_v40  ;;  %v6616_v9 = vadd.f32 %v2533_v7, %v2528_v30 }
 0x6b0   :  { %v5084_v43 = vpop.eup %5083  ;;  %v2530_v11 = vmul.f32 %v5082_v63, %v6534_v3 }
 0x6b1   :  { %v6619_v56 = vadd.f32 %v2532_v0, %v2527_v59  ;;  %v2511_v50 = vadd.f32 1.0, %v5084_v43  ;;  %5097 = vtanh.f32 %v6616_v9  ;;  %v6659_v0 = vld [vmem:[%s6956_s6 + $0x30] sm:$0xff]  ;;  %v754_v5 = vpop.trf.xlu0 }
 0x6b2   :  { %v5086_v57 = vpop.eup %5085  ;;  %v6621_v21 = vadd.f32 %v2535_v16, %v2530_v11 }
 0x6b3   :  { %v5088_v4 = vpop.eup %5087  ;;  %v2529_v61 = vmul.f32 %v5086_v57, %v6540_v44  ;;  %5099 = vtanh.f32 %v6619_v56 }
 0x6b4   :  { %v5090_v23 = vpop.eup %5089  ;;  %v2513_v40 = vadd.f32 1.0, %v5088_v4  ;;  %5101 = vrcp.f32 %v2511_v50 }
 0x6b5   :  { %v6627_v1 = vadd.f32 %v2534_v42, %v2529_v61  ;;  %v2512_v3 = vadd.f32 1.0, %v5090_v23  ;;  %v6750_v42 = vld [vmem:[%s6956_s6 + $0x98] sm:$0xff]  ;;  %v755_v30 = vpop.trf.xlu0 }
 0x6b6   :  { %v5092_v14 = vpop.eup %5091  ;;  %5103 = vrcp.f32 %v2513_v40 }
 0x6b7   :  { %v5094_v32 = vpop.eup %5093  ;;  %5105 = vrcp.f32 %v2512_v3  ;;  %v2515_v44 = vadd.f32 1.0, %v5092_v14 }
 0x6b8   :  { %v2514_v33 = vadd.f32 1.0, %v5094_v32  ;;  %5107 = vtanh.f32 %v6627_v1  ;;  %v5096_v31 = vpop.eup %5095 }
 0x6b9   :  { %v756_v2 = vpop.trf.xlu0 }
 0x6ba   :  { %5109 = vrcp.f32 %v2514_v33 }
 0x6bb   :  { %v5098_v20 = vpop.eup %5097  ;;  %5111 = vrcp.f32 %v2515_v44 }
 0x6bc   :  { %5113 = vtanh.f32 %v6621_v21 }
 0x6bd   :  { %v5100_v55 = vpop.eup %5099  ;;  %v757_v7 = vpop.trf.xlu0 }
 0x6be   :  { %v5102_v17 = vpop.eup %5101 }
 0x6bf   :  { %v2546_v19 = vmul.f32 %v5102_v17, %v5096_v31 }
 0x6c0   :  { %v5104_v48 = vpop.eup %5103 }
 0x6c1   :  { %v5106_v47 = vpop.eup %5105  ;;  %v2548_v24 = vmul.f32 %v5104_v48, %v5098_v20  ;;  %v758_v28 = vpop.trf.xlu0 }
 0x6c2   :  { %v5108_v41 = vpop.eup %5107  ;;  %v2547_v60 = vmul.f32 %v5106_v47, %v5100_v55 }
 0x6c4   :  { %v5110_v15 = vpop.eup %5109  ;;  %v4670_v12 = vpack.c.bf16 %v2547_v60, %v2546_v19 }
 0x6c5   :  { %v2549_v22 = vmul.f32 %v5110_v15, %v5108_v41  ;;  %v5112_v49 = vpop.eup %5111  ;;  %v759_v16 = vpop.trf.xlu0 }
 0x6c6   :  { %4671 = vmatprep.subr.bf16.mxu1 %v4670_v12  ;;  %v5114_v18 = vpop.eup %5113 }
 0x6c7   :  { %v4674_v26 = vpack.c.bf16 %v2549_v22, %v2548_v24  ;;  %4673 = vmatpush3.bf16.msra.mxu1 %v4670_v12  ;;  %v2550_v13 = vmul.f32 %v5114_v18, %v5112_v49 }
 0x6c9   :  { %4675 = vmatprep.subr.bf16.mxu1 %v4674_v26  ;;  %v760_v63 = vpop.trf.xlu0 }
 0x6cb   :  { %4677 = vmatpush3.bf16.msra.mxu1 %v4674_v26 }
 0x6cc   :  { %4376 = vmatprep.subr.mxu1 %v2550_v13 }
 0x6cd   :  { %v761_v59 = vpop.trf.xlu0 }
 0x6cf   :  { %4377 = vmatpush3.msra.mxu1 %v2550_v13 }
 0x6d0   :  { %4379 = vmatmul.mubr.msk.f32.vlgmr.msra.gmra.mrb[80].mxu1 %vm965_vm1, %v6547_v8 }
 0x6d1   :  { %4381 = vmatprep.mubr.msk.f32.mxu1 %vm965_vm1, %v6554_v27  ;;  %v762_v43 = vpop.trf.xlu0 }
 0x6d4   :  { %4382 = vmatmul.mubr.msk.f32.gmra.mrb[82].mxu1 %vm965_vm1, %v6638_v46 }
 0x6d5   :  { %4384 = vmatprep.mubr.msk.f32.mxu1 %vm965_vm1, %v6645_v35  ;;  %v6756_v11 = vpop.trf.xlu0 }
 0x6d8   :  { %4385 = vmatmul.mubr.msk.f32.gmra.mrb[84].mxu1 %vm965_vm1, %v6652_v34 }
 0x6d9   :  { %4387 = vmatprep.mubr.msk.f32.mxu1 %vm965_vm1, %v6659_v0  ;;  %v764_v23 = vpop.trf.xlu0 }
 0x6dc   :  { %4388 = vmatmul.mubr.msk.f32.gmra.mrb[86].mxu1 %vm965_vm1, %v6666_v39 }
 0x6dd   :  { %4390 = vmatprep.mubr.msk.f32.mxu1 %vm965_vm1, %v6673_v45  ;;  %v765_v17 = vpop.trf.xlu0 }
 0x6e0   :  { %4391 = vmatmul.mubr.msk.f32.gmra.mrb[88].mxu1 %vm965_vm1, %v6680_v6 }
 0x6e1   :  { %4393 = vmatprep.mubr.msk.f32.mxu1 %vm965_vm1, %v6687_v37  ;;  %v766_v26 = vpop.trf.xlu0 }
 0x6e4   :  { %4394 = vmatmul.mubr.msk.f32.gmra.mrb[90].mxu1 %vm965_vm1, %v6694_v29 }
 0x6e5   :  { %4396 = vmatprep.mubr.msk.f32.mxu1 %vm965_vm1, %v6701_v25 }
 0x6e8   :  { %4397 = vmatmul.mubr.msk.f32.gmra.mrb[92].mxu1 %vm965_vm1, %v6708_v51 }
 0x6e9   :  { %4399 = vmatprep.mubr.msk.f32.mxu1 %vm965_vm1, %v6715_v38 }
 0x6ec   :  { %4400 = vmatmul.mubr.msk.f32.gmra.mrb[94].mxu1 %vm965_vm1, %v6722_v62 }
 0x6ed   :  { %4402 = vmatprep.mubr.msk.f32.mxu1 %vm965_vm1, %v6729_v36 }
 0x6f0   :  { %4403 = vmatmul.mubr.msk.f32.gmra.mrb[96].mxu1 %vm965_vm1, %v6736_v58 }
 0x6f1   :  { %4405 = vmatprep.mubr.msk.f32.mxu1 %vm965_vm1, %v6743_v54 }
 0x6f4   :  { %4406 = vmatmul.mubr.msk.f32.gmra.mrb[98].mxu1 %vm965_vm1, %v6750_v42 }
 0x6f5   :  { %4461 = vmatprep.mubr.msk.f32.mxu1 %vm965_vm1, %v6554_v27 }
 0x7a3   :  { %v4380_v57 = vpop.f32.mrb[80].mxu1 }
 0x7a4   :  { %v2717_v50 = vadd.f32 %v4380_v57, %v754_v5  ;;  %v2617_v4 = vpop.f32.mrb[81].mxu1 }
 0x7a5   :  { %v2716_v61 = vadd.f32 %v2617_v4, %v753_v53 }
 0x7a6   :  { %v3884_v40 = vmul.f32 -1.442695, %v2717_v50 }
 0x7a7   :  { %v3883_v3 = vmul.f32 -1.442695, %v2716_v61  ;;  %v4383_v14 = vpop.f32.mrb[82].mxu1 }
 0x7a8   :  { %5115 = vpow2.f32 %v3884_v40  ;;  %v2719_v32 = vadd.f32 %v4383_v14, %v756_v2  ;;  %v2627_v33 = vpop.f32.mrb[83].mxu1  ;;  %v6758_v2 = vpop.trf.xlu1 }
 0x7a9   :  { %5117 = vpow2.f32 %v3883_v3  ;;  %v2718_v44 = vadd.f32 %v2627_v33, %v755_v30  ;;  %v767_v14 = vpop.trf.xlu0 }
 0x7aa   :  { %v3886_v31 = vmul.f32 -1.442695, %v2719_v32 }
 0x7ab   :  { %v3885_v20 = vmul.f32 -1.442695, %v2718_v44  ;;  %v4386_v55 = vpop.f32.mrb[84].mxu1 }
 0x7ac   :  { %5119 = vpow2.f32 %v3886_v31  ;;  %v2721_v48 = vadd.f32 %v4386_v55, %v758_v28  ;;  %v2637_v47 = vpop.f32.mrb[85].mxu1  ;;  %v786_v31 = vpop.trf.xlu1 }
 0x7ad   :  { %5121 = vpow2.f32 %v3885_v20  ;;  %v2720_v41 = vadd.f32 %v2637_v47, %v757_v7 }
 0x7ae   :  { %v3888_v19 = vmul.f32 -1.442695, %v2721_v48 }
 0x7af   :  { %v3887_v60 = vmul.f32 -1.442695, %v2720_v41  ;;  %v4389_v15 = vpop.f32.mrb[86].mxu1 }
 0x7b0   :  { %5123 = vpow2.f32 %v3888_v19  ;;  %v2723_v12 = vadd.f32 %v4389_v15, %v760_v63  ;;  %v2647_v24 = vpop.f32.mrb[87].mxu1 }
 0x7b1   :  { %5125 = vpow2.f32 %v3887_v60  ;;  %v2722_v22 = vadd.f32 %v2647_v24, %v759_v16  ;;  %v768_v60 = vpop.trf.xlu0 }
 0x7b2   :  { %v5116_v49 = vpop.eup %5115  ;;  %v3890_v18 = vmul.f32 -1.442695, %v2723_v12 }
 0x7b3   :  { %v5118_v13 = vpop.eup %5117  ;;  %v2752_v53 = vadd.f32 1.0, %v5116_v49  ;;  %v3889_v5 = vmul.f32 -1.442695, %v2722_v22  ;;  %v4392_v30 = vpop.f32.mrb[88].mxu1 }
 0x7b4   :  { %v2751_v28 = vadd.f32 1.0, %v5118_v13  ;;  %5127 = vpow2.f32 %v3890_v18  ;;  %v2725_v7 = vadd.f32 %v4392_v30, %v762_v43  ;;  %v2657_v57 = vpop.f32.mrb[89].mxu1  ;;  %v787_v49 = vpop.trf.xlu1 }
 0x7b5   :  { %5129 = vrcp.f32 %v2752_v53  ;;  %v2724_v50 = vadd.f32 %v2657_v57, %v761_v59 }
 0x7b6   :  { %v5120_v4 = vpop.eup %5119  ;;  %5131 = vrcp.f32 %v2751_v28  ;;  %v3892_v63 = vmul.f32 -1.442695, %v2725_v7 }
 0x7b7   :  { %v5122_v61 = vpop.eup %5121  ;;  %v2754_v16 = vadd.f32 1.0, %v5120_v4  ;;  %5133 = vpow2.f32 %v3889_v5  ;;  %v3891_v40 = vmul.f32 -1.442695, %v2724_v50  ;;  %v4395_v3 = vpop.f32.mrb[90].mxu1 }
 0x7b8   :  { %v2753_v32 = vadd.f32 1.0, %v5122_v61  ;;  %5135 = vpow2.f32 %v3892_v63  ;;  %v2727_v33 = vadd.f32 %v4395_v3, %v764_v23  ;;  %v2667_v44 = vpop.f32.mrb[91].mxu1 }
 0x7b9   :  { %5137 = vrcp.f32 %v2754_v16  ;;  %v2726_v59 = vadd.f32 %v2667_v44, %v6756_v11 }
 0x7ba   :  { %v5124_v20 = vpop.eup %5123  ;;  %5139 = vrcp.f32 %v2753_v32 }
 0x7bb   :  { %v5126_v43 = vpop.eup %5125  ;;  %v2781_v55 = vadd.f32 1.0, %v5124_v20  ;;  %5141 = vpow2.f32 %v3891_v40  ;;  %v4398_v48 = vpop.f32.mrb[92].mxu1 }
 0x7bc   :  { %v2755_v47 = vadd.f32 1.0, %v5126_v43  ;;  %5143 = vtanh.f32 %v2727_v33  ;;  %v2729_v41 = vadd.f32 %v4398_v48, %v766_v26  ;;  %v2677_v19 = vpop.f32.mrb[93].mxu1  ;;  %v788_v40 = vpop.trf.xlu1 }
 0x7bd   :  { %5145 = vrcp.f32 %v2781_v55  ;;  %v2728_v23 = vadd.f32 %v2677_v19, %v765_v17 }
 0x7be   :  { %v5128_v15 = vpop.eup %5127  ;;  %5147 = vrcp.f32 %v2755_v47 }
 0x7bf   :  { %v5130_v12 = vpop.eup %5129  ;;  %v2783_v24 = vadd.f32 1.0, %v5128_v15  ;;  %5149 = vtanh.f32 %v2726_v59  ;;  %v4401_v22 = vpop.f32.mrb[94].mxu1 }
 0x7c0   :  { %v5132_v18 = vpop.eup %5131  ;;  %5151 = vtanh.f32 %v2729_v41  ;;  %v2731_v13 = vadd.f32 %v4401_v22, %v768_v60  ;;  %v2687_v53 = vpop.f32.mrb[95].mxu1 }
 0x7c1   :  { %v5134_v11 = vpop.eup %5133  ;;  %5153 = vrcp.f32 %v2783_v24  ;;  %v2730_v5 = vadd.f32 %v2687_v53, %v767_v14 }
 0x7c2   :  { %v5136_v30 = vpop.eup %5135  ;;  %v2782_v26 = vadd.f32 1.0, %v5134_v11  ;;  %5155 = vtanh.f32 %v2728_v23  ;;  %v3893_v28 = vmul.f32 -1.442695, %v2731_v13 }
 0x7c3   :  { %v5138_v7 = vpop.eup %5137  ;;  %v2785_v57 = vadd.f32 1.0, %v5136_v30  ;;  %5157 = vtanh.f32 %v2730_v5  ;;  %v4404_v17 = vpop.f32.mrb[96].mxu1 }
 0x7c4   :  { %v5140_v50 = vpop.eup %5139  ;;  %5159 = vrcp.f32 %v2782_v26  ;;  %v2733_v4 = vadd.f32 %v4404_v17, %v786_v31  ;;  %v2697_v63 = vpop.f32.mrb[97].mxu1 }
 0x7c5   :  { %v5142_v61 = vpop.eup %5141  ;;  %5161 = vrcp.f32 %v2785_v57  ;;  %v2732_v16 = vadd.f32 %v2697_v63, %v6758_v2 }
 0x7c6   :  { %v5144_v3 = vpop.eup %5143  ;;  %v2784_v32 = vadd.f32 1.0, %v5142_v61  ;;  %5163 = vpow2.f32 %v3893_v28  ;;  %v3895_v14 = vmul.f32 -1.442695, %v2733_v4 }
 0x7c7   :  { %v5146_v33 = vpop.eup %5145  ;;  %v2837_v44 = vmul.f32 %v5144_v3, %v5130_v12  ;;  %v3894_v20 = vmul.f32 -1.442695, %v2732_v16  ;;  %v4407_v43 = vpop.f32.mrb[98].mxu1 }
 0x7c8   :  { %v5148_v55 = vpop.eup %5147  ;;  %v2831_v59 = vmul.f32 %v5146_v33, %v6613_v10  ;;  %5165 = vrcp.f32 %v2784_v32  ;;  %v2735_v48 = vadd.f32 %v4407_v43, %v788_v40  ;;  %v2707_v31 = vpop.f32.mrb[99].mxu1 }
 0x7c9   :  { %v5150_v47 = vpop.eup %5149  ;;  %5167 = vpow2.f32 %v3895_v14  ;;  %v2734_v41 = vadd.f32 %v2707_v31, %v787_v49 }
 0x7ca   :  { %v5152_v19 = vpop.eup %5151  ;;  %v2836_v2 = vmul.f32 %v5150_v47, %v5132_v18  ;;  %5169 = vpow2.f32 %v3894_v20  ;;  %v3897_v60 = vmul.f32 -1.442695, %v2735_v48 }
 0x7cb   :  { %v5154_v15 = vpop.eup %5153  ;;  %v2839_v23 = vmul.f32 %v5152_v19, %v5138_v7  ;;  %v3896_v24 = vmul.f32 -1.442695, %v2734_v41 }
 0x7cc   :  { %v5156_v22 = vpop.eup %5155  ;;  %v2833_v12 = vmul.f32 %v5154_v15, %v6616_v9  ;;  %v6764_v13 = vadd.f32 %v2836_v2, %v2831_v59  ;;  %5171 = vpow2.f32 %v3897_v60 }
 0x7cd   :  { %v5158_v10 = vpop.eup %5157  ;;  %v2838_v53 = vmul.f32 %v5156_v22, %v5140_v50  ;;  %5173 = vpow2.f32 %v3896_v24 }
 0x7ce   :  { %v5160_v11 = vpop.eup %5159  ;;  %v2840_v5 = vmul.f32 %v5158_v10, %v5148_v55  ;;  %5175 = vtanh.f32 %v6764_v13 }
 0x7cf   :  { %v5162_v30 = vpop.eup %5161  ;;  %v2832_v49 = vmul.f32 %v5160_v11, %v6619_v56  ;;  %v6767_v18 = vadd.f32 %v2838_v53, %v2833_v12 }
 0x7d0   :  { %v5164_v26 = vpop.eup %5163  ;;  %v2835_v28 = vmul.f32 %v5162_v30, %v6621_v21 }
 0x7d1   :  { %v6770_v7 = vadd.f32 %v2837_v44, %v2832_v49  ;;  %v2816_v9 = vadd.f32 1.0, %v5164_v26  ;;  %5177 = vtanh.f32 %v6767_v18 }
 0x7d2   :  { %v5166_v57 = vpop.eup %5165  ;;  %v6772_v17 = vadd.f32 %v2840_v5, %v2835_v28 }
 0x7d3   :  { %v5168_v4 = vpop.eup %5167  ;;  %v2834_v50 = vmul.f32 %v5166_v57, %v6627_v1  ;;  %5179 = vtanh.f32 %v6770_v7 }
 0x7d4   :  { %v5170_v63 = vpop.eup %5169  ;;  %v2818_v56 = vadd.f32 1.0, %v5168_v4  ;;  %5181 = vrcp.f32 %v2816_v9 }
 0x7d5   :  { %v6778_v61 = vadd.f32 %v2839_v23, %v2834_v50  ;;  %v2817_v21 = vadd.f32 1.0, %v5170_v63 }
 0x7d6   :  { %v5172_v16 = vpop.eup %5171  ;;  %5183 = vrcp.f32 %v2818_v56 }
 0x7d7   :  { %v5174_v40 = vpop.eup %5173  ;;  %5185 = vrcp.f32 %v2817_v21  ;;  %v2820_v1 = vadd.f32 1.0, %v5172_v16 }
 0x7d8   :  { %v2819_v3 = vadd.f32 1.0, %v5174_v40  ;;  %5187 = vtanh.f32 %v6778_v61  ;;  %v5176_v32 = vpop.eup %5175 }
 0x7da   :  { %5189 = vrcp.f32 %v2819_v3 }
 0x7db   :  { %v5178_v14 = vpop.eup %5177  ;;  %5191 = vrcp.f32 %v2820_v1 }
 0x7dc   :  { %5193 = vtanh.f32 %v6772_v17 }
 0x7dd   :  { %v5180_v33 = vpop.eup %5179 }
 0x7de   :  { %v5182_v44 = vpop.eup %5181 }
 0x7df   :  { %v2851_v59 = vmul.f32 %v5182_v44, %v5176_v32 }
 0x7e0   :  { %v5184_v20 = vpop.eup %5183 }
 0x7e1   :  { %v5186_v43 = vpop.eup %5185  ;;  %v2853_v41 = vmul.f32 %v5184_v20, %v5178_v14 }
 0x7e2   :  { %v5188_v55 = vpop.eup %5187  ;;  %v2852_v48 = vmul.f32 %v5186_v43, %v5180_v33 }
 0x7e4   :  { %v5190_v31 = vpop.eup %5189  ;;  %v4678_v47 = vpack.c.bf16 %v2852_v48, %v2851_v59 }
 0x7e5   :  { %v2854_v19 = vmul.f32 %v5190_v31, %v5188_v55  ;;  %v5192_v60 = vpop.eup %5191 }
 0x7e6   :  { %4679 = vmatprep.subr.bf16.mxu0 %v4678_v47  ;;  %v5194_v15 = vpop.eup %5193 }
 0x7e7   :  { %v4682_v2 = vpack.c.bf16 %v2854_v19, %v2853_v41  ;;  %4681 = vmatpush3.bf16.msra.mxu0 %v4678_v47  ;;  %v2855_v23 = vmul.f32 %v5194_v15, %v5192_v60 }
 0x7e9   :  { %4683 = vmatprep.subr.bf16.mxu0 %v4682_v2 }
 0x7eb   :  { %4685 = vmatpush3.bf16.msra.mxu0 %v4682_v2 }
 0x7ec   :  { %4416 = vmatprep.subr.mxu0 %v2855_v23 }
 0x7ef   :  { %4417 = vmatpush3.msra.mxu0 %v2855_v23 }
 0x7f0   :  { %4419 = vmatmul.mubr.msk.f32.vlgmr.msra.gmra.mrb[24].mxu0 %vm965_vm1, %v6547_v8  ;;  %v825_v8 = vpop.trf.xlu1 }
 0x7f1   :  { %4421 = vmatprep.mubr.msk.f32.mxu0 %vm965_vm1, %v6554_v27 }
 0x7f4   :  { %4422 = vmatmul.mubr.msk.f32.gmra.mrb[26].mxu0 %vm965_vm1, %v6638_v46  ;;  %v826_v27 = vpop.trf.xlu1 }
 0x7f5   :  { %4424 = vmatprep.mubr.msk.f32.mxu0 %vm965_vm1, %v6645_v35 }
 0x7f8   :  { %4425 = vmatmul.mubr.msk.f32.gmra.mrb[28].mxu0 %vm965_vm1, %v6652_v34  ;;  %v827_v24 = vpop.trf.xlu1 }
 0x7f9   :  { %4427 = vmatprep.mubr.msk.f32.mxu0 %vm965_vm1, %v6659_v0 }
 0x7fc   :  { %4428 = vmatmul.mubr.msk.f32.gmra.mrb[30].mxu0 %vm965_vm1, %v6666_v39  ;;  %v828_v22 = vpop.trf.xlu1 }
 0x7fd   :  { %4430 = vmatprep.mubr.msk.f32.mxu0 %vm965_vm1, %v6673_v45 }
 0x800   :  { %4431 = vmatmul.mubr.msk.f32.gmra.mrb[32].mxu0 %vm965_vm1, %v6680_v6  ;;  %v829_v12 = vpop.trf.xlu1 }
 0x801   :  { %4433 = vmatprep.mubr.msk.f32.mxu0 %vm965_vm1, %v6687_v37 }
 0x804   :  { %4434 = vmatmul.mubr.msk.f32.gmra.mrb[34].mxu0 %vm965_vm1, %v6694_v29  ;;  %v830_v10 = vpop.trf.xlu1 }
 0x805   :  { %4436 = vmatprep.mubr.msk.f32.mxu0 %vm965_vm1, %v6701_v25 }
 0x808   :  { %4437 = vmatmul.mubr.msk.f32.gmra.mrb[36].mxu0 %vm965_vm1, %v6708_v51  ;;  %v831_v53 = vpop.trf.xlu1 }
 0x809   :  { %4439 = vmatprep.mubr.msk.f32.mxu0 %vm965_vm1, %v6715_v38 }
 0x80c   :  { %4440 = vmatmul.mubr.msk.f32.gmra.mrb[38].mxu0 %vm965_vm1, %v6722_v62  ;;  %v832_v11 = vpop.trf.xlu1 }
 0x80d   :  { %4442 = vmatprep.mubr.msk.f32.mxu0 %vm965_vm1, %v6729_v36 }
 0x810   :  { %4443 = vmatmul.mubr.msk.f32.gmra.mrb[40].mxu0 %vm965_vm1, %v6736_v58  ;;  %v833_v5 = vpop.trf.xlu1 }
 0x811   :  { %4445 = vmatprep.mubr.msk.f32.mxu0 %vm965_vm1, %v6743_v54 }
 0x814   :  { %4446 = vmatmul.mubr.msk.f32.gmra.mrb[42].mxu0 %vm965_vm1, %v6750_v42  ;;  %v834_v30 = vpop.trf.xlu1 }
 0x815   :  { %4458 = vmatprep.mubr.msk.f32.mxu0 %vm965_vm1, %v6595_v52 }
 0x818   :  { %v6822_v49 = vpop.trf.xlu1 }
 0x81c   :  { %v836_v26 = vpop.trf.xlu1 }
 0x820   :  { %v6824_v28 = vpop.trf.xlu1 }
 0x824   :  { %v6826_v57 = vpop.trf.xlu1 }
 0x828   :  { %v6828_v16 = vpop.trf.xlu1 }
 0x82c   :  { %v840_v55 = vpop.trf.xlu1 }
 0x8c3   :  { %v4420_v9 = vpop.f32.mrb[24].mxu0 }
 0x8c4   :  { %v3022_v4 = vadd.f32 %v4420_v9, %v826_v27  ;;  %v2922_v52 = vpop.f32.mrb[25].mxu0 }
 0x8c5   :  { %v3021_v50 = vadd.f32 %v2922_v52, %v825_v8 }
 0x8c6   :  { %v3919_v63 = vmul.f32 -1.442695, %v3022_v4 }
 0x8c7   :  { %v3918_v56 = vmul.f32 -1.442695, %v3021_v50  ;;  %v4423_v21 = vpop.f32.mrb[26].mxu0 }
 0x8c8   :  { %5195 = vpow2.f32 %v3919_v63  ;;  %v3024_v40 = vadd.f32 %v4423_v21, %v828_v22  ;;  %v2932_v3 = vpop.f32.mrb[27].mxu0 }
 0x8c9   :  { %5197 = vpow2.f32 %v3918_v56  ;;  %v3023_v1 = vadd.f32 %v2932_v3, %v827_v24  ;;  %v857_v24 = vpop.trf.xlu1 }
 0x8ca   :  { %v3921_v32 = vmul.f32 -1.442695, %v3024_v40 }
 0x8cb   :  { %v3920_v14 = vmul.f32 -1.442695, %v3023_v1  ;;  %v4426_v33 = vpop.f32.mrb[28].mxu0 }
 0x8cc   :  { %5199 = vpow2.f32 %v3921_v32  ;;  %v3026_v44 = vadd.f32 %v4426_v33, %v830_v10  ;;  %v2942_v20 = vpop.f32.mrb[29].mxu0 }
 0x8cd   :  { %5201 = vpow2.f32 %v3920_v14  ;;  %v3025_v43 = vadd.f32 %v2942_v20, %v829_v12  ;;  %v858_v3 = vpop.trf.xlu1 }
 0x8ce   :  { %v3923_v59 = vmul.f32 -1.442695, %v3026_v44 }
 0x8cf   :  { %v3922_v48 = vmul.f32 -1.442695, %v3025_v43  ;;  %v4429_v31 = vpop.f32.mrb[30].mxu0 }
 0x8d0   :  { %5203 = vpow2.f32 %v3923_v59  ;;  %v3028_v47 = vadd.f32 %v4429_v31, %v832_v11  ;;  %v2952_v41 = vpop.f32.mrb[31].mxu0 }
 0x8d1   :  { %5205 = vpow2.f32 %v3922_v48  ;;  %v3027_v19 = vadd.f32 %v2952_v41, %v831_v53 }
 0x8d2   :  { %v5196_v2 = vpop.eup %5195  ;;  %v3925_v60 = vmul.f32 -1.442695, %v3028_v47  ;;  %v859_v47 = vpop.trf.xlu1 }
 0x8d3   :  { %v5198_v15 = vpop.eup %5197  ;;  %v3057_v23 = vadd.f32 1.0, %v5196_v2  ;;  %v3924_v8 = vmul.f32 -1.442695, %v3027_v19  ;;  %v4432_v27 = vpop.f32.mrb[32].mxu0 }
 0x8d4   :  { %v3056_v22 = vadd.f32 1.0, %v5198_v15  ;;  %5207 = vpow2.f32 %v3925_v60  ;;  %v3030_v10 = vadd.f32 %v4432_v27, %v834_v30  ;;  %v2962_v12 = vpop.f32.mrb[33].mxu0 }
 0x8d5   :  { %5209 = vrcp.f32 %v3057_v23  ;;  %v3029_v9 = vadd.f32 %v2962_v12, %v833_v5 }
 0x8d6   :  { %v5200_v4 = vpop.eup %5199  ;;  %5211 = vrcp.f32 %v3056_v22  ;;  %v3927_v52 = vmul.f32 -1.442695, %v3030_v10 }
 0x8d7   :  { %v5202_v11 = vpop.eup %5201  ;;  %v3059_v50 = vadd.f32 1.0, %v5200_v4  ;;  %5213 = vpow2.f32 %v3924_v8  ;;  %v3926_v53 = vmul.f32 -1.442695, %v3029_v9  ;;  %v4435_v63 = vpop.f32.mrb[34].mxu0 }
 0x8d8   :  { %v3058_v56 = vadd.f32 1.0, %v5202_v11  ;;  %5215 = vpow2.f32 %v3927_v52  ;;  %v3032_v21 = vadd.f32 %v4435_v63, %v836_v26  ;;  %v2972_v40 = vpop.f32.mrb[35].mxu0  ;;  %v860_v4 = vpop.trf.xlu1 }
 0x8d9   :  { %5217 = vrcp.f32 %v3059_v50  ;;  %v3031_v5 = vadd.f32 %v2972_v40, %v6822_v49 }
 0x8da   :  { %v5204_v1 = vpop.eup %5203  ;;  %5219 = vrcp.f32 %v3058_v56 }
 0x8db   :  { %v5206_v30 = vpop.eup %5205  ;;  %v3086_v32 = vadd.f32 1.0, %v5204_v1  ;;  %5221 = vpow2.f32 %v3926_v53  ;;  %v4438_v14 = vpop.f32.mrb[36].mxu0 }
 0x8dc   :  { %v3060_v33 = vadd.f32 1.0, %v5206_v30  ;;  %5223 = vtanh.f32 %v3032_v21  ;;  %v3034_v44 = vadd.f32 %v4438_v14, %v6826_v57  ;;  %v2982_v20 = vpop.f32.mrb[37].mxu0 }
 0x8dd   :  { %5225 = vrcp.f32 %v3086_v32  ;;  %v3033_v26 = vadd.f32 %v2982_v20, %v6824_v28 }
 0x8de   :  { %v5208_v43 = vpop.eup %5207  ;;  %5227 = vrcp.f32 %v3060_v33 }
 0x8df   :  { %v5210_v59 = vpop.eup %5209  ;;  %v3088_v48 = vadd.f32 1.0, %v5208_v43  ;;  %5229 = vtanh.f32 %v3031_v5  ;;  %v4441_v31 = vpop.f32.mrb[38].mxu0 }
 0x8e0   :  { %v5212_v41 = vpop.eup %5211  ;;  %5231 = vtanh.f32 %v3034_v44  ;;  %v3036_v19 = vadd.f32 %v4441_v31, %v840_v55  ;;  %v2992_v49 = vpop.f32.mrb[39].mxu0 }
 0x8e1   :  { %v5214_v2 = vpop.eup %5213  ;;  %5233 = vrcp.f32 %v3088_v48  ;;  %v3035_v60 = vadd.f32 %v2992_v49, %v6828_v16 }
 0x8e2   :  { %v5216_v57 = vpop.eup %5215  ;;  %v3087_v15 = vadd.f32 1.0, %v5214_v2  ;;  %5235 = vtanh.f32 %v3033_v26  ;;  %v3928_v23 = vmul.f32 -1.442695, %v3036_v19 }
 0x8e3   :  { %v5218_v8 = vpop.eup %5217  ;;  %v3090_v27 = vadd.f32 1.0, %v5216_v57  ;;  %5237 = vtanh.f32 %v3035_v60  ;;  %v4444_v28 = vpop.f32.mrb[40].mxu0 }
 0x8e4   :  { %v5220_v22 = vpop.eup %5219  ;;  %5239 = vrcp.f32 %v3087_v15  ;;  %v3038_v10 = vadd.f32 %v4444_v28, %v858_v3  ;;  %v3002_v12 = vpop.f32.mrb[41].mxu0 }
 0x8e5   :  { %v5222_v9 = vpop.eup %5221  ;;  %5241 = vrcp.f32 %v3090_v27  ;;  %v3037_v55 = vadd.f32 %v3002_v12, %v857_v24 }
 0x8e6   :  { %v5224_v52 = vpop.eup %5223  ;;  %v3089_v11 = vadd.f32 1.0, %v5222_v9  ;;  %5243 = vpow2.f32 %v3928_v23  ;;  %v3930_v16 = vmul.f32 -1.442695, %v3038_v10 }
 0x8e7   :  { %v5226_v50 = vpop.eup %5225  ;;  %v3142_v53 = vmul.f32 %v5224_v52, %v5210_v59  ;;  %v3929_v63 = vmul.f32 -1.442695, %v3037_v55  ;;  %v4447_v56 = vpop.f32.mrb[42].mxu0 }
 0x8e8   :  { %v5228_v21 = vpop.eup %5227  ;;  %v3136_v40 = vmul.f32 %v5226_v50, %v6764_v13  ;;  %5245 = vrcp.f32 %v3089_v11  ;;  %v3040_v1 = vadd.f32 %v4447_v56, %v860_v4  ;;  %v3012_v30 = vpop.f32.mrb[43].mxu0 }
 0x8e9   :  { %v5230_v3 = vpop.eup %5229  ;;  %5247 = vpow2.f32 %v3930_v16  ;;  %v3039_v32 = vadd.f32 %v3012_v30, %v859_v47 }
 0x8ea   :  { %v5232_v5 = vpop.eup %5231  ;;  %v3141_v24 = vmul.f32 %v5230_v3, %v5212_v41  ;;  %5249 = vpow2.f32 %v3929_v63  ;;  %v3932_v14 = vmul.f32 -1.442695, %v3040_v1 }
 0x8eb   :  { %v5234_v33 = vpop.eup %5233  ;;  %v3144_v44 = vmul.f32 %v5232_v5, %v5218_v8  ;;  %v3931_v20 = vmul.f32 -1.442695, %v3039_v32 }
 0x8ec   :  { %v5236_v43 = vpop.eup %5235  ;;  %v3138_v26 = vmul.f32 %v5234_v33, %v6767_v18  ;;  %v6836_v59 = vadd.f32 %v3141_v24, %v3136_v40  ;;  %5251 = vpow2.f32 %v3932_v14  ;;  %v5395_v14 = vld [vmem:[%s6956_s6 + $0x8] sm:$0xff]  ;;  %v6973_v33 = vmov 0.0  }
 0x8ed   :  { %v5238_v13 = vpop.eup %5237  ;;  %v3143_v48 = vmul.f32 %v5236_v43, %v5220_v22  ;;  %5253 = vpow2.f32 %v3931_v20 }
 0x8ee   :  { %v5240_v31 = vpop.eup %5239  ;;  %v3145_v19 = vmul.f32 %v5238_v13, %v5228_v21  ;;  %5255 = vtanh.f32 %v6836_v59 }
 0x8ef   :  { %v5242_v49 = vpop.eup %5241  ;;  %v3137_v47 = vmul.f32 %v5240_v31, %v6770_v7  ;;  %v6839_v41 = vadd.f32 %v3143_v48, %v3138_v26 }
 0x8f0   :  { %v5244_v2 = vpop.eup %5243  ;;  %v3140_v60 = vmul.f32 %v5242_v49, %v6772_v17 }
 0x8f1   :  { %v6842_v57 = vadd.f32 %v3142_v53, %v3137_v47  ;;  %v3121_v18 = vadd.f32 1.0, %v5244_v2  ;;  %5257 = vtanh.f32 %v6839_v41 }
 0x8f2   :  { %v5246_v15 = vpop.eup %5245  ;;  %v6844_v23 = vadd.f32 %v3145_v19, %v3140_v60 }
 0x8f3   :  { %v5248_v8 = vpop.eup %5247  ;;  %v3139_v27 = vmul.f32 %v5246_v15, %v6778_v61  ;;  %5259 = vtanh.f32 %v6842_v57 }
 0x8f4   :  { %v5250_v28 = vpop.eup %5249  ;;  %v3123_v7 = vadd.f32 1.0, %v5248_v8  ;;  %5261 = vrcp.f32 %v3121_v18 }
 0x8f5   :  { %v6850_v22 = vadd.f32 %v3144_v44, %v3139_v27  ;;  %v3122_v17 = vadd.f32 1.0, %v5250_v28 }
 0x8f6   :  { %v5252_v10 = vpop.eup %5251  ;;  %5263 = vrcp.f32 %v3123_v7 }
 0x8f7   :  { %v5254_v12 = vpop.eup %5253  ;;  %5265 = vrcp.f32 %v3122_v17  ;;  %v3125_v61 = vadd.f32 1.0, %v5252_v10 }
 0x8f8   :  { %v3124_v9 = vadd.f32 1.0, %v5254_v12  ;;  %5267 = vtanh.f32 %v6850_v22  ;;  %v5256_v55 = vpop.eup %5255 }
 0x8fa   :  { %5269 = vrcp.f32 %v3124_v9 }
 0x8fb   :  { %v5258_v4 = vpop.eup %5257  ;;  %5271 = vrcp.f32 %v3125_v61 }
 0x8fc   :  { %5273 = vtanh.f32 %v6844_v23 }
 0x8fd   :  { %v5260_v52 = vpop.eup %5259 }
 0x8fe   :  { %v5262_v11 = vpop.eup %5261 }
 0x8ff   :  { %v3156_v63 = vmul.f32 %v5262_v11, %v5256_v55 }
 0x900   :  { %v5264_v16 = vpop.eup %5263 }
 0x901   :  { %v5266_v50 = vpop.eup %5265  ;;  %v3158_v1 = vmul.f32 %v5264_v16, %v5258_v4 }
 0x902   :  { %v5268_v53 = vpop.eup %5267  ;;  %v3157_v56 = vmul.f32 %v5266_v50, %v5260_v52 }
 0x904   :  { %v5270_v21 = vpop.eup %5269  ;;  %v4686_v40 = vpack.c.bf16 %v3157_v56, %v3156_v63 }
 0x905   :  { %v3159_v30 = vmul.f32 %v5270_v21, %v5268_v53  ;;  %v5272_v32 = vpop.eup %5271  ;;  %v6923_v21 = vpop.trf.xlu1 }
 0x906   :  { %4687 = vmatprep.subr.bf16.mxu0 %v4686_v40  ;;  %4700 = vmatprep.subr.bf16.mxu1 %v4686_v40  ;;  %v5274_v5 = vpop.eup %5273 }
 0x907   :  { %v4690_v3 = vpack.c.bf16 %v3159_v30, %v3158_v1  ;;  %4689 = vmatpush3.bf16.msra.mxu0 %v4686_v40  ;;  %4703 = vmatpush3.bf16.msra.mxu1 %v4686_v40  ;;  %v3160_v24 = vmul.f32 %v5274_v5, %v5272_v32 }
 0x909   :  { %4691 = vmatprep.subr.bf16.mxu0 %v4690_v3  ;;  %4701 = vmatprep.subr.bf16.mxu1 %v4690_v3 }
 0x90b   :  { %4693 = vmatpush3.bf16.msra.mxu0 %v4690_v3  ;;  %4704 = vmatpush3.bf16.msra.mxu1 %v4690_v3 }
 0x90c   :  { %4456 = vmatprep.subr.mxu0 %v3160_v24  ;;  %4702 = vmatprep.subr.mxu1 %v3160_v24 }
 0x90f   :  { %4457 = vmatpush3.msra.mxu0 %v3160_v24  ;;  %4705 = vmatpush3.msra.mxu1 %v3160_v24 }
 0x910   :  { %4459 = vmatmul.mubr.msk.f32.vlgmr.msra.gmra.mrb[44].mxu0 %vm965_vm1, %v5395_v14  ;;  %4462 = vmatmul.mubr.msk.f32.vlgmr.msra.gmra.mrb[100].mxu1 %vm965_vm1, %v6638_v46  ;;  %v897_v46 = vpop.trf.xlu0 }
 0x911   :  { %4464 = vmatprep.mubr.msk.f32.mxu1 %vm965_vm1, %v6645_v35  ;;  %4488 = vmatprep.subr.mxu0 %v6973_v33 }
 0x912   :  { %4490 = vmatprep.mubr.msk.f32.mxu0 %vm5422_vm8, %v6973_v33 }
 0x914   :  { %4465 = vmatmul.mubr.msk.f32.gmra.mrb[102].mxu1 %vm965_vm1, %v6652_v34  ;;  %v898_v35 = vpop.trf.xlu0 }
 0x915   :  { %4467 = vmatprep.mubr.msk.f32.mxu1 %vm965_vm1, %v6659_v0  ;;  %v3504_v0 = vld [vmem:[%s6958_s8] sm:$0xf] }
 0x916   :  { %4489 = vmatpush3.msk.msra.mxu0 %vm3509_vm6, %v3504_v0 }
 0x918   :  { %4468 = vmatmul.mubr.msk.f32.gmra.mrb[104].mxu1 %vm965_vm1, %v6666_v39  ;;  %v899_v34 = vpop.trf.xlu0  ;;  %v3503_v39 = vld [vmem:[%s6952_s2] sm:$0x3] }
 0x919   :  { %4470 = vmatprep.mubr.msk.f32.mxu1 %vm965_vm1, %v6673_v45  ;;  %v3498_v45 = vld [vmem:[%s6957_s7] sm:$0xff]  ;;  %4491 = vmatmul.mubr.msk.f32.vlgmr.msra.gmra.mrb[46].mxu0 %vm3505_vm7, %v3503_v39 }
 0x91a   :  { %4503 = vmatprep.mubr.msk.f32.mxu0 %vm5422_vm8, %v6973_v33 }
 0x91c   :  { %4471 = vmatmul.mubr.msk.f32.gmra.mrb[106].mxu1 %vm965_vm1, %v6680_v6  ;;  %v3499_v6 = vld [vmem:[%s6957_s7 + $0x8] sm:$0xff] }
 0x91d   :  { %4473 = vmatprep.mubr.msk.f32.mxu1 %vm965_vm1, %v6687_v37  ;;  %v5423_v37 = vmov 0.0|0.0  }
 0x91e   :  { %4694 = vmatprep.subr.bf16.mxu0 %v5423_v37 }
 0x920   :  { %4474 = vmatmul.mubr.msk.f32.gmra.mrb[108].mxu1 %vm965_vm1, %v6694_v29  ;;  %v4695_v29 = vpack.c.bf16 %v3499_v6, %v3498_v45  ;;  %v930_v45 = vpop.trf.xlu1 }
 0x921   :  { %4476 = vmatprep.mubr.msk.f32.mxu1 %vm965_vm1, %v6701_v25  ;;  %v3500_v25 = vld [vmem:[%s6957_s7 + $0x10] sm:$0xff] }
 0x922   :  { %4696 = vmatpush3.bf16.msra.mxu0 %v4695_v29 }
 0x923   :  { %4697 = vmatprep.subr.bf16.mxu0 %v5423_v37 }
 0x924   :  { %4477 = vmatmul.mubr.msk.f32.gmra.mrb[110].mxu1 %vm965_vm1, %v6708_v51  ;;  %v3501_v51 = vld [vmem:[%s6957_s7 + $0x18] sm:$0xff] }
 0x925   :  { %4479 = vmatprep.mubr.msk.f32.mxu1 %vm965_vm1, %v6715_v38  ;;  %v900_v38 = vpop.trf.xlu0 }
 0x928   :  { %4480 = vmatmul.mubr.msk.f32.gmra.mrb[112].mxu1 %vm965_vm1, %v6722_v62  ;;  %v4698_v62 = vpack.c.bf16 %v3501_v51, %v3500_v25 }
 0x929   :  { %4482 = vmatprep.mubr.msk.f32.mxu1 %vm965_vm1, %v6729_v36  ;;  %v3502_v36 = vld [vmem:[%s6957_s7 + $0x20] sm:$0xff] }
 0x92a   :  { %4699 = vmatpush3.bf16.msra.mxu0 %v4698_v62 }
 0x92b   :  { %4501 = vmatprep.subr.mxu0 %v6973_v33 }
 0x92c   :  { %4483 = vmatmul.mubr.msk.f32.gmra.mrb[114].mxu1 %vm965_vm1, %v6736_v58  ;;  %v901_v58 = vpop.trf.xlu0 }
 0x92d   :  { %4485 = vmatprep.mubr.msk.f32.mxu1 %vm965_vm1, %v6743_v54 }
 0x92e   :  { %4502 = vmatpush3.msra.mxu0 %v3502_v36 }
 0x930   :  { %4486 = vmatmul.mubr.msk.f32.gmra.mrb[116].mxu1 %vm965_vm1, %v6750_v42  ;;  %v902_v54 = vpop.trf.xlu0 }
 0x934   :  { %v903_v42 = vpop.trf.xlu0 }
 0x938   :  { %v904_v44 = vpop.trf.xlu0 }
 0x93c   :  { %v905_v20 = vpop.trf.xlu0 }
 0x940   :  { %v906_v43 = vpop.trf.xlu0 }
 0x944   :  { %v6917_v26 = vpop.trf.xlu0 }
 0x948   :  { %v6919_v13 = vpop.trf.xlu0 }
 0x94c   :  { %v6921_v17 = vpop.trf.xlu0 }
 0x950   :  { %v910_v50 = vpop.trf.xlu0 }
 0x954   :  { %v911_v33 = vpop.trf.xlu0 }
 0x9e3   :  { %v4460_v48 = vpop.f32.mrb[44].mxu0  ;;  %v4463_v31 = vpop.f32.mrb[100].mxu1 }
 0x9e4   :  { %v3327_v19 = vadd.f32 %v4460_v48, %v898_v35  ;;  %v3227_v49 = vpop.f32.mrb[45].mxu0  ;;  %v3329_v47 = vadd.f32 %v4463_v31, %v900_v38  ;;  %v3237_v2 = vpop.f32.mrb[101].mxu1 }
 0x9e5   :  { %v3326_v60 = vadd.f32 %v3227_v49, %v897_v46  ;;  %v3328_v15 = vadd.f32 %v3237_v2, %v899_v34  ;;  %v931_v31 = vpop.trf.xlu1 }
 0x9e6   :  { %v3954_v18 = vmul.f32 -1.442695, %v3327_v19  ;;  %v3956_v8 = vmul.f32 -1.442695, %v3329_v47 }
 0x9e7   :  { %v3953_v27 = vmul.f32 -1.442695, %v3326_v60  ;;  %v3955_v28 = vmul.f32 -1.442695, %v3328_v15  ;;  %v4466_v7 = vpop.f32.mrb[102].mxu1 }
 0x9e8   :  { %5275 = vpow2.f32 %v3954_v18  ;;  %v3331_v10 = vadd.f32 %v4466_v7, %v902_v54  ;;  %v3247_v12 = vpop.f32.mrb[103].mxu1  ;;  %v912_v54 = vpop.trf.xlu0 }
 0x9e9   :  { %5277 = vpow2.f32 %v3953_v27  ;;  %v3330_v9 = vadd.f32 %v3247_v12, %v901_v58 }
 0x9ea   :  { %5279 = vpow2.f32 %v3956_v8  ;;  %v3958_v61 = vmul.f32 -1.442695, %v3331_v10 }
 0x9eb   :  { %5281 = vpow2.f32 %v3955_v28  ;;  %v3957_v55 = vmul.f32 -1.442695, %v3330_v9  ;;  %v4469_v4 = vpop.f32.mrb[104].mxu1 }
 0x9ec   :  { %5283 = vpow2.f32 %v3958_v61  ;;  %v3333_v52 = vadd.f32 %v4469_v4, %v904_v44  ;;  %v3257_v11 = vpop.f32.mrb[105].mxu1  ;;  %v932_v61 = vpop.trf.xlu1 }
 0x9ed   :  { %5285 = vpow2.f32 %v3957_v55  ;;  %v3332_v16 = vadd.f32 %v3257_v11, %v903_v42 }
 0x9ee   :  { %v3960_v53 = vmul.f32 -1.442695, %v3333_v52 }
 0x9ef   :  { %v3959_v63 = vmul.f32 -1.442695, %v3332_v16  ;;  %v4472_v56 = vpop.f32.mrb[106].mxu1 }
 0x9f0   :  { %5287 = vpow2.f32 %v3960_v53  ;;  %v3335_v40 = vadd.f32 %v4472_v56, %v906_v43  ;;  %v3267_v1 = vpop.f32.mrb[107].mxu1 }
 0x9f1   :  { %5289 = vpow2.f32 %v3959_v63  ;;  %v3334_v24 = vadd.f32 %v3267_v1, %v905_v20 }
 0x9f2   :  { %v5276_v30 = vpop.eup %5275  ;;  %v3962_v3 = vmul.f32 -1.442695, %v3335_v40 }
 0x9f3   :  { %v5278_v32 = vpop.eup %5277  ;;  %v3362_v5 = vadd.f32 1.0, %v5276_v30  ;;  %v4475_v14 = vpop.f32.mrb[108].mxu1  ;;  %v3961_v51 = vmul.f32 -1.442695, %v3334_v24 }
 0x9f4   :  { %v5280_v46 = vpop.eup %5279  ;;  %v3361_v35 = vadd.f32 1.0, %v5278_v32  ;;  %5291 = vpow2.f32 %v3962_v3  ;;  %v3277_v34 = vpop.f32.mrb[109].mxu1  ;;  %v3337_v36 = vadd.f32 %v4475_v14, %v6919_v13 }
 0x9f5   :  { %v5282_v0 = vpop.eup %5281  ;;  %5293 = vrcp.f32 %v3362_v5  ;;  %v3364_v39 = vadd.f32 1.0, %v5280_v46  ;;  %v3336_v43 = vadd.f32 %v3277_v34, %v6917_v26 }
 0x9f6   :  { %v5284_v6 = vpop.eup %5283  ;;  %5295 = vrcp.f32 %v3361_v35  ;;  %v3363_v37 = vadd.f32 1.0, %v5282_v0 }
 0x9f7   :  { %v5286_v29 = vpop.eup %5285  ;;  %5297 = vrcp.f32 %v3364_v39  ;;  %v3391_v25 = vadd.f32 1.0, %v5284_v6  ;;  %v4478_v38 = vpop.f32.mrb[110].mxu1 }
 0x9f8   :  { %5299 = vrcp.f32 %v3363_v37  ;;  %v3365_v62 = vadd.f32 1.0, %v5286_v29  ;;  %v3287_v58 = vpop.f32.mrb[111].mxu1  ;;  %v3339_v49 = vadd.f32 %v4478_v38, %v910_v50 }
 0x9f9   :  { %5301 = vrcp.f32 %v3391_v25  ;;  %v3338_v13 = vadd.f32 %v3287_v58, %v6921_v17 }
 0x9fa   :  { %v5288_v42 = vpop.eup %5287  ;;  %5303 = vrcp.f32 %v3365_v62 }
 0x9fb   :  { %v5290_v44 = vpop.eup %5289  ;;  %v3393_v20 = vadd.f32 1.0, %v5288_v42  ;;  %5305 = vpow2.f32 %v3961_v51  ;;  %v4481_v48 = vpop.f32.mrb[112].mxu1 }
 0x9fc   :  { %v3392_v19 = vadd.f32 1.0, %v5290_v44  ;;  %5307 = vtanh.f32 %v3337_v36  ;;  %v3341_v47 = vadd.f32 %v4481_v48, %v912_v54  ;;  %v3297_v2 = vpop.f32.mrb[113].mxu1 }
 0x9fd   :  { %5309 = vrcp.f32 %v3393_v20  ;;  %v3340_v26 = vadd.f32 %v3297_v2, %v911_v33 }
 0x9fe   :  { %v5292_v60 = vpop.eup %5291  ;;  %5311 = vrcp.f32 %v3392_v19  ;;  %v3963_v8 = vmul.f32 -1.442695, %v3341_v47 }
 0x9ff   :  { %v5294_v15 = vpop.eup %5293  ;;  %v3395_v18 = vadd.f32 1.0, %v5292_v60  ;;  %5313 = vtanh.f32 %v3336_v43  ;;  %v4484_v27 = vpop.f32.mrb[114].mxu1 }
 0xa00   :  { %v5296_v28 = vpop.eup %5295  ;;  %5315 = vtanh.f32 %v3339_v49  ;;  %v3343_v7 = vadd.f32 %v4484_v27, %v930_v45  ;;  %v3307_v10 = vpop.f32.mrb[115].mxu1 }
 0xa01   :  { %v5298_v12 = vpop.eup %5297  ;;  %5317 = vrcp.f32 %v3395_v18  ;;  %v3342_v9 = vadd.f32 %v3307_v10, %v6923_v21 }
 0xa02   :  { %v5300_v55 = vpop.eup %5299  ;;  %5319 = vtanh.f32 %v3338_v13  ;;  %v3965_v4 = vmul.f32 -1.442695, %v3343_v7 }
 0xa03   :  { %v5302_v52 = vpop.eup %5301  ;;  %5321 = vpow2.f32 %v3963_v8  ;;  %v3964_v17 = vmul.f32 -1.442695, %v3342_v9  ;;  %v4487_v11 = vpop.f32.mrb[116].mxu1 }
 0xa04   :  { %v5304_v16 = vpop.eup %5303  ;;  %5323 = vtanh.f32 %v3340_v26  ;;  %v3345_v50 = vadd.f32 %v4487_v11, %v932_v61  ;;  %v3317_v53 = vpop.f32.mrb[117].mxu1  ;;  %v3441_v24 = vmul.f32 %v5302_v52, %v6836_v59  ;;  %v3971_v52 = vld [vmem:[%s6959_s9] ss:$0 sm:$0xff] }
 0xa05   :  { %v5306_v63 = vpop.eup %5305  ;;  %5325 = vpow2.f32 %v3965_v4  ;;  %v3344_v56 = vadd.f32 %v3317_v53, %v931_v31  ;;  %v3579_v9 = vpop.f32.mrb[46].mxu0 }
 0xa06   :  { %v5308_v40 = vpop.eup %5307  ;;  %v3394_v1 = vadd.f32 1.0, %v5306_v63  ;;  %5327 = vpow2.f32 %v3964_v17  ;;  %v3967_v30 = vmul.f32 -1.442695, %v3345_v50  ;;  %v4492_v61 = vpop.f32.mrb[47].mxu0 }
 0xa07   :  { %v5310_v21 = vpop.eup %5309  ;;  %v3447_v3 = vmul.f32 %v5308_v40, %v5294_v15  ;;  %v3966_v32 = vmul.f32 -1.442695, %v3344_v56 }
 0xa08   :  { %v5312_v5 = vpop.eup %5311  ;;  %5329 = vrcp.f32 %v3394_v1  ;;  %v3443_v0 = vmul.f32 %v5310_v21, %v6839_v41 }
 0xa09   :  { %v5314_v14 = vpop.eup %5313  ;;  %v3442_v33 = vmul.f32 %v5312_v5, %v6842_v57  ;;  %5331 = vpow2.f32 %v3967_v30 }
 0xa0a   :  { %v5316_v46 = vpop.eup %5315  ;;  %v3446_v35 = vmul.f32 %v5314_v14, %v5296_v28  ;;  %5333 = vpow2.f32 %v3966_v32 }
 0xa0b   :  { %v5318_v34 = vpop.eup %5317  ;;  %v3452_v39 = vadd.f32 %v3447_v3, %v3442_v33  ;;  %v3449_v45 = vmul.f32 %v5316_v46, %v5298_v12 }
 0xa0c   :  { %v5320_v6 = vpop.eup %5319  ;;  %v3451_v37 = vadd.f32 %v3446_v35, %v3441_v24  ;;  %v3445_v25 = vmul.f32 %v5318_v34, %v6844_v23 }
 0xa0d   :  { %v5322_v29 = vpop.eup %5321  ;;  %v3448_v51 = vmul.f32 %v5320_v6, %v5300_v55 }
 0xa0e   :  { %v5324_v59 = vpop.eup %5323  ;;  %v3426_v38 = vadd.f32 1.0, %v5322_v29  ;;  %5335 = vtanh.f32 %v3451_v37 }
 0xa0f   :  { %v5326_v62 = vpop.eup %5325  ;;  %v3453_v57 = vadd.f32 %v3448_v51, %v3443_v0  ;;  %v3450_v36 = vmul.f32 %v5324_v59, %v5304_v16 }
 0xa10   :  { %v5328_v58 = vpop.eup %5327  ;;  %5337 = vrcp.f32 %v3426_v38  ;;  %v3428_v54 = vadd.f32 1.0, %v5326_v62 }
 0xa11   :  { %5339 = vtanh.f32 %v3453_v57  ;;  %v3455_v42 = vadd.f32 %v3450_v36, %v3445_v25  ;;  %v3427_v41 = vadd.f32 1.0, %v5328_v58 }
 0xa12   :  { %v5330_v44 = vpop.eup %5329  ;;  %5341 = vrcp.f32 %v3428_v54 }
 0xa13   :  { %v5332_v20 = vpop.eup %5331  ;;  %v3444_v43 = vmul.f32 %v5330_v44, %v6850_v22  ;;  %5343 = vtanh.f32 %v3452_v39 }
 0xa14   :  { %v5334_v23 = vpop.eup %5333  ;;  %5345 = vrcp.f32 %v3427_v41  ;;  %v3430_v48 = vadd.f32 1.0, %v5332_v20 }
 0xa15   :  { %v3454_v31 = vadd.f32 %v3449_v45, %v3444_v43  ;;  %5347 = vtanh.f32 %v3455_v42  ;;  %v3429_v19 = vadd.f32 1.0, %v5334_v23 }
 0xa16   :  { %5349 = vrcp.f32 %v3430_v48 }
 0xa17   :  { %5351 = vtanh.f32 %v3454_v31 }
 0xa18   :  { %5353 = vrcp.f32 %v3429_v19  ;;  %v5336_v49 = vpop.eup %5335 }
 0xa1a   :  { %v5338_v47 = vpop.eup %5337 }
 0xa1b   :  { %v5340_v2 = vpop.eup %5339  ;;  %v3461_v60 = vmul.f32 %v5338_v47, %v5336_v49 }
 0xa1c   :  { %v5342_v13 = vpop.eup %5341 }
 0xa1d   :  { %v5344_v15 = vpop.eup %5343  ;;  %3466 = vxpose.xlu0.b32.start [1/5] (short) (narrow) %v3461_v60, 8  ;;  %v3463_v18 = vmul.f32 %v5342_v13, %v5340_v2 }
 0xa1e   :  { %v5346_v8 = vpop.eup %5345 }
 0xa1f   :  { %v5348_v22 = vpop.eup %5347  ;;  %v3462_v27 = vmul.f32 %v5346_v8, %v5344_v15 }
 0xa20   :  { %v5350_v28 = vpop.eup %5349 }
 0xa21   :  { %v5352_v26 = vpop.eup %5351  ;;  %3467 = vxpose.xlu0.b32.cont [2/5] (short) (narrow) %v3462_v27, 8  ;;  %v3465_v7 = vmul.f32 %v5350_v28, %v5348_v22 }
 0xa22   :  { %v5354_v10 = vpop.eup %5353 }
 0xa23   :  { %v3464_v12 = vmul.f32 %v5354_v10, %v5352_v26 }
 0xa25   :  { %3468 = vxpose.xlu0.b32.cont [3/5] (short) (narrow) %v3463_v18, 8 }
 0xa29   :  { %3469 = vxpose.xlu0.b32.cont [4/5] (short) (narrow) %v3464_v12, 8 }
 0xa2d   :  { %3470 = vxpose.xlu0.b32.end [5/5] (short) (narrow) %v3465_v7, 8 }
 0xa9d   :  { %v3482_v55 = vpop.trf.xlu0 }
 0xa9e   :  { %4504 = vmatmul.mubr.msk.f32.vlgmr.msra.gmra.mrb[48].mxu0 %vm965_vm1, %v3482_v55 }
 0xb71   :  { %v3652_v4 = vpop.f32.mrb[48].mxu0 }
 0xb72   :  { %v3653_v17 = vadd.f32 %v3652_v4, %v3579_v9  ;;  %v4505_v11 = vpop.f32.mrb[49].mxu0 }
 0xb74   :  { %v3663_v16 = vadd.f32 %v3971_v52, %v3653_v17 }
 0xb76   :  { %3665 = vst.msk [vmem:[#allocation2] sm:$0x3] %vm3664_vm9, %v3663_v16 }
 0xb77   :  { %5407 = shalt.err (!%p5404_p4)
}
 0xb78   :  { %s5408_s11 = scalar_lea.hbm %s6960_s10, 32 }
 0xb79   :  { %p5409_p5 = scmp.ne.s32.totalorder %s6960_s10, %s5408_s11  ;;  %p5412_p6 = scmp.lt.u32.totalorder %s5408_s11, %s6960_s10 }
 0xb7b   :  { %p5414_p7 = pnand %p5412_p6, %p5409_p5 }
 0xb7d   :  { %5417 = shalt.err (!%p5414_p7)
}
 0xb7e   :  { %3675 = dma.vmem_to_hbm [thread:$0]  %s3673_s28, 32, %s6960_s10, [#allocation3]  }
 0xb7f   :  { %5418 = dma.done.wait [#allocation3], 32  }
 0xb80   :  { %5419 = vsyncadd [#allocation3], 4294967264 }
 0xb81   :  { %3679 = vsyncpa [#allocation3], 1 }

</bundles_post_ra>
